<compile_context>
chip_gen: v6e
topology: v6e:2x2x1
jax: 0.10.0
libtpu: 0.0.40
codegen_flags: <defaults>
</compile_context>

<pallas_src>
import functools

import jax
import jax.numpy as jnp
import numpy as np
from jax import lax
from jax.experimental import pallas as pl
from jax.experimental.pallas import tpu as pltpu

LEAKY_SLOPE = 0.2
BN_EPS = 1e-5
KVOL = 4 * 4 * 4  # 3-D kernel volume


def _round_up(x, m):
    return ((x + m - 1) // m) * m


# ----------------------------- Pallas kernel --------------------------------


def _conv_mm_kernel(*refs, tm, m_total, has_affine, out_slope, emit_stats):
    """One M-tile of the im2col matmul.

    Optionally fuses, on the input side, the previous layer's BatchNorm affine
    (per-A-column scale/shift) + LeakyReLU; on the output side an optional
    LeakyReLU and per-tile masked (sum, sum_sq) column stats for the next BN.
    """
    if has_affine:
        a_ref, b_ref, scale_ref, shift_ref = refs[0], refs[1], refs[2], refs[3]
        rest = refs[4:]
    else:
        a_ref, b_ref = refs[0], refs[1]
        rest = refs[2:]
    o_ref = rest[0]
    stats_ref = rest[1] if emit_stats else None

    a = a_ref[...]  # (tm, K) bf16
    if has_affine:
        # BN (scale/shift) + LeakyReLU of the previous layer, applied to the
        # gathered patches; f32 math, cast back to bf16 for the MXU.
        x = a.astype(jnp.float32) * scale_ref[...] + shift_ref[...]
        x = jnp.where(x >= 0.0, x, LEAKY_SLOPE * x)
        a = x.astype(jnp.bfloat16)

    acc = jnp.dot(a, b_ref[...], preferred_element_type=jnp.float32)
    if out_slope is not None:
        acc = jnp.where(acc >= 0.0, acc, out_slope * acc)
    o_ref[...] = acc.astype(o_ref.dtype)

    if emit_stats:
        # Mask ragged/garbage rows of the last M block, then column sums.
        rows = lax.broadcasted_iota(jnp.int32, acc.shape, 0) + pl.program_id(0) * tm
        v = jnp.where(rows < m_total, acc, 0.0)
        s = jnp.sum(v, axis=0, keepdims=True)        # (1, Np)
        sq = jnp.sum(v * v, axis=0, keepdims=True)   # (1, Np)
        stats_ref[...] = jnp.concatenate([s, sq], axis=0).reshape(stats_ref.shape)


def _conv_layer(a, b_mat, *, affine=None, out_slope=None, emit_stats=False,
                out_dtype=jnp.bfloat16, tm_max=512):
    """(M, K) bf16 @ (K, Cout) -> (M, Cout padded to 128).

    affine: optional (scale, shift), each (1, K) f32, applied (plus LeakyReLU)
    to A inside the kernel.  emit_stats: also return (grid, 2, Np) per-tile
    column (sum, sum_sq) of the f32 output for a following BatchNorm.
    """
    M, K = a.shape
    cout = b_mat.shape[1]
    Np = _round_up(cout, 128)
    # Weight matrix is tiny; lane-pad it to 128 once (bf16).
    bp = jnp.zeros((K, Np), jnp.bfloat16).at[:, :cout].set(b_mat.astype(jnp.bfloat16))

    tm = min(tm_max, _round_up(M, 8))
    grid = pl.cdiv(M, tm)

    in_specs = [
        pl.BlockSpec((tm, K), lambda i: (i, 0)),
        # B is grid-invariant; at realistic sizes on v7x this spec could also
        # use pipeline_mode=pl.Buffered(1) to drop the redundant second buffer.
        pl.BlockSpec((K, Np), lambda i: (0, 0)),
    ]
    inputs = [a, bp]
    if affine is not None:
        scale_a, shift_a = affine
        in_specs += [pl.BlockSpec((1, K), lambda i: (0, 0)),
                     pl.BlockSpec((1, K), lambda i: (0, 0))]
        inputs += [scale_a, shift_a]

    kernel = functools.partial(
        _conv_mm_kernel, tm=tm, m_total=M, has_affine=affine is not None,
        out_slope=out_slope, emit_stats=emit_stats)

    if emit_stats:
        out_shape = (jax.ShapeDtypeStruct((M, Np), out_dtype),
                     jax.ShapeDtypeStruct((grid, 2, Np), jnp.float32))
        out_specs = (pl.BlockSpec((tm, Np), lambda i: (i, 0)),
                     pl.BlockSpec((1, 2, Np), lambda i: (i, 0, 0)))
    else:
        out_shape = jax.ShapeDtypeStruct((M, Np), out_dtype)
        out_specs = pl.BlockSpec((tm, Np), lambda i: (i, 0))

    out = pl.pallas_call(
        kernel,
        grid=(grid,),
        in_specs=in_specs,
        out_specs=out_specs,
        out_shape=out_shape,
        compiler_params=pltpu.CompilerParams(
            dimension_semantics=("parallel",)),
    )(*inputs)
    if emit_stats:
        return out[0], out[1]
    return out, None


# ----------------------------- layer plumbing -------------------------------


def _im2col_3d_cl(y, cin, pad_value=None, k=(4, 4, 4), stride=(1, 2, 2),
                  pad=(0, 1, 1)):
    """Channels-last im2col.  y:(N,D,H,W,Cp) (Cp possibly lane-padded); only
    the first `cin` channels are gathered.  Column order is offset-major,
    channel-minor (j = offset*cin + ci), matching _weight_to_mat.  If
    pad_value (per-channel, shape (cin,)) is given, the spatial padding uses
    that value instead of 0 (emulates padding-after-BN when the BN affine is
    applied inside the consuming kernel).  A is emitted directly in bf16."""
    x = y[..., :cin]
    N, D, H, W, C = x.shape
    kd, kh, kw = k
    sd, sh, sw = stride
    pd, ph, pw = pad
    if pad_value is None:
        xp = jnp.pad(x, ((0, 0), (pd, pd), (ph, ph), (pw, pw), (0, 0)))
    else:
        pv = pad_value.reshape(1, 1, 1, 1, C).astype(jnp.float32)
        xp = jnp.pad(x.astype(jnp.float32) - pv,
                     ((0, 0), (pd, pd), (ph, ph), (pw, pw), (0, 0))) + pv
    Do = (D + 2 * pd - kd) // sd + 1
    Ho = (H + 2 * ph - kh) // sh + 1
    Wo = (W + 2 * pw - kw) // sw + 1
    cols = []
    for a in range(kd):
        for b in range(kh):
            for c in range(kw):
                cols.append(xp[:,
                               a: a + sd * (Do - 1) + 1: sd,
                               b: b + sh * (Ho - 1) + 1: sh,
                               c: c + sw * (Wo - 1) + 1: sw, :])
    patches = jnp.stack(cols, axis=4)                    # (N,Do,Ho,Wo,64,C)
    A = patches.reshape(N * Do * Ho * Wo, kd * kh * kw * C).astype(jnp.bfloat16)
    return A, (N, Do, Ho, Wo)


def _weight_to_mat(w):
    """(Cout, Cin, kd, kh, kw) -> (kd*kh*kw*Cin, Cout), row = offset*Cin + ci."""
    cout = w.shape[0]
    return jnp.transpose(w, (2, 3, 4, 1, 0)).reshape(-1, cout)


def _bn_affine(stats, m_total, c, gamma, beta):
    """Turn fused (sum, sum_sq) stats into per-A-column scale/shift vectors and
    the per-channel pad value that the next conv must use (affine(pad)=0, i.e.
    zero padding *after* BN + LeakyReLU, as in the reference)."""
    s = jnp.sum(stats, axis=0)                            # (2, Np)
    mean = s[0, :c] / m_total
    var = jnp.maximum(s[1, :c] / m_total - mean * mean, 0.0)
    scale = gamma * lax.rsqrt(var + BN_EPS)
    shift = beta - mean * scale
    safe = jnp.where(scale == 0.0, 1.0, scale)            # gamma==0 guard
    pad_value = jnp.where(scale == 0.0, 0.0, -shift / safe)
    scale_a = jnp.tile(scale, KVOL).reshape(1, -1).astype(jnp.float32)
    shift_a = jnp.tile(shift, KVOL).reshape(1, -1).astype(jnp.float32)
    return (scale_a, shift_a), pad_value


def patch_video_discriminator_forward(x, params):
    """Forward pass of PatchVideoDiscriminator (use_noise=False => NoiseLayer
    is identity).  Returns (h, None) like the PyTorch module."""
    # NCDHW -> channels-last, done once.
    y = jnp.transpose(x, (0, 2, 3, 4, 1))
    c_in = y.shape[-1]

    # conv1 + LeakyReLU (fused epilogue).
    a, (n, do, ho, wo) = _im2col_3d_cl(y, c_in)
    y, _ = _conv_layer(a, _weight_to_mat(params["w1"]), out_slope=LEAKY_SLOPE)
    y = y.reshape(n, do, ho, wo, -1)
    c1 = params["w1"].shape[0]

    # conv2; BN2 batch stats fused into its epilogue.
    a, (n, do, ho, wo) = _im2col_3d_cl(y, c1)
    y, st2 = _conv_layer(a, _weight_to_mat(params["w2"]), emit_stats=True)
    aff2, pad2 = _bn_affine(st2, a.shape[0], c1 * 2, params["g2"], params["b2"])
    y = y.reshape(n, do, ho, wo, -1)
    c2 = params["w2"].shape[0]

    # conv3; BN2 + LeakyReLU applied to its A tiles in-kernel; BN3 stats fused.
    a, (n, do, ho, wo) = _im2col_3d_cl(y, c2, pad_value=pad2)
    y, st3 = _conv_layer(a, _weight_to_mat(params["w3"]), affine=aff2,
                         emit_stats=True)
    aff3, pad3 = _bn_affine(st3, a.shape[0], c2 * 2, params["g3"], params["b3"])
    y = y.reshape(n, do, ho, wo, -1)
    c3 = params["w3"].shape[0]

    # conv4 (Cout=1); BN3 + LeakyReLU applied to its A tiles in-kernel.
    # (At Cout=1 a VPU dot-reduce would avoid the 128-lane pad; the cost here
    #  is negligible so the generic MXU path is reused.)
    a, (n, do, ho, wo) = _im2col_3d_cl(y, c3, pad_value=pad3)
    y, _ = _conv_layer(a, _weight_to_mat(params["w4"]), affine=aff3,
                       out_dtype=jnp.float32)
    h = y[:, 0].reshape(n, do, ho, wo)
    return jnp.squeeze(h), None


# ----------------------------- pure-JAX reference ---------------------------


def _conv3d_ref(x, w):
    return lax.conv_general_dilated(
        x, w, window_strides=(1, 2, 2),
        padding=((0, 0), (1, 1), (1, 1)),
        dimension_numbers=("NCDHW", "OIDHW", "NCDHW"))


def _leaky_ref(x):
    return jnp.where(x >= 0.0, x, LEAKY_SLOPE * x)


def _bn_ref(x, g, b):
    mean = jnp.mean(x, axis=(0, 2, 3, 4), keepdims=True)
    var = jnp.mean(jnp.square(x - mean), axis=(0, 2, 3, 4), keepdims=True)
    y = (x - mean) * lax.rsqrt(var + BN_EPS)
    return y * g.reshape(1, -1, 1, 1, 1) + b.reshape(1, -1, 1, 1, 1)


def forward_ref(x, p):
    h = _leaky_ref(_conv3d_ref(x, p["w1"]))
    h = _leaky_ref(_bn_ref(_conv3d_ref(h, p["w2"]), p["g2"], p["b2"]))
    h = _leaky_ref(_bn_ref(_conv3d_ref(h, p["w3"]), p["g3"], p["b3"]))
    h = _conv3d_ref(h, p["w4"])
    return jnp.squeeze(h)


# ----------------------------------- main ------------------------------------

if __name__ == "__main__":
    key = jax.random.PRNGKey(0)
    ks = jax.random.split(key, 6)

    n_channels, ndf = 4, 8          # small synthetic config
    N, D, H, W = 2, 16, 16, 16      # depth >= 13 so four depth-4 convs fit

    def w_init(k, co, ci):
        return (0.05 * jax.random.normal(k, (co, ci, 4, 4, 4))).astype(jnp.float32)

    params = {
        "w1": w_init(ks[0], ndf, n_channels),
        "w2": w_init(ks[1], ndf * 2, ndf),
        "g2": jnp.ones((ndf * 2,), jnp.float32),
        "b2": jnp.zeros((ndf * 2,), jnp.float32),
        "w3": w_init(ks[2], ndf * 4, ndf * 2),
        "g3": jnp.ones((ndf * 4,), jnp.float32),
        "b3": jnp.zeros((ndf * 4,), jnp.float32),
        "w4": w_init(ks[3], 1, ndf * 4),
    }

    x = jax.random.normal(ks[4], (N, n_channels, D, H, W), dtype=jnp.float32)

    h, aux = jax.jit(patch_video_discriminator_forward)(x, params)
    h = jax.block_until_ready(h)
    assert aux is None
    assert h.shape == (N, D - 12)   # (2, 4) after squeeze

    ref = forward_ref(x, params)
    # bf16 MXU inputs + bf16 intermediate activations => looser tolerance.
    np.testing.assert_allclose(np.asarray(h), np.asarray(ref), rtol=5e-2, atol=5e-2)

    print("KERNEL_OK")
</pallas_src>

<mosaic_0001>
module attributes {stable_mosaic.version = 11 : i64} {
  func.func @_conv_mm_kernel(%arg0: i32, %arg1: memref<512x256xbf16, #tpu.memory_space<vmem>>, %arg2: memref<256x128xbf16, #tpu.memory_space<vmem>>, %arg3: memref<512x128xbf16, #tpu.memory_space<vmem>>) attributes {dimension_semantics = [#tpu.dimension_semantics<parallel>], iteration_bounds = array<i64: 4>, scalar_prefetch = 0 : i64, scratch_operands = 0 : i64, tpu.core_type = #tpu.core_type<tc>, window_params = [{transform_indices = @transform_0, window_bounds = array<i64: 512, 256>}, {pipeline_mode = #tpu.pipeline_mode<synchronous>, transform_indices = @transform_1, window_bounds = array<i64: 256, 128>}, {transform_indices = @transform_2, window_bounds = array<i64: 512, 128>}]} {
    %c0 = arith.constant 0 : index
    %c0_0 = arith.constant 0 : index
    %0 = vector.load %arg1[%c0, %c0_0] : memref<512x256xbf16, #tpu.memory_space<vmem>>, vector<512x256xbf16>
    %c0_1 = arith.constant 0 : index
    %c0_2 = arith.constant 0 : index
    %1 = vector.load %arg2[%c0_1, %c0_2] : memref<256x128xbf16, #tpu.memory_space<vmem>>, vector<256x128xbf16>
    %cst = arith.constant dense<0.000000e+00> : vector<512x128xf32>
    %2 = tpu.matmul %0, %1, %cst {dimension_numbers = #tpu.dot_dimension_numbers<[1], [0], [0], [1], [0, 0, 1, 1], [], []>} : vector<512x256xbf16>, vector<256x128xbf16>, vector<512x128xf32> -> vector<512x128xf32>
    %cst_3 = arith.constant 0.000000e+00 : f32
    %3 = vector.broadcast %cst_3 : f32 to vector<512x128xf32>
    %4 = arith.cmpf oge, %2, %3 : vector<512x128xf32>
    %cst_4 = arith.constant 2.000000e-01 : f32
    %5 = vector.broadcast %cst_4 : f32 to vector<512x128xf32>
    %6 = arith.mulf %5, %2 : vector<512x128xf32>
    %7 = arith.select %4, %2, %6 : vector<512x128xi1>, vector<512x128xf32>
    %8 = arith.truncf %7 : vector<512x128xf32> to vector<512x128xbf16>
    %c0_5 = arith.constant 0 : index
    %c0_6 = arith.constant 0 : index
    %9 = vector.load %arg3[%c0_5, %c0_6] : memref<512x128xbf16, #tpu.memory_space<vmem>>, vector<512x128xbf16>
    tpu.vector_store %arg3[%c0_5, %c0_6], %8 {strides = array<i32>} : memref<512x128xbf16, #tpu.memory_space<vmem>>, vector<512x128xbf16>,
    return
  }
  func.func @transform_0(%arg0: i32) -> (i32, i32) {
    %c0_i32 = arith.constant 0 : i32
    %c0_i32_0 = arith.constant 0 : i32
    return %arg0, %c0_i32 : i32, i32
  }
  func.func @transform_1(%arg0: i32) -> (i32, i32) {
    %c0_i32 = arith.constant 0 : i32
    %c0_i32_0 = arith.constant 0 : i32
    %c0_i32_1 = arith.constant 0 : i32
    return %c0_i32, %c0_i32_0 : i32, i32
  }
  func.func @transform_2(%arg0: i32) -> (i32, i32) {
    %c0_i32 = arith.constant 0 : i32
    %c0_i32_0 = arith.constant 0 : i32
    return %arg0, %c0_i32 : i32, i32
  }
}

module attributes {stable_mosaic.version = 11 : i64} {
  func.func @_conv_mm_kernel(%arg0: i32, %arg1: memref<320x512xbf16, #tpu.memory_space<vmem>>, %arg2: memref<512x128xbf16, #tpu.memory_space<vmem>>, %arg3: memref<320x128xbf16, #tpu.memory_space<vmem>>, %arg4: memref<1x2x128xf32, #tpu.memory_space<vmem>>) attributes {dimension_semantics = [#tpu.dimension_semantics<parallel>], iteration_bounds = array<i64: 1>, scalar_prefetch = 0 : i64, scratch_operands = 0 : i64, tpu.core_type = #tpu.core_type<tc>, window_params = [{transform_indices = @transform_0, window_bounds = array<i64: 320, 512>}, {pipeline_mode = #tpu.pipeline_mode<synchronous>, transform_indices = @transform_1, window_bounds = array<i64: 512, 128>}, {transform_indices = @transform_2, window_bounds = array<i64: 320, 128>}, {transform_indices = @transform_3, window_bounds = array<i64: 1, 2, 128>}]} {
    %c0 = arith.constant 0 : index
    %c0_0 = arith.constant 0 : index
    %0 = vector.load %arg1[%c0, %c0_0] : memref<320x512xbf16, #tpu.memory_space<vmem>>, vector<320x512xbf16>
    %c0_1 = arith.constant 0 : index
    %c0_2 = arith.constant 0 : index
    %1 = vector.load %arg2[%c0_1, %c0_2] : memref<512x128xbf16, #tpu.memory_space<vmem>>, vector<512x128xbf16>
    %cst = arith.constant dense<0.000000e+00> : vector<320x128xf32>
    %2 = tpu.matmul %0, %1, %cst {dimension_numbers = #tpu.dot_dimension_numbers<[1], [0], [0], [1], [0, 0, 1, 1], [], []>} : vector<320x512xbf16>, vector<512x128xbf16>, vector<320x128xf32> -> vector<320x128xf32>
    %3 = arith.truncf %2 : vector<320x128xf32> to vector<320x128xbf16>
    %c0_3 = arith.constant 0 : index
    %c0_4 = arith.constant 0 : index
    %4 = vector.load %arg3[%c0_3, %c0_4] : memref<320x128xbf16, #tpu.memory_space<vmem>>, vector<320x128xbf16>
    tpu.vector_store %arg3[%c0_3, %c0_4], %3 {strides = array<i32>} : memref<320x128xbf16, #tpu.memory_space<vmem>>, vector<320x128xbf16>,
    %5 = tpu.iota {dimensions = array<i32: 0>} : vector<320x128xi32>
    %c320_i32 = arith.constant 320 : i32
    %6 = arith.muli %arg0, %c320_i32 : i32
    %7 = vector.broadcast %6 : i32 to vector<320x128xi32>
    %8 = arith.addi %5, %7 : vector<320x128xi32>
    %c320_i32_5 = arith.constant 320 : i32
    %9 = vector.broadcast %c320_i32_5 : i32 to vector<320x128xi32>
    %10 = arith.cmpi slt, %8, %9 : vector<320x128xi32>
    %cst_6 = arith.constant 0.000000e+00 : f32
    %11 = vector.broadcast %cst_6 : f32 to vector<320x128xf32>
    %12 = arith.select %10, %2, %11 : vector<320x128xi1>, vector<320x128xf32>
    %cst_7 = arith.constant dense<0.000000e+00> : vector<128xf32>
    %13 = vector.multi_reduction <add>, %12, %cst_7 [0] : vector<320x128xf32> to vector<128xf32>
    %14 = vector.shape_cast %13 : vector<128xf32> to vector<1x128xf32>
    %15 = arith.mulf %12, %12 : vector<320x128xf32>
    %cst_8 = arith.constant dense<0.000000e+00> : vector<128xf32>
    %16 = vector.multi_reduction <add>, %15, %cst_8 [0] : vector<320x128xf32> to vector<128xf32>
    %17 = vector.shape_cast %16 : vector<128xf32> to vector<1x128xf32>
    %18 = tpu.concatenate %14, %17 in 0 : vector<1x128xf32>, vector<1x128xf32> -> vector<2x128xf32>
    %19 = vector.shape_cast %18 : vector<2x128xf32> to vector<1x2x128xf32>
    %c0_9 = arith.constant 0 : index
    %c0_10 = arith.constant 0 : index
    %c0_11 = arith.constant 0 : index
    %20 = vector.load %arg4[%c0_9, %c0_10, %c0_11] : memref<1x2x128xf32, #tpu.memory_space<vmem>>, vector<1x2x128xf32>
    tpu.vector_store %arg4[%c0_9, %c0_10, %c0_11], %19 {strides = array<i32>} : memref<1x2x128xf32, #tpu.memory_space<vmem>>, vector<1x2x128xf32>,
    return
  }
  func.func @transform_0(%arg0: i32) -> (i32, i32) {
    %c0_i32 = arith.constant 0 : i32
    %c0_i32_0 = arith.constant 0 : i32
    return %arg0, %c0_i32 : i32, i32
  }
  func.func @transform_1(%arg0: i32) -> (i32, i32) {
    %c0_i32 = arith.constant 0 : i32
    %c0_i32_0 = arith.constant 0 : i32
    %c0_i32_1 = arith.constant 0 : i32
    return %c0_i32, %c0_i32_0 : i32, i32
  }
  func.func @transform_2(%arg0: i32) -> (i32, i32) {
    %c0_i32 = arith.constant 0 : i32
    %c0_i32_0 = arith.constant 0 : i32
    return %arg0, %c0_i32 : i32, i32
  }
  func.func @transform_3(%arg0: i32) -> (i32, i32, i32) {
    %c0_i32 = arith.constant 0 : i32
    %c0_i32_0 = arith.constant 0 : i32
    %c0_i32_1 = arith.constant 0 : i32
    return %arg0, %c0_i32, %c0_i32_0 : i32, i32, i32
  }
}

module attributes {stable_mosaic.version = 11 : i64} {
  func.func @_conv_mm_kernel(%arg0: i32, %arg1: memref<56x1024xbf16, #tpu.memory_space<vmem>>, %arg2: memref<1024x128xbf16, #tpu.memory_space<vmem>>, %arg3: memref<1x1024xf32, #tpu.memory_space<vmem>>, %arg4: memref<1x1024xf32, #tpu.memory_space<vmem>>, %arg5: memref<56x128xbf16, #tpu.memory_space<vmem>>, %arg6: memref<1x2x128xf32, #tpu.memory_space<vmem>>) attributes {dimension_semantics = [#tpu.dimension_semantics<parallel>], iteration_bounds = array<i64: 1>, scalar_prefetch = 0 : i64, scratch_operands = 0 : i64, tpu.core_type = #tpu.core_type<tc>, window_params = [{transform_indices = @transform_0, window_bounds = array<i64: 56, 1024>}, {pipeline_mode = #tpu.pipeline_mode<synchronous>, transform_indices = @transform_1, window_bounds = array<i64: 1024, 128>}, {pipeline_mode = #tpu.pipeline_mode<synchronous>, transform_indices = @transform_2, window_bounds = array<i64: 1, 1024>}, {pipeline_mode = #tpu.pipeline_mode<synchronous>, transform_indices = @transform_3, window_bounds = array<i64: 1, 1024>}, {transform_indices = @transform_4, window_bounds = array<i64: 56, 128>}, {transform_indices = @transform_5, window_bounds = array<i64: 1, 2, 128>}]} {
    %c0 = arith.constant 0 : index
    %c0_0 = arith.constant 0 : index
    %0 = vector.load %arg1[%c0, %c0_0] : memref<56x1024xbf16, #tpu.memory_space<vmem>>, vector<56x1024xbf16>
    %1 = arith.extf %0 : vector<56x1024xbf16> to vector<56x1024xf32>
    %c0_1 = arith.constant 0 : index
    %c0_2 = arith.constant 0 : index
    %2 = vector.load %arg3[%c0_1, %c0_2] : memref<1x1024xf32, #tpu.memory_space<vmem>>, vector<1x1024xf32>
    %3 = vector.broadcast %2 : vector<1x1024xf32> to vector<56x1024xf32>
    %4 = arith.mulf %1, %3 : vector<56x1024xf32>
    %c0_3 = arith.constant 0 : index
    %c0_4 = arith.constant 0 : index
    %5 = vector.load %arg4[%c0_3, %c0_4] : memref<1x1024xf32, #tpu.memory_space<vmem>>, vector<1x1024xf32>
    %6 = vector.broadcast %5 : vector<1x1024xf32> to vector<56x1024xf32>
    %7 = arith.addf %4, %6 : vector<56x1024xf32>
    %cst = arith.constant 0.000000e+00 : f32
    %8 = vector.broadcast %cst : f32 to vector<56x1024xf32>
    %9 = arith.cmpf oge, %7, %8 : vector<56x1024xf32>
    %cst_5 = arith.constant 2.000000e-01 : f32
    %10 = vector.broadcast %cst_5 : f32 to vector<56x1024xf32>
    %11 = arith.mulf %10, %7 : vector<56x1024xf32>
    %12 = arith.select %9, %7, %11 : vector<56x1024xi1>, vector<56x1024xf32>
    %13 = arith.truncf %12 : vector<56x1024xf32> to vector<56x1024xbf16>
    %c0_6 = arith.constant 0 : index
    %c0_7 = arith.constant 0 : index
    %14 = vector.load %arg2[%c0_6, %c0_7] : memref<1024x128xbf16, #tpu.memory_space<vmem>>, vector<1024x128xbf16>
    %cst_8 = arith.constant dense<0.000000e+00> : vector<56x128xf32>
    %15 = tpu.matmul %13, %14, %cst_8 {dimension_numbers = #tpu.dot_dimension_numbers<[1], [0], [0], [1], [0, 0, 1, 1], [], []>} : vector<56x1024xbf16>, vector<1024x128xbf16>, vector<56x128xf32> -> vector<56x128xf32>
    %16 = arith.truncf %15 : vector<56x128xf32> to vector<56x128xbf16>
    %c0_9 = arith.constant 0 : index
    %c0_10 = arith.constant 0 : index
    %17 = vector.load %arg5[%c0_9, %c0_10] : memref<56x128xbf16, #tpu.memory_space<vmem>>, vector<56x128xbf16>
    tpu.vector_store %arg5[%c0_9, %c0_10], %16 {strides = array<i32>} : memref<56x128xbf16, #tpu.memory_space<vmem>>, vector<56x128xbf16>,
    %18 = tpu.iota {dimensions = array<i32: 0>} : vector<56x128xi32>
    %c56_i32 = arith.constant 56 : i32
    %19 = arith.muli %arg0, %c56_i32 : i32
    %20 = vector.broadcast %19 : i32 to vector<56x128xi32>
    %21 = arith.addi %18, %20 : vector<56x128xi32>
    %c56_i32_11 = arith.constant 56 : i32
    %22 = vector.broadcast %c56_i32_11 : i32 to vector<56x128xi32>
    %23 = arith.cmpi slt, %21, %22 : vector<56x128xi32>
    %cst_12 = arith.constant 0.000000e+00 : f32
    %24 = vector.broadcast %cst_12 : f32 to vector<56x128xf32>
    %25 = arith.select %23, %15, %24 : vector<56x128xi1>, vector<56x128xf32>
    %cst_13 = arith.constant dense<0.000000e+00> : vector<128xf32>
    %26 = vector.multi_reduction <add>, %25, %cst_13 [0] : vector<56x128xf32> to vector<128xf32>
    %27 = vector.shape_cast %26 : vector<128xf32> to vector<1x128xf32>
    %28 = arith.mulf %25, %25 : vector<56x128xf32>
    %cst_14 = arith.constant dense<0.000000e+00> : vector<128xf32>
    %29 = vector.multi_reduction <add>, %28, %cst_14 [0] : vector<56x128xf32> to vector<128xf32>
    %30 = vector.shape_cast %29 : vector<128xf32> to vector<1x128xf32>
    %31 = tpu.concatenate %27, %30 in 0 : vector<1x128xf32>, vector<1x128xf32> -> vector<2x128xf32>
    %32 = vector.shape_cast %31 : vector<2x128xf32> to vector<1x2x128xf32>
    %c0_15 = arith.constant 0 : index
    %c0_16 = arith.constant 0 : index
    %c0_17 = arith.constant 0 : index
    %33 = vector.load %arg6[%c0_15, %c0_16, %c0_17] : memref<1x2x128xf32, #tpu.memory_space<vmem>>, vector<1x2x128xf32>
    tpu.vector_store %arg6[%c0_15, %c0_16, %c0_17], %32 {strides = array<i32>} : memref<1x2x128xf32, #tpu.memory_space<vmem>>, vector<1x2x128xf32>,
    return
  }
  func.func @transform_0(%arg0: i32) -> (i32, i32) {
    %c0_i32 = arith.constant 0 : i32
    %c0_i32_0 = arith.constant 0 : i32
    return %arg0, %c0_i32 : i32, i32
  }
  func.func @transform_1(%arg0: i32) -> (i32, i32) {
    %c0_i32 = arith.constant 0 : i32
    %c0_i32_0 = arith.constant 0 : i32
    %c0_i32_1 = arith.constant 0 : i32
    return %c0_i32, %c0_i32_0 : i32, i32
  }
  func.func @transform_2(%arg0: i32) -> (i32, i32) {
    %c0_i32 = arith.constant 0 : i32
    %c0_i32_0 = arith.constant 0 : i32
    %c0_i32_1 = arith.constant 0 : i32
    return %c0_i32, %c0_i32_0 : i32, i32
  }
  func.func @transform_3(%arg0: i32) -> (i32, i32) {
    %c0_i32 = arith.constant 0 : i32
    %c0_i32_0 = arith.constant 0 : i32
    %c0_i32_1 = arith.constant 0 : i32
    return %c0_i32, %c0_i32_0 : i32, i32
  }
  func.func @transform_4(%arg0: i32) -> (i32, i32) {
    %c0_i32 = arith.constant 0 : i32
    %c0_i32_0 = arith.constant 0 : i32
    return %arg0, %c0_i32 : i32, i32
  }
  func.func @transform_5(%arg0: i32) -> (i32, i32, i32) {
    %c0_i32 = arith.constant 0 : i32
    %c0_i32_0 = arith.constant 0 : i32
    %c0_i32_1 = arith.constant 0 : i32
    return %arg0, %c0_i32, %c0_i32_0 : i32, i32, i32
  }
}

module attributes {stable_mosaic.version = 11 : i64} {
  func.func @_conv_mm_kernel(%arg0: i32, %arg1: memref<8x2048xbf16, #tpu.memory_space<vmem>>, %arg2: memref<2048x128xbf16, #tpu.memory_space<vmem>>, %arg3: memref<1x2048xf32, #tpu.memory_space<vmem>>, %arg4: memref<1x2048xf32, #tpu.memory_space<vmem>>, %arg5: memref<8x128xf32, #tpu.memory_space<vmem>>) attributes {dimension_semantics = [#tpu.dimension_semantics<parallel>], iteration_bounds = array<i64: 1>, scalar_prefetch = 0 : i64, scratch_operands = 0 : i64, tpu.core_type = #tpu.core_type<tc>, window_params = [{transform_indices = @transform_0, window_bounds = array<i64: 8, 2048>}, {pipeline_mode = #tpu.pipeline_mode<synchronous>, transform_indices = @transform_1, window_bounds = array<i64: 2048, 128>}, {pipeline_mode = #tpu.pipeline_mode<synchronous>, transform_indices = @transform_2, window_bounds = array<i64: 1, 2048>}, {pipeline_mode = #tpu.pipeline_mode<synchronous>, transform_indices = @transform_3, window_bounds = array<i64: 1, 2048>}, {transform_indices = @transform_4, window_bounds = array<i64: 8, 128>}]} {
    %c0 = arith.constant 0 : index
    %c0_0 = arith.constant 0 : index
    %0 = vector.load %arg1[%c0, %c0_0] : memref<8x2048xbf16, #tpu.memory_space<vmem>>, vector<8x2048xbf16>
    %1 = arith.extf %0 : vector<8x2048xbf16> to vector<8x2048xf32>
    %c0_1 = arith.constant 0 : index
    %c0_2 = arith.constant 0 : index
    %2 = vector.load %arg3[%c0_1, %c0_2] : memref<1x2048xf32, #tpu.memory_space<vmem>>, vector<1x2048xf32>
    %3 = vector.broadcast %2 : vector<1x2048xf32> to vector<8x2048xf32>
    %4 = arith.mulf %1, %3 : vector<8x2048xf32>
    %c0_3 = arith.constant 0 : index
    %c0_4 = arith.constant 0 : index
    %5 = vector.load %arg4[%c0_3, %c0_4] : memref<1x2048xf32, #tpu.memory_space<vmem>>, vector<1x2048xf32>
    %6 = vector.broadcast %5 : vector<1x2048xf32> to vector<8x2048xf32>
    %7 = arith.addf %4, %6 : vector<8x2048xf32>
    %cst = arith.constant 0.000000e+00 : f32
    %8 = vector.broadcast %cst : f32 to vector<8x2048xf32>
    %9 = arith.cmpf oge, %7, %8 : vector<8x2048xf32>
    %cst_5 = arith.constant 2.000000e-01 : f32
    %10 = vector.broadcast %cst_5 : f32 to vector<8x2048xf32>
    %11 = arith.mulf %10, %7 : vector<8x2048xf32>
    %12 = arith.select %9, %7, %11 : vector<8x2048xi1>, vector<8x2048xf32>
    %13 = arith.truncf %12 : vector<8x2048xf32> to vector<8x2048xbf16>
    %c0_6 = arith.constant 0 : index
    %c0_7 = arith.constant 0 : index
    %14 = vector.load %arg2[%c0_6, %c0_7] : memref<2048x128xbf16, #tpu.memory_space<vmem>>, vector<2048x128xbf16>
    %cst_8 = arith.constant dense<0.000000e+00> : vector<8x128xf32>
    %15 = tpu.matmul %13, %14, %cst_8 {dimension_numbers = #tpu.dot_dimension_numbers<[1], [0], [0], [1], [0, 0, 1, 1], [], []>} : vector<8x2048xbf16>, vector<2048x128xbf16>, vector<8x128xf32> -> vector<8x128xf32>
    %c0_9 = arith.constant 0 : index
    %c0_10 = arith.constant 0 : index
    %16 = vector.load %arg5[%c0_9, %c0_10] : memref<8x128xf32, #tpu.memory_space<vmem>>, vector<8x128xf32>
    tpu.vector_store %arg5[%c0_9, %c0_10], %15 {strides = array<i32>} : memref<8x128xf32, #tpu.memory_space<vmem>>, vector<8x128xf32>,
    return
  }
  func.func @transform_0(%arg0: i32) -> (i32, i32) {
    %c0_i32 = arith.constant 0 : i32
    %c0_i32_0 = arith.constant 0 : i32
    return %arg0, %c0_i32 : i32, i32
  }
  func.func @transform_1(%arg0: i32) -> (i32, i32) {
    %c0_i32 = arith.constant 0 : i32
    %c0_i32_0 = arith.constant 0 : i32
    %c0_i32_1 = arith.constant 0 : i32
    return %c0_i32, %c0_i32_0 : i32, i32
  }
  func.func @transform_2(%arg0: i32) -> (i32, i32) {
    %c0_i32 = arith.constant 0 : i32
    %c0_i32_0 = arith.constant 0 : i32
    %c0_i32_1 = arith.constant 0 : i32
    return %c0_i32, %c0_i32_0 : i32, i32
  }
  func.func @transform_3(%arg0: i32) -> (i32, i32) {
    %c0_i32 = arith.constant 0 : i32
    %c0_i32_0 = arith.constant 0 : i32
    %c0_i32_1 = arith.constant 0 : i32
    return %c0_i32, %c0_i32_0 : i32, i32
  }
  func.func @transform_4(%arg0: i32) -> (i32, i32) {
    %c0_i32 = arith.constant 0 : i32
    %c0_i32_0 = arith.constant 0 : i32
    return %arg0, %c0_i32 : i32, i32
  }
}

</mosaic_0001>

<bundles_post_ra>
// kernel: patch_video_discriminator_forward.4
= control target key start
LH: loop header
LB: loop body
LE: loop exit
PB: predicated region body
PF: predicated region fallthrough
CT: control target
= control target key end

     0   :  { %s2720_s9 = smov 0   ;;  %s2722_s10 = smov 0   ;;  %s3137_s0 = inlined_call_operand.vmem [shape: bf16[1664,256], index: 0, kind: input, shape index: {}]   ;;  %s3138_s1 = inlined_call_operand.vmem [shape: bf16[256,128], index: 1, kind: input, shape index: {}]   ;;  %s3139_s2 = inlined_call_operand.vmem [shape: bf16[1664,128], index: 2, kind: output, shape index: {}]  }
   0x1   :  { %s2724_s11 = smov 0  }
   0x2 LB: > { %s2733_s12 = sadd.s32 4294967295, %s2670_s11   ;;  %s2735_s13 = sadd.s32 1, %s2670_s11   ;;  %s2670_s11 = sphi %s2724_s11, %s3146_s11   ;;  %s2666_s10 = sphi %s2722_s10, %s3145_s10   ;;  %s2662_s9 = sphi %s2720_s9, %s3144_s9  }
   0x3   : > { %s63_s14 = ssub.s32 %s2670_s11, %s2735_s13  ;;  %s66_s15 = sadd.s32 1, %s2666_s10 }
   0x4   : > { %p64_p0 = scmp.eq.s32.totalorder %s63_s14, 0  ;;  %p76_p1 = scmp.ne.s32.totalorder %s2666_s10, %s2662_s9 }
   0x5   : > { %p77_p2 = scmp.eq.s32.totalorder %s2733_s12, 3  ;;  %p1958_p3 = scmp.ge.s32.totalorder %s2670_s11, 1 }
   0x6   : > { %s2743_s16 = scalar_select %p64_p0, %s2666_s10, %s66_s15  }
   0x7   : > { %p2745_p4 = por %p77_p2, %p76_p1  ;;  %p124_p5 = scmp.lt.s32.totalorder %s2670_s11, 5 }
   0x9   : > { %p125_p6 = pnand %p1958_p3, %p124_p5 }
   0xa   : > { %s2755_s20 = sshll.u32 (!%p125_p6), %s2733_s12, 6  ;;  %s148_s8 = sand.u32 (!%p125_p6), 1, %s2662_s9  }
   0xb   : > { %128 = sbr.rel (%p125_p6) target bundleno = 485 (0x1e5), region = 28  ;;  %p157_p7 = scmp.lt.s32.totalorder (!%p125_p6), %s2755_s20, 207 }
   0xc   : > { %s1959_s11 = sshll.u32 (!%p125_p6), %s148_s8, 8 }
   0xd   : > { %s2904_s9 = scalar_lea.vmem (!%p125_p6), [#allocation2], %s1959_s11  }
  0x10   : > { %v2504_v0 = vld [vmem:[%s3138_s1 + $0x38] sm:$0xff]   ;;  %v2704_v1 = vmov 0   ;;  %v2505_v2 = vld [vmem:[%s3138_s1 + $0x30] sm:$0xff]   ;;  %v2506_v3 = vld [vmem:[%s3138_s1 + $0x28] sm:$0xff]   ;;  %s158_s25 = scalar_select %p157_p7, %s2755_s20, 207 }
  0x11   : > { %686 = vmatprep.subr.bf16.mxu0 %v2704_v1  ;;  %2383 = vmatprep.subr.bf16.mxu1 %v2704_v1  ;;  %v2507_v4 = vld [vmem:[%s3138_s1 + $0x20] sm:$0xff]   ;;  %v2508_v5 = vld [vmem:[%s3138_s1 + $0x18] sm:$0xff]   ;;  %v2509_v7 = vld [vmem:[%s3138_s1 + $0x10] sm:$0xff]   ;;  %s2189_s14 = sshll.u32 (%p2745_p4), %s2733_s12, 8 }
  0x12   : > { %687 = vmatpush1.bf16.msra.mxu0 %v2504_v0  ;;  %2399 = vmatpush1.bf16.msra.mxu1 %v2504_v0  ;;  %s2124_s28 = sshll.u32 %s158_s25, 3  ;;  %v2510_v9 = vld [vmem:[%s3138_s1 + $0x8] sm:$0xff]   ;;  %v2511_v10 = vld [vmem:[%s3138_s1] sm:$0xff]   ;;  %v2512_v11 = vld [vmem:[%s3138_s1 + $0x78] sm:$0xff]   ;;  %s2945_s19 = scalar_lea.vmem (%p2745_p4), %s3139_s2, %s2189_s14  }
  0x13   : > { %688 = vmatprep.subr.bf16.mxu0 %v2704_v1  ;;  %2384 = vmatprep.subr.bf16.mxu1 %v2704_v1  ;;  %s2780_s5 = scalar_lea.vmem %s3137_s0, %s2124_s28  ;;  %v2513_v12 = vld [vmem:[%s3138_s1 + $0x70] sm:$0xff]   ;;  %v2514_v13 = vld [vmem:[%s3138_s1 + $0x68] sm:$0xff]   ;;  %v2515_v14 = vld [vmem:[%s3138_s1 + $0x60] sm:$0xff]  }
  0x14   : > { %v2522_v6 = vld [vmem:[%s2780_s5 + $0x4] ss:$8 sps:$4 sm:$0xff]   ;;  %v2516_v15 = vld [vmem:[%s3138_s1 + $0x58] sm:$0xff]   ;;  %v2517_v16 = vld [vmem:[%s3138_s1 + $0x50] sm:$0xff]  }
  0x15   : > { %v2525_v8 = vld [vmem:[%s2780_s5 + $0x104] ss:$8 sps:$4 sm:$0xff]   ;;  %718 = vmatprep.mubr.bf16.mxu0 %v2522_v6  ;;  %v2520_v19 = vld [vmem:[%s2780_s5] ss:$8 sps:$4 sm:$0xff]   ;;  %v2526_v21 = vld [vmem:[%s2780_s5 + $0x14] ss:$8 sps:$4 sm:$0xff]  }
  0x16   : > { %689 = vmatpush1.bf16.msra.mxu0 %v2505_v2  ;;  %2400 = vmatpush1.bf16.msra.mxu1 %v2505_v2  ;;  %v2518_v17 = vld [vmem:[%s3138_s1 + $0x48] sm:$0xff]   ;;  %v2519_v18 = vld [vmem:[%s3138_s1 + $0x40] sm:$0xff]   ;;  %v2528_v22 = vld [vmem:[%s2780_s5 + $0x114] ss:$8 sps:$4 sm:$0xff]  }
  0x17   : > { %690 = vmatprep.subr.bf16.mxu0 %v2704_v1  ;;  %2385 = vmatprep.subr.bf16.mxu1 %v2704_v1  ;;  %v2523_v20 = vld [vmem:[%s2780_s5 + $0x100] ss:$8 sps:$4 sm:$0xff]   ;;  %v2530_v23 = vld [vmem:[%s2780_s5 + $0x10] ss:$8 sps:$4 sm:$0xff]   ;;  %v2532_v25 = vld [vmem:[%s2780_s5 + $0x24] ss:$8 sps:$4 sm:$0xff]  }
  0x18   : > { %846 = vmatprep.mubr.bf16.mxu1 %v2525_v8  ;;  %v2531_v24 = vld [vmem:[%s2780_s5 + $0x110] ss:$8 sps:$4 sm:$0xff]   ;;  %v2534_v26 = vld [vmem:[%s2780_s5 + $0x124] ss:$8 sps:$4 sm:$0xff]   ;;  %v2536_v27 = vld [vmem:[%s2780_s5 + $0x20] ss:$8 sps:$4 sm:$0xff]  }
  0x19   : > { %v2537_v28 = vld [vmem:[%s2780_s5 + $0x120] ss:$8 sps:$4 sm:$0xff]   ;;  %v2538_v29 = vld [vmem:[%s2780_s5 + $0x34] ss:$8 sps:$4 sm:$0xff]   ;;  %v2542_v31 = vld [vmem:[%s2780_s5 + $0x30] ss:$8 sps:$4 sm:$0xff]  }
  0x1a   : > { %691 = vmatpush1.bf16.msra.mxu0 %v2506_v3  ;;  %2401 = vmatpush1.bf16.msra.mxu1 %v2506_v3  ;;  %v2540_v30 = vld [vmem:[%s2780_s5 + $0x134] ss:$8 sps:$4 sm:$0xff]   ;;  %v2543_v32 = vld [vmem:[%s2780_s5 + $0x130] ss:$8 sps:$4 sm:$0xff]   ;;  %v2544_v33 = vld [vmem:[%s2780_s5 + $0x44] ss:$8 sps:$4 sm:$0xff]  }
  0x1b   : > { %692 = vmatprep.subr.bf16.mxu0 %v2704_v1  ;;  %2386 = vmatprep.subr.bf16.mxu1 %v2704_v1  ;;  %v2546_v34 = vld [vmem:[%s2780_s5 + $0x144] ss:$8 sps:$4 sm:$0xff]   ;;  %v2548_v35 = vld [vmem:[%s2780_s5 + $0x40] ss:$8 sps:$4 sm:$0xff]   ;;  %v2550_v37 = vld [vmem:[%s2780_s5 + $0x54] ss:$8 sps:$4 sm:$0xff]  }
  0x1c   : > { %v2549_v36 = vld [vmem:[%s2780_s5 + $0x140] ss:$8 sps:$4 sm:$0xff]   ;;  %v2552_v38 = vld [vmem:[%s2780_s5 + $0x154] ss:$8 sps:$4 sm:$0xff]   ;;  %v2554_v39 = vld [vmem:[%s2780_s5 + $0x50] ss:$8 sps:$4 sm:$0xff]  }
  0x1d   : > { %v2555_v40 = vld [vmem:[%s2780_s5 + $0x150] ss:$8 sps:$4 sm:$0xff]   ;;  %v2556_v41 = vld [vmem:[%s2780_s5 + $0x64] ss:$8 sps:$4 sm:$0xff]   ;;  %v2560_v43 = vld [vmem:[%s2780_s5 + $0x60] ss:$8 sps:$4 sm:$0xff]  }
  0x1e   : > { %693 = vmatpush1.bf16.msra.mxu0 %v2507_v4  ;;  %2402 = vmatpush1.bf16.msra.mxu1 %v2507_v4  ;;  %v2558_v42 = vld [vmem:[%s2780_s5 + $0x164] ss:$8 sps:$4 sm:$0xff]   ;;  %v2561_v44 = vld [vmem:[%s2780_s5 + $0x160] ss:$8 sps:$4 sm:$0xff]   ;;  %v2562_v45 = vld [vmem:[%s2780_s5 + $0x74] ss:$8 sps:$4 sm:$0xff]  }
  0x1f   : > { %694 = vmatprep.subr.bf16.mxu0 %v2704_v1  ;;  %2387 = vmatprep.subr.bf16.mxu1 %v2704_v1  ;;  %v2564_v46 = vld [vmem:[%s2780_s5 + $0x174] ss:$8 sps:$4 sm:$0xff]   ;;  %v2566_v47 = vld [vmem:[%s2780_s5 + $0x70] ss:$8 sps:$4 sm:$0xff]   ;;  %v2568_v49 = vld [vmem:[%s2780_s5 + $0x84] ss:$8 sps:$4 sm:$0xff]  }
  0x20   : > { %v2567_v48 = vld [vmem:[%s2780_s5 + $0x170] ss:$8 sps:$4 sm:$0xff]   ;;  %v2570_v50 = vld [vmem:[%s2780_s5 + $0x184] ss:$8 sps:$4 sm:$0xff]   ;;  %v2572_v51 = vld [vmem:[%s2780_s5 + $0x80] ss:$8 sps:$4 sm:$0xff]  }
  0x21   : > { %v2573_v52 = vld [vmem:[%s2780_s5 + $0x180] ss:$8 sps:$4 sm:$0xff]   ;;  %v2574_v53 = vld [vmem:[%s2780_s5 + $0x94] ss:$8 sps:$4 sm:$0xff]   ;;  %v2578_v55 = vld [vmem:[%s2780_s5 + $0x90] ss:$8 sps:$4 sm:$0xff]  }
  0x22   : > { %695 = vmatpush1.bf16.msra.mxu0 %v2508_v5  ;;  %2403 = vmatpush1.bf16.msra.mxu1 %v2508_v5  ;;  %v2576_v54 = vld [vmem:[%s2780_s5 + $0x194] ss:$8 sps:$4 sm:$0xff]   ;;  %v2579_v56 = vld [vmem:[%s2780_s5 + $0x190] ss:$8 sps:$4 sm:$0xff]   ;;  %v2580_v57 = vld [vmem:[%s2780_s5 + $0xa4] ss:$8 sps:$4 sm:$0xff]  }
  0x23   : > { %696 = vmatprep.subr.bf16.mxu0 %v2704_v1  ;;  %2388 = vmatprep.subr.bf16.mxu1 %v2704_v1  ;;  %v2582_v58 = vld [vmem:[%s2780_s5 + $0x1a4] ss:$8 sps:$4 sm:$0xff]   ;;  %v2584_v59 = vld [vmem:[%s2780_s5 + $0xa0] ss:$8 sps:$4 sm:$0xff]   ;;  %v2586_v61 = vld [vmem:[%s2780_s5 + $0xb4] ss:$8 sps:$4 sm:$0xff]  }
  0x24   : > { %v2585_v60 = vld [vmem:[%s2780_s5 + $0x1a0] ss:$8 sps:$4 sm:$0xff]   ;;  %v2588_v62 = vld [vmem:[%s2780_s5 + $0x1b4] ss:$8 sps:$4 sm:$0xff]   ;;  %v2590_v63 = vld [vmem:[%s2780_s5 + $0xb0] ss:$8 sps:$4 sm:$0xff]  }
  0x25   : > { %v2591_v0 = vld [vmem:[%s2780_s5 + $0x1b0] ss:$8 sps:$4 sm:$0xff]   ;;  %v2594_v2 = vld [vmem:[%s2780_s5 + $0x1c4] ss:$8 sps:$4 sm:$0xff]   ;;  %v2596_v3 = vld [vmem:[%s2780_s5 + $0xc0] ss:$8 sps:$4 sm:$0xff]  }
  0x26   : > { %697 = vmatpush1.bf16.msra.mxu0 %v2509_v7  ;;  %2404 = vmatpush1.bf16.msra.mxu1 %v2509_v7  ;;  %v2597_v4 = vld [vmem:[%s2780_s5 + $0x1c0] ss:$8 sps:$4 sm:$0xff]   ;;  %v2598_v5 = vld [vmem:[%s2780_s5 + $0xd4] ss:$8 sps:$4 sm:$0xff]   ;;  %v2602_v7 = vld [vmem:[%s2780_s5 + $0xd0] ss:$8 sps:$4 sm:$0xff]  }
  0x27   : > { %698 = vmatprep.subr.bf16.mxu0 %v2704_v1  ;;  %2389 = vmatprep.subr.bf16.mxu1 %v2704_v1  ;;  %v2600_v6 = vld [vmem:[%s2780_s5 + $0x1d4] ss:$8 sps:$4 sm:$0xff]   ;;  %v2603_v8 = vld [vmem:[%s2780_s5 + $0x1d0] ss:$8 sps:$4 sm:$0xff]  }
  0x2a   : > { %699 = vmatpush1.bf16.msra.mxu0 %v2510_v9  ;;  %2405 = vmatpush1.bf16.msra.mxu1 %v2510_v9  ;;  %v2604_v9 = vld [vmem:[%s2780_s5 + $0xe4] ss:$8 sps:$4 sm:$0xff]  }
  0x2b   : > { %700 = vmatprep.subr.bf16.mxu0 %v2704_v1  ;;  %2390 = vmatprep.subr.bf16.mxu1 %v2704_v1 }
  0x2e   : > { %701 = vmatpush1.bf16.msra.mxu0 %v2511_v10  ;;  %2406 = vmatpush1.bf16.msra.mxu1 %v2511_v10  ;;  %v2606_v10 = vld [vmem:[%s2780_s5 + $0x1e4] ss:$8 sps:$4 sm:$0xff]  }
  0x2f   : > { %702 = vmatprep.subr.bf16.mxu0 %v2704_v1  ;;  %2391 = vmatprep.subr.bf16.mxu1 %v2704_v1 }
  0x32   : > { %703 = vmatpush2.bf16.msra.mxu0 %v2512_v11  ;;  %2407 = vmatpush2.bf16.msra.mxu1 %v2512_v11  ;;  %v2608_v11 = vld [vmem:[%s2780_s5 + $0xe0] ss:$8 sps:$4 sm:$0xff]  }
  0x33   : > { %704 = vmatprep.subr.bf16.mxu0 %v2704_v1  ;;  %2392 = vmatprep.subr.bf16.mxu1 %v2704_v1 }
  0x36   : > { %705 = vmatpush2.bf16.msra.mxu0 %v2513_v12  ;;  %2408 = vmatpush2.bf16.msra.mxu1 %v2513_v12  ;;  %v2609_v12 = vld [vmem:[%s2780_s5 + $0x1e0] ss:$8 sps:$4 sm:$0xff]  }
  0x37   : > { %706 = vmatprep.subr.bf16.mxu0 %v2704_v1  ;;  %2393 = vmatprep.subr.bf16.mxu1 %v2704_v1 }
  0x3a   : > { %707 = vmatpush2.bf16.msra.mxu0 %v2514_v13  ;;  %2409 = vmatpush2.bf16.msra.mxu1 %v2514_v13  ;;  %v2610_v13 = vld [vmem:[%s2780_s5 + $0xf4] ss:$8 sps:$4 sm:$0xff]  }
  0x3b   : > { %708 = vmatprep.subr.bf16.mxu0 %v2704_v1  ;;  %2394 = vmatprep.subr.bf16.mxu1 %v2704_v1 }
  0x3e   : > { %709 = vmatpush2.bf16.msra.mxu0 %v2515_v14  ;;  %2410 = vmatpush2.bf16.msra.mxu1 %v2515_v14  ;;  %v2612_v14 = vld [vmem:[%s2780_s5 + $0x1f4] ss:$8 sps:$4 sm:$0xff]  }
  0x3f   : > { %710 = vmatprep.subr.bf16.mxu0 %v2704_v1  ;;  %2395 = vmatprep.subr.bf16.mxu1 %v2704_v1 }
  0x42   : > { %711 = vmatpush2.bf16.msra.mxu0 %v2516_v15  ;;  %2411 = vmatpush2.bf16.msra.mxu1 %v2516_v15  ;;  %v2614_v15 = vld [vmem:[%s2780_s5 + $0xf0] ss:$8 sps:$4 sm:$0xff]  }
  0x43   : > { %712 = vmatprep.subr.bf16.mxu0 %v2704_v1  ;;  %2396 = vmatprep.subr.bf16.mxu1 %v2704_v1 }
  0x46   : > { %713 = vmatpush2.bf16.msra.mxu0 %v2517_v16  ;;  %2412 = vmatpush2.bf16.msra.mxu1 %v2517_v16  ;;  %v2615_v16 = vld [vmem:[%s2780_s5 + $0x1f0] ss:$8 sps:$4 sm:$0xff]  }
  0x47   : > { %714 = vmatprep.subr.bf16.mxu0 %v2704_v1  ;;  %2397 = vmatprep.subr.bf16.mxu1 %v2704_v1 }
  0x4a   : > { %715 = vmatpush2.bf16.msra.mxu0 %v2518_v17  ;;  %2413 = vmatpush2.bf16.msra.mxu1 %v2518_v17 }
  0x4b   : > { %716 = vmatprep.subr.bf16.mxu0 %v2704_v1  ;;  %2398 = vmatprep.subr.bf16.mxu1 %v2704_v1  ;;  %v2592_v1 = vld [vmem:[%s2780_s5 + $0xc4] ss:$8 sps:$4 sm:$0xff]   ;;  %s1495_s5 = ssub.s32 (%p2745_p4), 208, %s2755_s20 }
  0x4c   : > { %p1496_p8 = scmp.lt.s32.totalorder (%p2745_p4), %s1495_s5, 64 }
  0x4e   : > { %717 = vmatpush2.bf16.msra.mxu0 %v2519_v18  ;;  %2414 = vmatpush2.bf16.msra.mxu1 %v2519_v18 }
  0x51   : > { %719 = vmatmul.mubr.bf16.vlgmr.msra.gmra.mxu0 %v2520_v19  ;;  %847 = vmatmul.mubr.bf16.vlgmr.msra.gmra.mxu1 %v2523_v20 }
  0x52   : > { %726 = vmatprep.mubr.bf16.mxu0 %v2526_v21  ;;  %854 = vmatprep.mubr.bf16.mxu1 %v2528_v22 }
  0x59   : > { %727 = vmatmul.mubr.bf16.gmra.mxu0 %v2530_v23  ;;  %855 = vmatmul.mubr.bf16.gmra.mxu1 %v2531_v24 }
  0x5a   : > { %734 = vmatprep.mubr.bf16.mxu0 %v2532_v25  ;;  %862 = vmatprep.mubr.bf16.mxu1 %v2534_v26 }
  0x61   : > { %735 = vmatmul.mubr.bf16.gmra.mxu0 %v2536_v27  ;;  %863 = vmatmul.mubr.bf16.gmra.mxu1 %v2537_v28 }
  0x62   : > { %742 = vmatprep.mubr.bf16.mxu0 %v2538_v29  ;;  %870 = vmatprep.mubr.bf16.mxu1 %v2540_v30 }
  0x69   : > { %743 = vmatmul.mubr.bf16.gmra.mxu0 %v2542_v31  ;;  %871 = vmatmul.mubr.bf16.gmra.mxu1 %v2543_v32 }
  0x6a   : > { %750 = vmatprep.mubr.bf16.mxu0 %v2544_v33  ;;  %878 = vmatprep.mubr.bf16.mxu1 %v2546_v34 }
  0x71   : > { %751 = vmatmul.mubr.bf16.gmra.mxu0 %v2548_v35  ;;  %879 = vmatmul.mubr.bf16.gmra.mxu1 %v2549_v36 }
  0x72   : > { %758 = vmatprep.mubr.bf16.mxu0 %v2550_v37  ;;  %886 = vmatprep.mubr.bf16.mxu1 %v2552_v38 }
  0x79   : > { %759 = vmatmul.mubr.bf16.gmra.mxu0 %v2554_v39  ;;  %887 = vmatmul.mubr.bf16.gmra.mxu1 %v2555_v40 }
  0x7a   : > { %766 = vmatprep.mubr.bf16.mxu0 %v2556_v41  ;;  %894 = vmatprep.mubr.bf16.mxu1 %v2558_v42 }
  0x81   : > { %767 = vmatmul.mubr.bf16.gmra.mxu0 %v2560_v43  ;;  %895 = vmatmul.mubr.bf16.gmra.mxu1 %v2561_v44 }
  0x82   : > { %774 = vmatprep.mubr.bf16.mxu0 %v2562_v45  ;;  %902 = vmatprep.mubr.bf16.mxu1 %v2564_v46 }
  0x89   : > { %775 = vmatmul.mubr.bf16.gmra.mxu0 %v2566_v47  ;;  %903 = vmatmul.mubr.bf16.gmra.mxu1 %v2567_v48 }
  0x8a   : > { %782 = vmatprep.mubr.bf16.mxu0 %v2568_v49  ;;  %910 = vmatprep.mubr.bf16.mxu1 %v2570_v50 }
  0x91   : > { %783 = vmatmul.mubr.bf16.gmra.mxu0 %v2572_v51  ;;  %911 = vmatmul.mubr.bf16.gmra.mxu1 %v2573_v52 }
  0x92   : > { %790 = vmatprep.mubr.bf16.mxu0 %v2574_v53  ;;  %918 = vmatprep.mubr.bf16.mxu1 %v2576_v54 }
  0x99   : > { %791 = vmatmul.mubr.bf16.gmra.mxu0 %v2578_v55  ;;  %919 = vmatmul.mubr.bf16.gmra.mxu1 %v2579_v56 }
  0x9a   : > { %798 = vmatprep.mubr.bf16.mxu0 %v2580_v57  ;;  %926 = vmatprep.mubr.bf16.mxu1 %v2582_v58 }
  0xa1   : > { %799 = vmatmul.mubr.bf16.gmra.mxu0 %v2584_v59  ;;  %927 = vmatmul.mubr.bf16.gmra.mxu1 %v2585_v60 }
  0xa2   : > { %806 = vmatprep.mubr.bf16.mxu0 %v2586_v61  ;;  %934 = vmatprep.mubr.bf16.mxu1 %v2588_v62 }
  0xa9   : > { %807 = vmatmul.mubr.bf16.gmra.mxu0 %v2590_v63  ;;  %935 = vmatmul.mubr.bf16.gmra.mxu1 %v2591_v0 }
  0xaa   : > { %814 = vmatprep.mubr.bf16.mxu0 %v2592_v1  ;;  %942 = vmatprep.mubr.bf16.mxu1 %v2594_v2 }
  0xb1   : > { %815 = vmatmul.mubr.bf16.gmra.mxu0 %v2596_v3  ;;  %943 = vmatmul.mubr.bf16.gmra.mxu1 %v2597_v4 }
  0xb2   : > { %822 = vmatprep.mubr.bf16.mxu0 %v2598_v5  ;;  %950 = vmatprep.mubr.bf16.mxu1 %v2600_v6 }
  0xb9   : > { %823 = vmatmul.mubr.bf16.gmra.mxu0 %v2602_v7  ;;  %951 = vmatmul.mubr.bf16.gmra.mxu1 %v2603_v8 }
  0xba   : > { %830 = vmatprep.mubr.bf16.mxu0 %v2604_v9  ;;  %958 = vmatprep.mubr.bf16.mxu1 %v2606_v10 }
  0xc1   : > { %831 = vmatmul.mubr.bf16.gmra.mxu0 %v2608_v11  ;;  %959 = vmatmul.mubr.bf16.gmra.mxu1 %v2609_v12 }
  0xc2   : > { %838 = vmatprep.mubr.bf16.mxu0 %v2610_v13  ;;  %966 = vmatprep.mubr.bf16.mxu1 %v2612_v14 }
  0xc9   : > { %839 = vmatmul.mubr.bf16.gmra.mxu0 %v2614_v15  ;;  %967 = vmatmul.mubr.bf16.gmra.mxu1 %v2615_v16 }
 0x111   : > { %v720_v17 = vpop.f32.mrf.mxu0  ;;  %v848_v18 = vpop.f32.mrf.mxu1 }
 0x112   : > { %v1039_v21 = vmul.f32 0.2, %v720_v17  ;;  %v1071_v22 = vmul.f32 0.2, %v848_v18  ;;  %vm975_vm0 = vcmp.ge.f32.partialorder %v720_v17, 0.0  ;;  %vm1007_vm1 = vcmp.ge.f32.partialorder %v848_v18, 0.0 }
 0x113   : > { %v722_v19 = vpop.f32.mrf.mxu0  ;;  %v850_v20 = vpop.f32.mrf.mxu1 }
 0x114   : > { %v1103_v29 = vsel %vm975_vm0, %v720_v17, %v1039_v21  ;;  %v1135_v30 = vsel %vm1007_vm1, %v848_v18, %v1071_v22 }
 0x115   : > { %v723_v23 = vpop.f32.mrf.mxu0  ;;  %v851_v24 = vpop.f32.mrf.mxu1 }
 0x116   : > { %vm976_vm2 = vcmp.ge.f32.partialorder %v723_v23, 0.0  ;;  %v1040_v25 = vmul.f32 0.2, %v723_v23  ;;  %vm1008_vm3 = vcmp.ge.f32.partialorder %v851_v24, 0.0  ;;  %v1072_v26 = vmul.f32 0.2, %v851_v24 }
 0x117   : > { %v725_v27 = vpop.f32.mrf.mxu0  ;;  %v853_v28 = vpop.f32.mrf.mxu1 }
 0x118   : > { %v1104_v31 = vsel %vm976_vm2, %v723_v23, %v1040_v25  ;;  %v1136_v32 = vsel %vm1008_vm3, %v851_v24, %v1072_v26 }
 0x119   : > { %v2195_v33 = vpack.c.bf16 %v1104_v31, %v1103_v29  ;;  %v2275_v34 = vpack.c.bf16 %v1136_v32, %v1135_v30  ;;  %v728_v35 = vpop.f32.mrf.mxu0  ;;  %v856_v36 = vpop.f32.mrf.mxu1 }
 0x11a   : > { %v1041_v39 = vmul.f32 0.2, %v728_v35  ;;  %v1073_v40 = vmul.f32 0.2, %v856_v36  ;;  %vm977_vm4 = vcmp.ge.f32.partialorder %v728_v35, 0.0  ;;  %vm1009_vm5 = vcmp.ge.f32.partialorder %v856_v36, 0.0 }
 0x11b   : > { %2196 = vst [vmem:[%s2904_s9] sm:$0xff] %v2195_v33   ;;  %2367 = vst [vmem:[%s2904_s9 + $0x80] sm:$0xff] %v2275_v34   ;;  %v730_v37 = vpop.f32.mrf.mxu0  ;;  %v858_v38 = vpop.f32.mrf.mxu1 }
 0x11c   : > { %v1105_v47 = vsel %vm977_vm4, %v728_v35, %v1041_v39  ;;  %v1137_v48 = vsel %vm1009_vm5, %v856_v36, %v1073_v40 }
 0x11d   : > { %v731_v41 = vpop.f32.mrf.mxu0  ;;  %v859_v42 = vpop.f32.mrf.mxu1 }
 0x11e   : > { %vm978_vm6 = vcmp.ge.f32.partialorder %v731_v41, 0.0  ;;  %v1042_v43 = vmul.f32 0.2, %v731_v41  ;;  %vm1010_vm7 = vcmp.ge.f32.partialorder %v859_v42, 0.0  ;;  %v1074_v44 = vmul.f32 0.2, %v859_v42 }
 0x11f   : > { %v733_v45 = vpop.f32.mrf.mxu0  ;;  %v861_v46 = vpop.f32.mrf.mxu1 }
 0x120   : > { %v1106_v49 = vsel %vm978_vm6, %v731_v41, %v1042_v43  ;;  %v1138_v50 = vsel %vm1010_vm7, %v859_v42, %v1074_v44 }
 0x121   : > { %v2200_v51 = vpack.c.bf16 %v1106_v49, %v1105_v47  ;;  %v2280_v52 = vpack.c.bf16 %v1138_v50, %v1137_v48  ;;  %v736_v53 = vpop.f32.mrf.mxu0  ;;  %v864_v54 = vpop.f32.mrf.mxu1 }
 0x122   : > { %v1043_v57 = vmul.f32 0.2, %v736_v53  ;;  %v1075_v58 = vmul.f32 0.2, %v864_v54  ;;  %vm979_vm8 = vcmp.ge.f32.partialorder %v736_v53, 0.0  ;;  %vm1011_vm9 = vcmp.ge.f32.partialorder %v864_v54, 0.0 }
 0x123   : > { %2352 = vst [vmem:[%s2904_s9 + $0x8] sm:$0xff] %v2200_v51   ;;  %2368 = vst [vmem:[%s2904_s9 + $0x88] sm:$0xff] %v2280_v52   ;;  %v738_v55 = vpop.f32.mrf.mxu0  ;;  %v866_v56 = vpop.f32.mrf.mxu1 }
 0x124   : > { %v1107_v1 = vsel %vm979_vm8, %v736_v53, %v1043_v57  ;;  %v1139_v2 = vsel %vm1011_vm9, %v864_v54, %v1075_v58 }
 0x125   : > { %v739_v59 = vpop.f32.mrf.mxu0  ;;  %v867_v60 = vpop.f32.mrf.mxu1 }
 0x126   : > { %vm980_vm10 = vcmp.ge.f32.partialorder %v739_v59, 0.0  ;;  %v1044_v61 = vmul.f32 0.2, %v739_v59  ;;  %vm1012_vm11 = vcmp.ge.f32.partialorder %v867_v60, 0.0  ;;  %v1076_v62 = vmul.f32 0.2, %v867_v60 }
 0x127   : > { %v741_v63 = vpop.f32.mrf.mxu0  ;;  %v869_v0 = vpop.f32.mrf.mxu1 }
 0x128   : > { %v1108_v3 = vsel %vm980_vm10, %v739_v59, %v1044_v61  ;;  %v1140_v4 = vsel %vm1012_vm11, %v867_v60, %v1076_v62 }
 0x129   : > { %v2205_v5 = vpack.c.bf16 %v1108_v3, %v1107_v1  ;;  %v2285_v6 = vpack.c.bf16 %v1140_v4, %v1139_v2  ;;  %v744_v7 = vpop.f32.mrf.mxu0  ;;  %v872_v8 = vpop.f32.mrf.mxu1 }
 0x12a   : > { %v1045_v11 = vmul.f32 0.2, %v744_v7  ;;  %v1077_v12 = vmul.f32 0.2, %v872_v8  ;;  %vm981_vm12 = vcmp.ge.f32.partialorder %v744_v7, 0.0  ;;  %vm1013_vm13 = vcmp.ge.f32.partialorder %v872_v8, 0.0 }
 0x12b   : > { %2353 = vst [vmem:[%s2904_s9 + $0x10] sm:$0xff] %v2205_v5   ;;  %2369 = vst [vmem:[%s2904_s9 + $0x90] sm:$0xff] %v2285_v6   ;;  %v746_v9 = vpop.f32.mrf.mxu0  ;;  %v874_v10 = vpop.f32.mrf.mxu1 }
 0x12c   : > { %v1109_v19 = vsel %vm981_vm12, %v744_v7, %v1045_v11  ;;  %v1141_v20 = vsel %vm1013_vm13, %v872_v8, %v1077_v12 }
 0x12d   : > { %v747_v13 = vpop.f32.mrf.mxu0  ;;  %v875_v14 = vpop.f32.mrf.mxu1 }
 0x12e   : > { %vm982_vm14 = vcmp.ge.f32.partialorder %v747_v13, 0.0  ;;  %v1046_v15 = vmul.f32 0.2, %v747_v13  ;;  %vm1014_vm15 = vcmp.ge.f32.partialorder %v875_v14, 0.0  ;;  %v1078_v16 = vmul.f32 0.2, %v875_v14 }
 0x12f   : > { %v749_v17 = vpop.f32.mrf.mxu0  ;;  %v877_v18 = vpop.f32.mrf.mxu1 }
 0x130   : > { %v1110_v21 = vsel %vm982_vm14, %v747_v13, %v1046_v15  ;;  %v1142_v22 = vsel %vm1014_vm15, %v875_v14, %v1078_v16 }
 0x131   : > { %v2210_v23 = vpack.c.bf16 %v1110_v21, %v1109_v19  ;;  %v2290_v24 = vpack.c.bf16 %v1142_v22, %v1141_v20  ;;  %v752_v25 = vpop.f32.mrf.mxu0  ;;  %v880_v26 = vpop.f32.mrf.mxu1 }
 0x132   : > { %v1047_v29 = vmul.f32 0.2, %v752_v25  ;;  %v1079_v30 = vmul.f32 0.2, %v880_v26  ;;  %vm983_vm0 = vcmp.ge.f32.partialorder %v752_v25, 0.0  ;;  %vm1015_vm1 = vcmp.ge.f32.partialorder %v880_v26, 0.0 }
 0x133   : > { %2354 = vst [vmem:[%s2904_s9 + $0x18] sm:$0xff] %v2210_v23   ;;  %2370 = vst [vmem:[%s2904_s9 + $0x98] sm:$0xff] %v2290_v24   ;;  %v754_v27 = vpop.f32.mrf.mxu0  ;;  %v882_v28 = vpop.f32.mrf.mxu1 }
 0x134   : > { %v1111_v37 = vsel %vm983_vm0, %v752_v25, %v1047_v29  ;;  %v1143_v38 = vsel %vm1015_vm1, %v880_v26, %v1079_v30 }
 0x135   : > { %v755_v31 = vpop.f32.mrf.mxu0  ;;  %v883_v32 = vpop.f32.mrf.mxu1 }
 0x136   : > { %vm984_vm2 = vcmp.ge.f32.partialorder %v755_v31, 0.0  ;;  %v1048_v33 = vmul.f32 0.2, %v755_v31  ;;  %vm1016_vm3 = vcmp.ge.f32.partialorder %v883_v32, 0.0  ;;  %v1080_v34 = vmul.f32 0.2, %v883_v32 }
 0x137   : > { %v757_v35 = vpop.f32.mrf.mxu0  ;;  %v885_v36 = vpop.f32.mrf.mxu1 }
 0x138   : > { %v1112_v39 = vsel %vm984_vm2, %v755_v31, %v1048_v33  ;;  %v1144_v40 = vsel %vm1016_vm3, %v883_v32, %v1080_v34 }
 0x139   : > { %v2215_v41 = vpack.c.bf16 %v1112_v39, %v1111_v37  ;;  %v2295_v42 = vpack.c.bf16 %v1144_v40, %v1143_v38  ;;  %v760_v43 = vpop.f32.mrf.mxu0  ;;  %v888_v44 = vpop.f32.mrf.mxu1 }
 0x13a   : > { %v1049_v47 = vmul.f32 0.2, %v760_v43  ;;  %v1081_v48 = vmul.f32 0.2, %v888_v44  ;;  %vm985_vm4 = vcmp.ge.f32.partialorder %v760_v43, 0.0  ;;  %vm1017_vm5 = vcmp.ge.f32.partialorder %v888_v44, 0.0 }
 0x13b   : > { %2355 = vst [vmem:[%s2904_s9 + $0x20] sm:$0xff] %v2215_v41   ;;  %2371 = vst [vmem:[%s2904_s9 + $0xa0] sm:$0xff] %v2295_v42   ;;  %v762_v45 = vpop.f32.mrf.mxu0  ;;  %v890_v46 = vpop.f32.mrf.mxu1 }
 0x13c   : > { %v1113_v55 = vsel %vm985_vm4, %v760_v43, %v1049_v47  ;;  %v1145_v56 = vsel %vm1017_vm5, %v888_v44, %v1081_v48 }
 0x13d   : > { %v763_v49 = vpop.f32.mrf.mxu0  ;;  %v891_v50 = vpop.f32.mrf.mxu1 }
 0x13e   : > { %vm986_vm6 = vcmp.ge.f32.partialorder %v763_v49, 0.0  ;;  %v1050_v51 = vmul.f32 0.2, %v763_v49  ;;  %vm1018_vm7 = vcmp.ge.f32.partialorder %v891_v50, 0.0  ;;  %v1082_v52 = vmul.f32 0.2, %v891_v50 }
 0x13f   : > { %v765_v53 = vpop.f32.mrf.mxu0  ;;  %v893_v54 = vpop.f32.mrf.mxu1 }
 0x140   : > { %v1114_v57 = vsel %vm986_vm6, %v763_v49, %v1050_v51  ;;  %v1146_v58 = vsel %vm1018_vm7, %v891_v50, %v1082_v52 }
 0x141   : > { %v2220_v59 = vpack.c.bf16 %v1114_v57, %v1113_v55  ;;  %v2300_v60 = vpack.c.bf16 %v1146_v58, %v1145_v56  ;;  %v768_v61 = vpop.f32.mrf.mxu0  ;;  %v896_v62 = vpop.f32.mrf.mxu1 }
 0x142   : > { %v1051_v1 = vmul.f32 0.2, %v768_v61  ;;  %v1083_v2 = vmul.f32 0.2, %v896_v62  ;;  %vm987_vm8 = vcmp.ge.f32.partialorder %v768_v61, 0.0  ;;  %vm1019_vm9 = vcmp.ge.f32.partialorder %v896_v62, 0.0 }
 0x143   : > { %2356 = vst [vmem:[%s2904_s9 + $0x28] sm:$0xff] %v2220_v59   ;;  %2372 = vst [vmem:[%s2904_s9 + $0xa8] sm:$0xff] %v2300_v60   ;;  %v770_v63 = vpop.f32.mrf.mxu0  ;;  %v898_v0 = vpop.f32.mrf.mxu1 }
 0x144   : > { %v1115_v9 = vsel %vm987_vm8, %v768_v61, %v1051_v1  ;;  %v1147_v10 = vsel %vm1019_vm9, %v896_v62, %v1083_v2 }
 0x145   : > { %v771_v3 = vpop.f32.mrf.mxu0  ;;  %v899_v4 = vpop.f32.mrf.mxu1 }
 0x146   : > { %vm988_vm10 = vcmp.ge.f32.partialorder %v771_v3, 0.0  ;;  %v1052_v5 = vmul.f32 0.2, %v771_v3  ;;  %vm1020_vm11 = vcmp.ge.f32.partialorder %v899_v4, 0.0  ;;  %v1084_v6 = vmul.f32 0.2, %v899_v4 }
 0x147   : > { %v773_v7 = vpop.f32.mrf.mxu0  ;;  %v901_v8 = vpop.f32.mrf.mxu1 }
 0x148   : > { %v1116_v11 = vsel %vm988_vm10, %v771_v3, %v1052_v5  ;;  %v1148_v12 = vsel %vm1020_vm11, %v899_v4, %v1084_v6 }
 0x149   : > { %v2225_v13 = vpack.c.bf16 %v1116_v11, %v1115_v9  ;;  %v2305_v14 = vpack.c.bf16 %v1148_v12, %v1147_v10  ;;  %v776_v15 = vpop.f32.mrf.mxu0  ;;  %v904_v16 = vpop.f32.mrf.mxu1 }
 0x14a   : > { %v1053_v19 = vmul.f32 0.2, %v776_v15  ;;  %v1085_v20 = vmul.f32 0.2, %v904_v16  ;;  %vm989_vm12 = vcmp.ge.f32.partialorder %v776_v15, 0.0  ;;  %vm1021_vm13 = vcmp.ge.f32.partialorder %v904_v16, 0.0 }
 0x14b   : > { %2357 = vst [vmem:[%s2904_s9 + $0x30] sm:$0xff] %v2225_v13   ;;  %2373 = vst [vmem:[%s2904_s9 + $0xb0] sm:$0xff] %v2305_v14   ;;  %v778_v17 = vpop.f32.mrf.mxu0  ;;  %v906_v18 = vpop.f32.mrf.mxu1 }
 0x14c   : > { %v1117_v27 = vsel %vm989_vm12, %v776_v15, %v1053_v19  ;;  %v1149_v28 = vsel %vm1021_vm13, %v904_v16, %v1085_v20 }
 0x14d   : > { %v779_v21 = vpop.f32.mrf.mxu0  ;;  %v907_v22 = vpop.f32.mrf.mxu1 }
 0x14e   : > { %vm990_vm14 = vcmp.ge.f32.partialorder %v779_v21, 0.0  ;;  %v1054_v23 = vmul.f32 0.2, %v779_v21  ;;  %vm1022_vm15 = vcmp.ge.f32.partialorder %v907_v22, 0.0  ;;  %v1086_v24 = vmul.f32 0.2, %v907_v22 }
 0x14f   : > { %v781_v25 = vpop.f32.mrf.mxu0  ;;  %v909_v26 = vpop.f32.mrf.mxu1 }
 0x150   : > { %v1118_v29 = vsel %vm990_vm14, %v779_v21, %v1054_v23  ;;  %v1150_v30 = vsel %vm1022_vm15, %v907_v22, %v1086_v24 }
 0x151   : > { %v2230_v31 = vpack.c.bf16 %v1118_v29, %v1117_v27  ;;  %v2310_v32 = vpack.c.bf16 %v1150_v30, %v1149_v28  ;;  %v784_v33 = vpop.f32.mrf.mxu0  ;;  %v912_v34 = vpop.f32.mrf.mxu1 }
 0x152   : > { %v1055_v37 = vmul.f32 0.2, %v784_v33  ;;  %v1087_v38 = vmul.f32 0.2, %v912_v34  ;;  %vm991_vm0 = vcmp.ge.f32.partialorder %v784_v33, 0.0  ;;  %vm1023_vm1 = vcmp.ge.f32.partialorder %v912_v34, 0.0 }
 0x153   : > { %2358 = vst [vmem:[%s2904_s9 + $0x38] sm:$0xff] %v2230_v31   ;;  %2374 = vst [vmem:[%s2904_s9 + $0xb8] sm:$0xff] %v2310_v32   ;;  %v786_v35 = vpop.f32.mrf.mxu0  ;;  %v914_v36 = vpop.f32.mrf.mxu1 }
 0x154   : > { %v1119_v45 = vsel %vm991_vm0, %v784_v33, %v1055_v37  ;;  %v1151_v46 = vsel %vm1023_vm1, %v912_v34, %v1087_v38 }
 0x155   : > { %v787_v39 = vpop.f32.mrf.mxu0  ;;  %v915_v40 = vpop.f32.mrf.mxu1 }
 0x156   : > { %vm992_vm2 = vcmp.ge.f32.partialorder %v787_v39, 0.0  ;;  %v1056_v41 = vmul.f32 0.2, %v787_v39  ;;  %vm1024_vm3 = vcmp.ge.f32.partialorder %v915_v40, 0.0  ;;  %v1088_v42 = vmul.f32 0.2, %v915_v40 }
 0x157   : > { %v789_v43 = vpop.f32.mrf.mxu0  ;;  %v917_v44 = vpop.f32.mrf.mxu1 }
 0x158   : > { %v1120_v47 = vsel %vm992_vm2, %v787_v39, %v1056_v41  ;;  %v1152_v48 = vsel %vm1024_vm3, %v915_v40, %v1088_v42 }
 0x159   : > { %v2235_v49 = vpack.c.bf16 %v1120_v47, %v1119_v45  ;;  %v2315_v50 = vpack.c.bf16 %v1152_v48, %v1151_v46  ;;  %v792_v51 = vpop.f32.mrf.mxu0  ;;  %v920_v52 = vpop.f32.mrf.mxu1 }
 0x15a   : > { %v1057_v55 = vmul.f32 0.2, %v792_v51  ;;  %v1089_v56 = vmul.f32 0.2, %v920_v52  ;;  %vm993_vm4 = vcmp.ge.f32.partialorder %v792_v51, 0.0  ;;  %vm1025_vm5 = vcmp.ge.f32.partialorder %v920_v52, 0.0 }
 0x15b   : > { %2359 = vst [vmem:[%s2904_s9 + $0x40] sm:$0xff] %v2235_v49   ;;  %2375 = vst [vmem:[%s2904_s9 + $0xc0] sm:$0xff] %v2315_v50   ;;  %v794_v53 = vpop.f32.mrf.mxu0  ;;  %v922_v54 = vpop.f32.mrf.mxu1 }
 0x15c   : > { %v1121_v63 = vsel %vm993_vm4, %v792_v51, %v1057_v55  ;;  %v1153_v0 = vsel %vm1025_vm5, %v920_v52, %v1089_v56 }
 0x15d   : > { %v795_v57 = vpop.f32.mrf.mxu0  ;;  %v923_v58 = vpop.f32.mrf.mxu1 }
 0x15e   : > { %vm994_vm6 = vcmp.ge.f32.partialorder %v795_v57, 0.0  ;;  %v1058_v59 = vmul.f32 0.2, %v795_v57  ;;  %vm1026_vm7 = vcmp.ge.f32.partialorder %v923_v58, 0.0  ;;  %v1090_v60 = vmul.f32 0.2, %v923_v58 }
 0x15f   : > { %v797_v61 = vpop.f32.mrf.mxu0  ;;  %v925_v62 = vpop.f32.mrf.mxu1 }
 0x160   : > { %v1122_v1 = vsel %vm994_vm6, %v795_v57, %v1058_v59  ;;  %v1154_v2 = vsel %vm1026_vm7, %v923_v58, %v1090_v60 }
 0x161   : > { %v2240_v3 = vpack.c.bf16 %v1122_v1, %v1121_v63  ;;  %v2320_v4 = vpack.c.bf16 %v1154_v2, %v1153_v0  ;;  %v800_v5 = vpop.f32.mrf.mxu0  ;;  %v928_v6 = vpop.f32.mrf.mxu1 }
 0x162   : > { %v1059_v9 = vmul.f32 0.2, %v800_v5  ;;  %v1091_v10 = vmul.f32 0.2, %v928_v6  ;;  %vm995_vm8 = vcmp.ge.f32.partialorder %v800_v5, 0.0  ;;  %vm1027_vm9 = vcmp.ge.f32.partialorder %v928_v6, 0.0 }
 0x163   : > { %2360 = vst [vmem:[%s2904_s9 + $0x48] sm:$0xff] %v2240_v3   ;;  %2376 = vst [vmem:[%s2904_s9 + $0xc8] sm:$0xff] %v2320_v4   ;;  %v802_v7 = vpop.f32.mrf.mxu0  ;;  %v930_v8 = vpop.f32.mrf.mxu1 }
 0x164   : > { %v1123_v17 = vsel %vm995_vm8, %v800_v5, %v1059_v9  ;;  %v1155_v18 = vsel %vm1027_vm9, %v928_v6, %v1091_v10 }
 0x165   : > { %v803_v11 = vpop.f32.mrf.mxu0  ;;  %v931_v12 = vpop.f32.mrf.mxu1 }
 0x166   : > { %vm996_vm10 = vcmp.ge.f32.partialorder %v803_v11, 0.0  ;;  %v1060_v13 = vmul.f32 0.2, %v803_v11  ;;  %vm1028_vm11 = vcmp.ge.f32.partialorder %v931_v12, 0.0  ;;  %v1092_v14 = vmul.f32 0.2, %v931_v12 }
 0x167   : > { %v805_v15 = vpop.f32.mrf.mxu0  ;;  %v933_v16 = vpop.f32.mrf.mxu1 }
 0x168   : > { %v1124_v19 = vsel %vm996_vm10, %v803_v11, %v1060_v13  ;;  %v1156_v20 = vsel %vm1028_vm11, %v931_v12, %v1092_v14 }
 0x169   : > { %v2245_v21 = vpack.c.bf16 %v1124_v19, %v1123_v17  ;;  %v2325_v22 = vpack.c.bf16 %v1156_v20, %v1155_v18  ;;  %v808_v23 = vpop.f32.mrf.mxu0  ;;  %v936_v24 = vpop.f32.mrf.mxu1 }
 0x16a   : > { %v1061_v27 = vmul.f32 0.2, %v808_v23  ;;  %v1093_v28 = vmul.f32 0.2, %v936_v24  ;;  %vm997_vm12 = vcmp.ge.f32.partialorder %v808_v23, 0.0  ;;  %vm1029_vm13 = vcmp.ge.f32.partialorder %v936_v24, 0.0 }
 0x16b   : > { %2361 = vst [vmem:[%s2904_s9 + $0x50] sm:$0xff] %v2245_v21   ;;  %2377 = vst [vmem:[%s2904_s9 + $0xd0] sm:$0xff] %v2325_v22   ;;  %v810_v25 = vpop.f32.mrf.mxu0  ;;  %v938_v26 = vpop.f32.mrf.mxu1 }
 0x16c   : > { %v1125_v35 = vsel %vm997_vm12, %v808_v23, %v1061_v27  ;;  %v1157_v36 = vsel %vm1029_vm13, %v936_v24, %v1093_v28 }
 0x16d   : > { %v811_v29 = vpop.f32.mrf.mxu0  ;;  %v939_v30 = vpop.f32.mrf.mxu1 }
 0x16e   : > { %vm998_vm14 = vcmp.ge.f32.partialorder %v811_v29, 0.0  ;;  %v1062_v31 = vmul.f32 0.2, %v811_v29  ;;  %vm1030_vm15 = vcmp.ge.f32.partialorder %v939_v30, 0.0  ;;  %v1094_v32 = vmul.f32 0.2, %v939_v30 }
 0x16f   : > { %v813_v33 = vpop.f32.mrf.mxu0  ;;  %v941_v34 = vpop.f32.mrf.mxu1 }
 0x170   : > { %v1126_v37 = vsel %vm998_vm14, %v811_v29, %v1062_v31  ;;  %v1158_v38 = vsel %vm1030_vm15, %v939_v30, %v1094_v32 }
 0x171   : > { %v2250_v39 = vpack.c.bf16 %v1126_v37, %v1125_v35  ;;  %v2330_v40 = vpack.c.bf16 %v1158_v38, %v1157_v36  ;;  %v816_v41 = vpop.f32.mrf.mxu0  ;;  %v944_v42 = vpop.f32.mrf.mxu1 }
 0x172   : > { %v1063_v45 = vmul.f32 0.2, %v816_v41  ;;  %v1095_v46 = vmul.f32 0.2, %v944_v42  ;;  %vm999_vm0 = vcmp.ge.f32.partialorder %v816_v41, 0.0  ;;  %vm1031_vm1 = vcmp.ge.f32.partialorder %v944_v42, 0.0 }
 0x173   : > { %2362 = vst [vmem:[%s2904_s9 + $0x58] sm:$0xff] %v2250_v39   ;;  %2378 = vst [vmem:[%s2904_s9 + $0xd8] sm:$0xff] %v2330_v40   ;;  %v818_v43 = vpop.f32.mrf.mxu0  ;;  %v946_v44 = vpop.f32.mrf.mxu1 }
 0x174   : > { %v1127_v53 = vsel %vm999_vm0, %v816_v41, %v1063_v45  ;;  %v1159_v54 = vsel %vm1031_vm1, %v944_v42, %v1095_v46 }
 0x175   : > { %v819_v47 = vpop.f32.mrf.mxu0  ;;  %v947_v48 = vpop.f32.mrf.mxu1 }
 0x176   : > { %vm1000_vm2 = vcmp.ge.f32.partialorder %v819_v47, 0.0  ;;  %v1064_v49 = vmul.f32 0.2, %v819_v47  ;;  %vm1032_vm3 = vcmp.ge.f32.partialorder %v947_v48, 0.0  ;;  %v1096_v50 = vmul.f32 0.2, %v947_v48 }
 0x177   : > { %v821_v51 = vpop.f32.mrf.mxu0  ;;  %v949_v52 = vpop.f32.mrf.mxu1 }
 0x178   : > { %v1128_v55 = vsel %vm1000_vm2, %v819_v47, %v1064_v49  ;;  %v1160_v56 = vsel %vm1032_vm3, %v947_v48, %v1096_v50 }
 0x179   : > { %v2255_v57 = vpack.c.bf16 %v1128_v55, %v1127_v53  ;;  %v2335_v58 = vpack.c.bf16 %v1160_v56, %v1159_v54  ;;  %v824_v59 = vpop.f32.mrf.mxu0  ;;  %v952_v60 = vpop.f32.mrf.mxu1 }
 0x17a   : > { %v1065_v63 = vmul.f32 0.2, %v824_v59  ;;  %v1097_v0 = vmul.f32 0.2, %v952_v60  ;;  %vm1001_vm4 = vcmp.ge.f32.partialorder %v824_v59, 0.0  ;;  %vm1033_vm5 = vcmp.ge.f32.partialorder %v952_v60, 0.0 }
 0x17b   : > { %2363 = vst [vmem:[%s2904_s9 + $0x60] sm:$0xff] %v2255_v57   ;;  %2379 = vst [vmem:[%s2904_s9 + $0xe0] sm:$0xff] %v2335_v58   ;;  %v826_v61 = vpop.f32.mrf.mxu0  ;;  %v954_v62 = vpop.f32.mrf.mxu1 }
 0x17c   : > { %v1129_v7 = vsel %vm1001_vm4, %v824_v59, %v1065_v63  ;;  %v1161_v8 = vsel %vm1033_vm5, %v952_v60, %v1097_v0 }
 0x17d   : > { %v827_v1 = vpop.f32.mrf.mxu0  ;;  %v955_v2 = vpop.f32.mrf.mxu1 }
 0x17e   : > { %vm1002_vm6 = vcmp.ge.f32.partialorder %v827_v1, 0.0  ;;  %v1066_v3 = vmul.f32 0.2, %v827_v1  ;;  %vm1034_vm7 = vcmp.ge.f32.partialorder %v955_v2, 0.0  ;;  %v1098_v4 = vmul.f32 0.2, %v955_v2 }
 0x17f   : > { %v829_v5 = vpop.f32.mrf.mxu0  ;;  %v957_v6 = vpop.f32.mrf.mxu1 }
 0x180   : > { %v1130_v9 = vsel %vm1002_vm6, %v827_v1, %v1066_v3  ;;  %v1162_v10 = vsel %vm1034_vm7, %v955_v2, %v1098_v4 }
 0x181   : > { %v2260_v11 = vpack.c.bf16 %v1130_v9, %v1129_v7  ;;  %v2340_v12 = vpack.c.bf16 %v1162_v10, %v1161_v8  ;;  %v832_v13 = vpop.f32.mrf.mxu0  ;;  %v960_v14 = vpop.f32.mrf.mxu1 }
 0x182   : > { %v1067_v17 = vmul.f32 0.2, %v832_v13  ;;  %v1099_v18 = vmul.f32 0.2, %v960_v14  ;;  %vm1003_vm8 = vcmp.ge.f32.partialorder %v832_v13, 0.0  ;;  %vm1035_vm9 = vcmp.ge.f32.partialorder %v960_v14, 0.0 }
 0x183   : > { %2364 = vst [vmem:[%s2904_s9 + $0x68] sm:$0xff] %v2260_v11   ;;  %2380 = vst [vmem:[%s2904_s9 + $0xe8] sm:$0xff] %v2340_v12   ;;  %v834_v15 = vpop.f32.mrf.mxu0  ;;  %v962_v16 = vpop.f32.mrf.mxu1 }
 0x184   : > { %v1131_v25 = vsel %vm1003_vm8, %v832_v13, %v1067_v17  ;;  %v1163_v26 = vsel %vm1035_vm9, %v960_v14, %v1099_v18 }
 0x185   : > { %v835_v19 = vpop.f32.mrf.mxu0  ;;  %v963_v20 = vpop.f32.mrf.mxu1 }
 0x186   : > { %vm1004_vm10 = vcmp.ge.f32.partialorder %v835_v19, 0.0  ;;  %v1068_v21 = vmul.f32 0.2, %v835_v19  ;;  %vm1036_vm11 = vcmp.ge.f32.partialorder %v963_v20, 0.0  ;;  %v1100_v22 = vmul.f32 0.2, %v963_v20 }
 0x187   : > { %v837_v23 = vpop.f32.mrf.mxu0  ;;  %v965_v24 = vpop.f32.mrf.mxu1 }
 0x188   : > { %v1132_v27 = vsel %vm1004_vm10, %v835_v19, %v1068_v21  ;;  %v1164_v28 = vsel %vm1036_vm11, %v963_v20, %v1100_v22 }
 0x189   : > { %v2265_v29 = vpack.c.bf16 %v1132_v27, %v1131_v25  ;;  %v2345_v30 = vpack.c.bf16 %v1164_v28, %v1163_v26  ;;  %v840_v31 = vpop.f32.mrf.mxu0  ;;  %v968_v32 = vpop.f32.mrf.mxu1 }
 0x18a   : > { %v1069_v35 = vmul.f32 0.2, %v840_v31  ;;  %v1101_v36 = vmul.f32 0.2, %v968_v32  ;;  %vm1005_vm12 = vcmp.ge.f32.partialorder %v840_v31, 0.0  ;;  %vm1037_vm13 = vcmp.ge.f32.partialorder %v968_v32, 0.0 }
 0x18b   : > { %2365 = vst [vmem:[%s2904_s9 + $0x70] sm:$0xff] %v2265_v29   ;;  %2381 = vst [vmem:[%s2904_s9 + $0xf0] sm:$0xff] %v2345_v30   ;;  %v842_v33 = vpop.f32.mrf.mxu0  ;;  %v970_v34 = vpop.f32.mrf.mxu1 }
 0x18c   : > { %v1133_v43 = vsel %vm1005_vm12, %v840_v31, %v1069_v35  ;;  %v1165_v44 = vsel %vm1037_vm13, %v968_v32, %v1101_v36 }
 0x18d   : > { %v843_v37 = vpop.f32.mrf.mxu0  ;;  %v971_v38 = vpop.f32.mrf.mxu1 }
 0x18e   : > { %vm1006_vm14 = vcmp.ge.f32.partialorder %v843_v37, 0.0  ;;  %v1070_v39 = vmul.f32 0.2, %v843_v37  ;;  %vm1038_vm15 = vcmp.ge.f32.partialorder %v971_v38, 0.0  ;;  %v1102_v40 = vmul.f32 0.2, %v971_v38 }
 0x18f   : > { %v845_v41 = vpop.f32.mrf.mxu0  ;;  %v973_v42 = vpop.f32.mrf.mxu1  ;;  %1493 = sbr.rel (!%p2745_p4) target bundleno = 485 (0x1e5), region = 32 }
 0x190   : > { %v1134_v45 = vsel %vm1006_vm14, %v843_v37, %v1070_v39  ;;  %v1166_v46 = vsel %vm1038_vm15, %v971_v38, %v1102_v40 }
 0x191   : > { %v2270_v47 = vpack.c.bf16 %v1134_v45, %v1133_v43  ;;  %v2350_v48 = vpack.c.bf16 %v1166_v46, %v1165_v44 }
 0x193   : > { %2366 = vst [vmem:[%s2904_s9 + $0x78] sm:$0xff] %v2270_v47   ;;  %2382 = vst [vmem:[%s2904_s9 + $0xf8] sm:$0xff] %v2350_v48  }
 0x194   : > { %s3148_s5 = smov (!%p1496_p8, %s1495_s5), 64 }
 0x195   : > { %s2109_s21 = sshll.u32 %s3148_s5, 6 }
 0x196   : > { %p2112_p9 = scmp.eq.s32.totalorder %s2109_s21, 0 }
 0x197   : > { %s2951_s22 = sshrl.u32 (!%p2112_p9), %s3148_s5, 6 }
 0x198   : > { %1504 = sbr.rel (%p2112_p9) target bundleno = 485 (0x1e5), region = 36  ;;  %p2113_p10 = scmp.le.s32.totalorder (!%p2112_p9), %s2951_s22, 0 }
 0x19d   : > { %1911 = sbr.rel (%p2113_p10) target bundleno = 468 (0x1d4), region = 108  ;;  %s3141_s12 = smov (!%p2113_p10), %s2945_s19 }
 0x19e   : > { %s3142_s17 = smov (!%p2113_p10), %s2904_s9  ;;  %s2960_s20 = smov (!%p2113_p10), 0  }
 0x19f   : > { %s2962_s23 = smov (!%p2113_p10), 0  }
 0x1a2 LB: >> { %v1521_v49 = vld [vmem:[%s2678_s17] sm:$0xf]  ;;  %v1523_v50 = vld [vmem:[%s2678_s17 + $0x4] sm:$0xf]  ;;  %v1525_v51 = vld [vmem:[%s2678_s17 + $0x8] sm:$0xf]  ;;  %s2686_s23 = sphi %s2962_s23, %s1515_s23   ;;  %s2682_s20 = sphi %s2960_s20, %s3143_s20   ;;  %s2678_s17 = sphi %s3142_s17, %s1654_s17   ;;  %s2674_s12 = sphi %s3141_s12, %s1655_s12  }
 0x1a3   : >> { %1522 = vst [vmem:[%s2674_s12] sm:$0xf] %v1521_v49  ;;  %1524 = vst [vmem:[%s2674_s12 + $0x4] sm:$0xf] %v1523_v50  ;;  %v1527_v52 = vld [vmem:[%s2678_s17 + $0xc] sm:$0xf]  ;;  %s1649_s24 = sadd.s32 1, %s2682_s20 }
 0x1a4   : >> { %1526 = vst [vmem:[%s2674_s12 + $0x8] sm:$0xf] %v1525_v51  ;;  %v1529_v53 = vld [vmem:[%s2678_s17 + $0x10] sm:$0xf]  ;;  %v1531_v54 = vld [vmem:[%s2678_s17 + $0x14] sm:$0xf]  ;;  %p1650_p11 = scmp.ge.s32.totalorder %s1649_s24, %s2951_s22 }
 0x1a5   : >> { %1528 = vst [vmem:[%s2674_s12 + $0xc] sm:$0xf] %v1527_v52  ;;  %1530 = vst [vmem:[%s2674_s12 + $0x10] sm:$0xf] %v1529_v53  ;;  %v1533_v55 = vld [vmem:[%s2678_s17 + $0x18] sm:$0xf] }
 0x1a6   : >> { %1532 = vst [vmem:[%s2674_s12 + $0x14] sm:$0xf] %v1531_v54  ;;  %v1535_v56 = vld [vmem:[%s2678_s17 + $0x1c] sm:$0xf]  ;;  %v1537_v57 = vld [vmem:[%s2678_s17 + $0x20] sm:$0xf] }
 0x1a7   : >> { %1534 = vst [vmem:[%s2674_s12 + $0x18] sm:$0xf] %v1533_v55  ;;  %1536 = vst [vmem:[%s2674_s12 + $0x1c] sm:$0xf] %v1535_v56  ;;  %v1539_v58 = vld [vmem:[%s2678_s17 + $0x24] sm:$0xf] }
 0x1a8   : >> { %1538 = vst [vmem:[%s2674_s12 + $0x20] sm:$0xf] %v1537_v57  ;;  %v1541_v59 = vld [vmem:[%s2678_s17 + $0x28] sm:$0xf]  ;;  %v1543_v60 = vld [vmem:[%s2678_s17 + $0x2c] sm:$0xf] }
 0x1a9   : >> { %1540 = vst [vmem:[%s2674_s12 + $0x24] sm:$0xf] %v1539_v58  ;;  %1542 = vst [vmem:[%s2674_s12 + $0x28] sm:$0xf] %v1541_v59  ;;  %v1545_v61 = vld [vmem:[%s2678_s17 + $0x30] sm:$0xf] }
 0x1aa   : >> { %1544 = vst [vmem:[%s2674_s12 + $0x2c] sm:$0xf] %v1543_v60  ;;  %v1547_v62 = vld [vmem:[%s2678_s17 + $0x34] sm:$0xf]  ;;  %v1549_v63 = vld [vmem:[%s2678_s17 + $0x38] sm:$0xf] }
 0x1ab   : >> { %1546 = vst [vmem:[%s2674_s12 + $0x30] sm:$0xf] %v1545_v61  ;;  %1548 = vst [vmem:[%s2674_s12 + $0x34] sm:$0xf] %v1547_v62  ;;  %v1551_v0 = vld [vmem:[%s2678_s17 + $0x3c] sm:$0xf] }
 0x1ac   : >> { %1550 = vst [vmem:[%s2674_s12 + $0x38] sm:$0xf] %v1549_v63  ;;  %v1553_v1 = vld [vmem:[%s2678_s17 + $0x40] sm:$0xf]  ;;  %v1555_v2 = vld [vmem:[%s2678_s17 + $0x44] sm:$0xf] }
 0x1ad   : >> { %1552 = vst [vmem:[%s2674_s12 + $0x3c] sm:$0xf] %v1551_v0  ;;  %1554 = vst [vmem:[%s2674_s12 + $0x40] sm:$0xf] %v1553_v1  ;;  %v1557_v3 = vld [vmem:[%s2678_s17 + $0x48] sm:$0xf] }
 0x1ae   : >> { %1556 = vst [vmem:[%s2674_s12 + $0x44] sm:$0xf] %v1555_v2  ;;  %v1559_v4 = vld [vmem:[%s2678_s17 + $0x4c] sm:$0xf]  ;;  %v1561_v5 = vld [vmem:[%s2678_s17 + $0x50] sm:$0xf] }
 0x1af   : >> { %1558 = vst [vmem:[%s2674_s12 + $0x48] sm:$0xf] %v1557_v3  ;;  %1560 = vst [vmem:[%s2674_s12 + $0x4c] sm:$0xf] %v1559_v4  ;;  %v1563_v6 = vld [vmem:[%s2678_s17 + $0x54] sm:$0xf] }
 0x1b0   : >> { %1562 = vst [vmem:[%s2674_s12 + $0x50] sm:$0xf] %v1561_v5  ;;  %v1565_v7 = vld [vmem:[%s2678_s17 + $0x58] sm:$0xf]  ;;  %v1567_v8 = vld [vmem:[%s2678_s17 + $0x5c] sm:$0xf] }
 0x1b1   : >> { %1564 = vst [vmem:[%s2674_s12 + $0x54] sm:$0xf] %v1563_v6  ;;  %1566 = vst [vmem:[%s2674_s12 + $0x58] sm:$0xf] %v1565_v7  ;;  %v1569_v9 = vld [vmem:[%s2678_s17 + $0x60] sm:$0xf] }
 0x1b2   : >> { %1568 = vst [vmem:[%s2674_s12 + $0x5c] sm:$0xf] %v1567_v8  ;;  %v1571_v10 = vld [vmem:[%s2678_s17 + $0x64] sm:$0xf]  ;;  %v1573_v11 = vld [vmem:[%s2678_s17 + $0x68] sm:$0xf] }
 0x1b3   : >> { %1570 = vst [vmem:[%s2674_s12 + $0x60] sm:$0xf] %v1569_v9  ;;  %1572 = vst [vmem:[%s2674_s12 + $0x64] sm:$0xf] %v1571_v10  ;;  %v1575_v12 = vld [vmem:[%s2678_s17 + $0x6c] sm:$0xf] }
 0x1b4   : >> { %1574 = vst [vmem:[%s2674_s12 + $0x68] sm:$0xf] %v1573_v11  ;;  %v1577_v13 = vld [vmem:[%s2678_s17 + $0x70] sm:$0xf]  ;;  %v1579_v14 = vld [vmem:[%s2678_s17 + $0x74] sm:$0xf] }
 0x1b5   : >> { %1576 = vst [vmem:[%s2674_s12 + $0x6c] sm:$0xf] %v1575_v12  ;;  %1578 = vst [vmem:[%s2674_s12 + $0x70] sm:$0xf] %v1577_v13  ;;  %v1581_v15 = vld [vmem:[%s2678_s17 + $0x78] sm:$0xf] }
 0x1b6   : >> { %1580 = vst [vmem:[%s2674_s12 + $0x74] sm:$0xf] %v1579_v14  ;;  %v1583_v16 = vld [vmem:[%s2678_s17 + $0x7c] sm:$0xf]  ;;  %v1585_v17 = vld [vmem:[%s2678_s17 + $0x80] sm:$0xf] }
 0x1b7   : >> { %1582 = vst [vmem:[%s2674_s12 + $0x78] sm:$0xf] %v1581_v15  ;;  %1584 = vst [vmem:[%s2674_s12 + $0x7c] sm:$0xf] %v1583_v16  ;;  %v1587_v18 = vld [vmem:[%s2678_s17 + $0x84] sm:$0xf] }
 0x1b8   : >> { %1586 = vst [vmem:[%s2674_s12 + $0x80] sm:$0xf] %v1585_v17  ;;  %v1589_v19 = vld [vmem:[%s2678_s17 + $0x88] sm:$0xf]  ;;  %v1591_v20 = vld [vmem:[%s2678_s17 + $0x8c] sm:$0xf] }
 0x1b9   : >> { %1588 = vst [vmem:[%s2674_s12 + $0x84] sm:$0xf] %v1587_v18  ;;  %1590 = vst [vmem:[%s2674_s12 + $0x88] sm:$0xf] %v1589_v19  ;;  %v1593_v21 = vld [vmem:[%s2678_s17 + $0x90] sm:$0xf] }
 0x1ba   : >> { %1592 = vst [vmem:[%s2674_s12 + $0x8c] sm:$0xf] %v1591_v20  ;;  %v1595_v22 = vld [vmem:[%s2678_s17 + $0x94] sm:$0xf]  ;;  %v1597_v23 = vld [vmem:[%s2678_s17 + $0x98] sm:$0xf] }
 0x1bb   : >> { %1594 = vst [vmem:[%s2674_s12 + $0x90] sm:$0xf] %v1593_v21  ;;  %1596 = vst [vmem:[%s2674_s12 + $0x94] sm:$0xf] %v1595_v22  ;;  %v1599_v24 = vld [vmem:[%s2678_s17 + $0x9c] sm:$0xf] }
 0x1bc   : >> { %1598 = vst [vmem:[%s2674_s12 + $0x98] sm:$0xf] %v1597_v23  ;;  %v1601_v25 = vld [vmem:[%s2678_s17 + $0xa0] sm:$0xf]  ;;  %v1603_v26 = vld [vmem:[%s2678_s17 + $0xa4] sm:$0xf] }
 0x1bd   : >> { %1600 = vst [vmem:[%s2674_s12 + $0x9c] sm:$0xf] %v1599_v24  ;;  %1602 = vst [vmem:[%s2674_s12 + $0xa0] sm:$0xf] %v1601_v25  ;;  %v1605_v27 = vld [vmem:[%s2678_s17 + $0xa8] sm:$0xf] }
 0x1be   : >> { %1604 = vst [vmem:[%s2674_s12 + $0xa4] sm:$0xf] %v1603_v26  ;;  %v1607_v28 = vld [vmem:[%s2678_s17 + $0xac] sm:$0xf]  ;;  %v1609_v29 = vld [vmem:[%s2678_s17 + $0xb0] sm:$0xf] }
 0x1bf   : >> { %1606 = vst [vmem:[%s2674_s12 + $0xa8] sm:$0xf] %v1605_v27  ;;  %1608 = vst [vmem:[%s2674_s12 + $0xac] sm:$0xf] %v1607_v28  ;;  %v1611_v30 = vld [vmem:[%s2678_s17 + $0xb4] sm:$0xf] }
 0x1c0   : >> { %1610 = vst [vmem:[%s2674_s12 + $0xb0] sm:$0xf] %v1609_v29  ;;  %v1613_v31 = vld [vmem:[%s2678_s17 + $0xb8] sm:$0xf]  ;;  %v1615_v32 = vld [vmem:[%s2678_s17 + $0xbc] sm:$0xf] }
 0x1c1   : >> { %1612 = vst [vmem:[%s2674_s12 + $0xb4] sm:$0xf] %v1611_v30  ;;  %1614 = vst [vmem:[%s2674_s12 + $0xb8] sm:$0xf] %v1613_v31  ;;  %v1617_v33 = vld [vmem:[%s2678_s17 + $0xc0] sm:$0xf] }
 0x1c2   : >> { %1616 = vst [vmem:[%s2674_s12 + $0xbc] sm:$0xf] %v1615_v32  ;;  %v1619_v34 = vld [vmem:[%s2678_s17 + $0xc4] sm:$0xf]  ;;  %v1621_v35 = vld [vmem:[%s2678_s17 + $0xc8] sm:$0xf] }
 0x1c3   : >> { %1618 = vst [vmem:[%s2674_s12 + $0xc0] sm:$0xf] %v1617_v33  ;;  %1620 = vst [vmem:[%s2674_s12 + $0xc4] sm:$0xf] %v1619_v34  ;;  %v1623_v36 = vld [vmem:[%s2678_s17 + $0xcc] sm:$0xf] }
 0x1c4   : >> { %1622 = vst [vmem:[%s2674_s12 + $0xc8] sm:$0xf] %v1621_v35  ;;  %v1625_v37 = vld [vmem:[%s2678_s17 + $0xd0] sm:$0xf]  ;;  %v1627_v38 = vld [vmem:[%s2678_s17 + $0xd4] sm:$0xf] }
 0x1c5   : >> { %1624 = vst [vmem:[%s2674_s12 + $0xcc] sm:$0xf] %v1623_v36  ;;  %1626 = vst [vmem:[%s2674_s12 + $0xd0] sm:$0xf] %v1625_v37  ;;  %v1629_v39 = vld [vmem:[%s2678_s17 + $0xd8] sm:$0xf] }
 0x1c6   : >> { %1628 = vst [vmem:[%s2674_s12 + $0xd4] sm:$0xf] %v1627_v38  ;;  %v1631_v40 = vld [vmem:[%s2678_s17 + $0xdc] sm:$0xf]  ;;  %v1633_v41 = vld [vmem:[%s2678_s17 + $0xe0] sm:$0xf] }
 0x1c7   : >> { %1630 = vst [vmem:[%s2674_s12 + $0xd8] sm:$0xf] %v1629_v39  ;;  %1632 = vst [vmem:[%s2674_s12 + $0xdc] sm:$0xf] %v1631_v40  ;;  %v1635_v42 = vld [vmem:[%s2678_s17 + $0xe4] sm:$0xf] }
 0x1c8   : >> { %1634 = vst [vmem:[%s2674_s12 + $0xe0] sm:$0xf] %v1633_v41  ;;  %v1637_v43 = vld [vmem:[%s2678_s17 + $0xe8] sm:$0xf]  ;;  %v1639_v44 = vld [vmem:[%s2678_s17 + $0xec] sm:$0xf] }
 0x1c9   : >> { %1636 = vst [vmem:[%s2674_s12 + $0xe4] sm:$0xf] %v1635_v42  ;;  %1638 = vst [vmem:[%s2674_s12 + $0xe8] sm:$0xf] %v1637_v43  ;;  %v1641_v45 = vld [vmem:[%s2678_s17 + $0xf0] sm:$0xf] }
 0x1ca   : >> { %1640 = vst [vmem:[%s2674_s12 + $0xec] sm:$0xf] %v1639_v44  ;;  %v1643_v46 = vld [vmem:[%s2678_s17 + $0xf4] sm:$0xf]  ;;  %v1645_v47 = vld [vmem:[%s2678_s17 + $0xf8] sm:$0xf] }
 0x1cb   : >> { %1642 = vst [vmem:[%s2674_s12 + $0xf0] sm:$0xf] %v1641_v45  ;;  %1644 = vst [vmem:[%s2674_s12 + $0xf4] sm:$0xf] %v1643_v46  ;;  %v1647_v48 = vld [vmem:[%s2678_s17 + $0xfc] sm:$0xf] }
 0x1cc   : >> { %1646 = vst [vmem:[%s2674_s12 + $0xf8] sm:$0xf] %v1645_v47  ;;  %1648 = vst [vmem:[%s2674_s12 + $0xfc] sm:$0xf] %v1647_v48  ;;  %s3150_s24 = smov (%p1650_p11, %s1649_s24), 0  ;;  %s1515_s23 = sadd.s32 1, %s2686_s23  }
 0x1cd   : >> { %s2114_s25 = sshll.u32 %s3150_s24, 8  ;;  %p1514_p12 = scmp.ge.s32.totalorder %s1515_s23, %s2951_s22 }
 0x1ce   : >> { %s1654_s17 = scalar_lea.vmem %s2904_s9, %s2114_s25 [#allocation2]   ;;  %s1655_s12 = scalar_lea.vmem %s2945_s19, %s2114_s25  }
 0x1cf   : >> { %s3143_s20 = smov %s3150_s24  ;;  %1517 = sbr.rel (!%p1514_p12) target bundleno = 418 (0x1a2), region = 114 }
 0x1d4 PF: > { %s3119_s26 = sand.u32 63, %s3148_s5   ;;  %s2190_s27 = sshll.u32 %s2951_s22, 8 }
 0x1d5   : > { %s1660_s28 = scalar_lea.vmem %s2904_s9, %s2190_s27 [#allocation2]   ;;  %s1662_s29 = scalar_lea.vmem %s2945_s19, %s2190_s27  }
 0x1d6   : > { %p2119_p13 = scmp.le.s32.totalorder %s3119_s26, 0 }
 0x1d7   : > { %s2688_s30 = smov (!%p2119_p13), %s1662_s29   ;;  %s2692_s3 = smov (!%p2119_p13), %s1660_s28  }
 0x1d8   : > { %1925 = sbr.rel (%p2119_p13) target bundleno = 485 (0x1e5), region = 119  ;;  %s2696_s4 = smov (!%p2119_p13), 0  }
 0x1d9   : > { %s2700_s6 = smov (!%p2119_p13), 0  }
 0x1dd LB: >> { %v1672_v49 = vld [vmem:[%s2694_s3] sm:$0xf]  ;;  %s1674_s7 = sadd.s32 1, %s2698_s4  ;;  %s1666_s6 = sadd.s32 1, %s2702_s6   ;;  %s2702_s6 = sphi %s2700_s6, %s1666_s6   ;;  %s2698_s4 = sphi %s2696_s4, %s2697_s4   ;;  %s2694_s3 = sphi %s2692_s3, %s1679_s3   ;;  %s2690_s30 = sphi %s2688_s30, %s1680_s30  }
 0x1de   : >> { %1673 = vst [vmem:[%s2690_s30] sm:$0xf] %v1672_v49  ;;  %p1675_p0 = scmp.ge.s32.totalorder %s1674_s7, %s3119_s26  ;;  %p1665_p1 = scmp.ge.s32.totalorder %s1666_s6, %s3119_s26 }
 0x1e0   : >> { %s3152_s7 = smov (%p1675_p0, %s1674_s7), 0  ;;  %1668 = sbr.rel (!%p1665_p1) target bundleno = 477 (0x1dd), region = 125 }
 0x1e1   : >> { %s2120_s8 = sshll.u32 %s3152_s7, 2  ;;  %s2697_s4 = smov %s3152_s7  }
 0x1e2   : >> { %s1679_s3 = scalar_lea.vmem %s1660_s28, %s2120_s8 [#allocation2]   ;;  %s1680_s30 = scalar_lea.vmem %s1662_s29, %s2120_s8  }
 0x1e5 PF: > { %p9_p2 = scmp.ge.s32.totalorder %s2735_s13, 6   ;;  %s3144_s9 = smov %s2666_s10 }
 0x1e6   : > { %s3145_s10 = smov %s2743_s16  ;;  %s3146_s11 = smov %s2735_s13 }
 0x1e7   :  { %11 = sbr.rel (!%p9_p2) target bundleno = 2 (0x2), region = 136 }

// kernel: patch_video_discriminator_forward.5
= control target key start
LH: loop header
LB: loop body
LE: loop exit
PB: predicated region body
PF: predicated region fallthrough
CT: control target
= control target key end

     0   :  { %v2104_v0 = vmov 0   ;;  %vm1629_vm0 = vcmask 1040384   ;;  %s2688_s1 = inlined_call_operand.vmem [shape: bf16[512,128], index: 1, kind: input, shape index: {}]   ;;  %s2689_s0 = inlined_call_operand.vmem [shape: bf16[320,512], index: 0, kind: input, shape index: {}]   ;;  %s2690_s2 = inlined_call_operand.vmem [shape: bf16[320,128], index: 2, kind: output, shape index: {0}]   ;;  %s2691_s3 = inlined_call_operand.vmem [shape: f32[1,2,128], index: 3, kind: output, shape index: {1}]  }
   0x1   :  { %750 = vmatprep.subr.bf16.mxu0 %v2104_v0  ;;  %943 = vmatprep.subr.bf16.mxu1 %v2104_v0  ;;  %v1952_v1 = vld [vmem:[%s2688_s1 + $0x38] sm:$0xff]   ;;  %v1954_v3 = vld [vmem:[%s2688_s1 + $0x30] sm:$0xff]   ;;  %v1956_v5 = vld [vmem:[%s2688_s1 + $0x28] sm:$0xff]  }
   0x2   :  { %v1953_v2 = vld [vmem:[%s2688_s1 + $0xb8] sm:$0xff]   ;;  %751 = vmatpush1.bf16.msra.mxu0 %v1952_v1  ;;  %v1955_v4 = vld [vmem:[%s2688_s1 + $0xb0] sm:$0xff]   ;;  %v1957_v6 = vld [vmem:[%s2688_s1 + $0xa8] sm:$0xff]  }
   0x3   :  { %944 = vmatpush1.bf16.msra.mxu1 %v1953_v2  ;;  %752 = vmatprep.subr.bf16.mxu0 %v2104_v0  ;;  %v1958_v7 = vld [vmem:[%s2688_s1 + $0x20] sm:$0xff]   ;;  %v1960_v9 = vld [vmem:[%s2688_s1 + $0x18] sm:$0xff]   ;;  %v1962_v11 = vld [vmem:[%s2688_s1 + $0x10] sm:$0xff]  }
   0x4   :  { %945 = vmatprep.subr.bf16.mxu1 %v2104_v0  ;;  %v1959_v8 = vld [vmem:[%s2688_s1 + $0xa0] sm:$0xff]   ;;  %v1961_v10 = vld [vmem:[%s2688_s1 + $0x98] sm:$0xff]   ;;  %v1963_v12 = vld [vmem:[%s2688_s1 + $0x90] sm:$0xff]  }
   0x5   :  { %v1964_v13 = vld [vmem:[%s2688_s1 + $0x8] sm:$0xff]   ;;  %v1966_v15 = vld [vmem:[%s2688_s1] sm:$0xff]   ;;  %v1968_v17 = vld [vmem:[%s2688_s1 + $0x78] sm:$0xff]  }
   0x6   :  { %753 = vmatpush1.bf16.msra.mxu0 %v1954_v3  ;;  %v1965_v14 = vld [vmem:[%s2688_s1 + $0x88] sm:$0xff]   ;;  %v1967_v16 = vld [vmem:[%s2688_s1 + $0x80] sm:$0xff]   ;;  %v1969_v18 = vld [vmem:[%s2688_s1 + $0xf8] sm:$0xff]  }
   0x7   :  { %946 = vmatpush1.bf16.msra.mxu1 %v1955_v4  ;;  %754 = vmatprep.subr.bf16.mxu0 %v2104_v0  ;;  %v1986_v19 = vld [vmem:[%s2689_s0 + $0x4] ss:$16 sps:$4 sm:$0xff]   ;;  %v1989_v21 = vld [vmem:[%s2689_s0 + $0xc] ss:$16 sps:$4 sm:$0xff]   ;;  %v1984_v35 = vld [vmem:[%s2689_s0] ss:$16 sps:$4 sm:$0xff]  }
   0x8   :  { %947 = vmatprep.subr.bf16.mxu1 %v2104_v0  ;;  %v1970_v20 = vld [vmem:[%s2688_s1 + $0x70] sm:$0xff]   ;;  %782 = vmatprep.mubr.bf16.mxu0 %v1986_v19  ;;  %v1972_v23 = vld [vmem:[%s2688_s1 + $0x68] sm:$0xff]   ;;  %v1974_v25 = vld [vmem:[%s2688_s1 + $0x60] sm:$0xff]  }
   0x9   :  { %v1971_v22 = vld [vmem:[%s2688_s1 + $0xf0] sm:$0xff]   ;;  %975 = vmatprep.mubr.bf16.mxu1 %v1989_v21  ;;  %v1973_v24 = vld [vmem:[%s2688_s1 + $0xe8] sm:$0xff]   ;;  %v1975_v26 = vld [vmem:[%s2688_s1 + $0xe0] sm:$0xff]  }
   0xa   :  { %755 = vmatpush1.bf16.msra.mxu0 %v1956_v5  ;;  %v1976_v27 = vld [vmem:[%s2688_s1 + $0x58] sm:$0xff]   ;;  %v1978_v29 = vld [vmem:[%s2688_s1 + $0x50] sm:$0xff]   ;;  %v1980_v31 = vld [vmem:[%s2688_s1 + $0x48] sm:$0xff]  }
   0xb   :  { %948 = vmatpush1.bf16.msra.mxu1 %v1957_v6  ;;  %756 = vmatprep.subr.bf16.mxu0 %v2104_v0  ;;  %v1977_v28 = vld [vmem:[%s2688_s1 + $0xd8] sm:$0xff]   ;;  %v1979_v30 = vld [vmem:[%s2688_s1 + $0xd0] sm:$0xff]   ;;  %v1981_v32 = vld [vmem:[%s2688_s1 + $0xc8] sm:$0xff]  }
   0xc   :  { %949 = vmatprep.subr.bf16.mxu1 %v2104_v0  ;;  %v1982_v33 = vld [vmem:[%s2688_s1 + $0x40] sm:$0xff]   ;;  %v1987_v36 = vld [vmem:[%s2689_s0 + $0x8] ss:$16 sps:$4 sm:$0xff]   ;;  %v1992_v38 = vld [vmem:[%s2689_s0 + $0x2c] ss:$16 sps:$4 sm:$0xff]  }
   0xd   :  { %v1983_v34 = vld [vmem:[%s2688_s1 + $0xc0] sm:$0xff]   ;;  %v1995_v40 = vld [vmem:[%s2689_s0 + $0x28] ss:$16 sps:$4 sm:$0xff]   ;;  %v1998_v42 = vld [vmem:[%s2689_s0 + $0x4c] ss:$16 sps:$4 sm:$0xff]  }
   0xe   :  { %757 = vmatpush1.bf16.msra.mxu0 %v1958_v7  ;;  %v1990_v37 = vld [vmem:[%s2689_s0 + $0x24] ss:$16 sps:$4 sm:$0xff]   ;;  %v1994_v39 = vld [vmem:[%s2689_s0 + $0x20] ss:$16 sps:$4 sm:$0xff]   ;;  %v2001_v44 = vld [vmem:[%s2689_s0 + $0x48] ss:$16 sps:$4 sm:$0xff]  }
   0xf   :  { %950 = vmatpush1.bf16.msra.mxu1 %v1959_v8  ;;  %758 = vmatprep.subr.bf16.mxu0 %v2104_v0  ;;  %v1996_v41 = vld [vmem:[%s2689_s0 + $0x44] ss:$16 sps:$4 sm:$0xff]   ;;  %v2000_v43 = vld [vmem:[%s2689_s0 + $0x40] ss:$16 sps:$4 sm:$0xff]   ;;  %v2004_v46 = vld [vmem:[%s2689_s0 + $0x6c] ss:$16 sps:$4 sm:$0xff]  }
  0x10   :  { %951 = vmatprep.subr.bf16.mxu1 %v2104_v0  ;;  %v2002_v45 = vld [vmem:[%s2689_s0 + $0x64] ss:$16 sps:$4 sm:$0xff]   ;;  %v2006_v47 = vld [vmem:[%s2689_s0 + $0x60] ss:$16 sps:$4 sm:$0xff]   ;;  %v2007_v48 = vld [vmem:[%s2689_s0 + $0x68] ss:$16 sps:$4 sm:$0xff]  }
  0x11   :  { %v2008_v49 = vld [vmem:[%s2689_s0 + $0x84] ss:$16 sps:$4 sm:$0xff]   ;;  %v2010_v50 = vld [vmem:[%s2689_s0 + $0x8c] ss:$16 sps:$4 sm:$0xff]   ;;  %v2012_v51 = vld [vmem:[%s2689_s0 + $0x80] ss:$16 sps:$4 sm:$0xff]  }
  0x12   :  { %759 = vmatpush1.bf16.msra.mxu0 %v1960_v9  ;;  %v2013_v52 = vld [vmem:[%s2689_s0 + $0x88] ss:$16 sps:$4 sm:$0xff]   ;;  %v2014_v53 = vld [vmem:[%s2689_s0 + $0xa4] ss:$16 sps:$4 sm:$0xff]   ;;  %v2016_v54 = vld [vmem:[%s2689_s0 + $0xac] ss:$16 sps:$4 sm:$0xff]  }
  0x13   :  { %952 = vmatpush1.bf16.msra.mxu1 %v1961_v10  ;;  %760 = vmatprep.subr.bf16.mxu0 %v2104_v0  ;;  %v2018_v55 = vld [vmem:[%s2689_s0 + $0xa0] ss:$16 sps:$4 sm:$0xff]   ;;  %v2019_v56 = vld [vmem:[%s2689_s0 + $0xa8] ss:$16 sps:$4 sm:$0xff]   ;;  %v2020_v57 = vld [vmem:[%s2689_s0 + $0xc4] ss:$16 sps:$4 sm:$0xff]  }
  0x14   :  { %953 = vmatprep.subr.bf16.mxu1 %v2104_v0  ;;  %v2022_v58 = vld [vmem:[%s2689_s0 + $0xcc] ss:$16 sps:$4 sm:$0xff]   ;;  %v2024_v59 = vld [vmem:[%s2689_s0 + $0xc0] ss:$16 sps:$4 sm:$0xff]   ;;  %v2025_v60 = vld [vmem:[%s2689_s0 + $0xc8] ss:$16 sps:$4 sm:$0xff]  }
  0x15   :  { %v2026_v61 = vld [vmem:[%s2689_s0 + $0xe4] ss:$16 sps:$4 sm:$0xff]   ;;  %v2028_v62 = vld [vmem:[%s2689_s0 + $0xec] ss:$16 sps:$4 sm:$0xff]   ;;  %v2030_v63 = vld [vmem:[%s2689_s0 + $0xe0] ss:$16 sps:$4 sm:$0xff]  }
  0x16   :  { %761 = vmatpush1.bf16.msra.mxu0 %v1962_v11  ;;  %v2032_v1 = vld [vmem:[%s2689_s0 + $0x104] ss:$16 sps:$4 sm:$0xff]   ;;  %v2034_v2 = vld [vmem:[%s2689_s0 + $0x10c] ss:$16 sps:$4 sm:$0xff]   ;;  %v2036_v3 = vld [vmem:[%s2689_s0 + $0x100] ss:$16 sps:$4 sm:$0xff]  }
  0x17   :  { %954 = vmatpush1.bf16.msra.mxu1 %v1963_v12  ;;  %762 = vmatprep.subr.bf16.mxu0 %v2104_v0  ;;  %v2037_v4 = vld [vmem:[%s2689_s0 + $0x108] ss:$16 sps:$4 sm:$0xff]   ;;  %v2038_v5 = vld [vmem:[%s2689_s0 + $0x124] ss:$16 sps:$4 sm:$0xff]   ;;  %v2040_v6 = vld [vmem:[%s2689_s0 + $0x12c] ss:$16 sps:$4 sm:$0xff]  }
  0x18   :  { %955 = vmatprep.subr.bf16.mxu1 %v2104_v0  ;;  %v2042_v7 = vld [vmem:[%s2689_s0 + $0x120] ss:$16 sps:$4 sm:$0xff]   ;;  %v2043_v8 = vld [vmem:[%s2689_s0 + $0x128] ss:$16 sps:$4 sm:$0xff]   ;;  %v2044_v9 = vld [vmem:[%s2689_s0 + $0x144] ss:$16 sps:$4 sm:$0xff]  }
  0x19   :  { %v2046_v10 = vld [vmem:[%s2689_s0 + $0x14c] ss:$16 sps:$4 sm:$0xff]   ;;  %v2048_v11 = vld [vmem:[%s2689_s0 + $0x140] ss:$16 sps:$4 sm:$0xff]   ;;  %v2049_v12 = vld [vmem:[%s2689_s0 + $0x148] ss:$16 sps:$4 sm:$0xff]  }
  0x1a   :  { %763 = vmatpush1.bf16.msra.mxu0 %v1964_v13  ;;  %v2050_v13 = vld [vmem:[%s2689_s0 + $0x164] ss:$16 sps:$4 sm:$0xff]   ;;  %v2060_v19 = vld [vmem:[%s2689_s0 + $0x180] ss:$16 sps:$4 sm:$0xff]  }
  0x1b   :  { %956 = vmatpush1.bf16.msra.mxu1 %v1965_v14  ;;  %764 = vmatprep.subr.bf16.mxu0 %v2104_v0  ;;  %v2052_v14 = vld [vmem:[%s2689_s0 + $0x16c] ss:$16 sps:$4 sm:$0xff]   ;;  %v2062_v21 = vld [vmem:[%s2689_s0 + $0x1a4] ss:$16 sps:$4 sm:$0xff]  }
  0x1c   :  { %957 = vmatprep.subr.bf16.mxu1 %v2104_v0 }
  0x1e   :  { %765 = vmatpush1.bf16.msra.mxu0 %v1966_v15  ;;  %v2054_v15 = vld [vmem:[%s2689_s0 + $0x160] ss:$16 sps:$4 sm:$0xff]  }
  0x1f   :  { %958 = vmatpush1.bf16.msra.mxu1 %v1967_v16  ;;  %766 = vmatprep.subr.bf16.mxu0 %v2104_v0  ;;  %v2055_v16 = vld [vmem:[%s2689_s0 + $0x168] ss:$16 sps:$4 sm:$0xff]  }
  0x20   :  { %959 = vmatprep.subr.bf16.mxu1 %v2104_v0 }
  0x22   :  { %767 = vmatpush2.bf16.msra.mxu0 %v1968_v17  ;;  %v2056_v17 = vld [vmem:[%s2689_s0 + $0x184] ss:$16 sps:$4 sm:$0xff]  }
  0x23   :  { %960 = vmatpush2.bf16.msra.mxu1 %v1969_v18  ;;  %768 = vmatprep.subr.bf16.mxu0 %v2104_v0  ;;  %v2058_v18 = vld [vmem:[%s2689_s0 + $0x18c] ss:$16 sps:$4 sm:$0xff]  }
  0x24   :  { %961 = vmatprep.subr.bf16.mxu1 %v2104_v0 }
  0x26   :  { %769 = vmatpush2.bf16.msra.mxu0 %v1970_v20  ;;  %v2061_v20 = vld [vmem:[%s2689_s0 + $0x188] ss:$16 sps:$4 sm:$0xff]  }
  0x27   :  { %962 = vmatpush2.bf16.msra.mxu1 %v1971_v22  ;;  %770 = vmatprep.subr.bf16.mxu0 %v2104_v0  ;;  %v2064_v22 = vld [vmem:[%s2689_s0 + $0x1ac] ss:$16 sps:$4 sm:$0xff]  }
  0x28   :  { %963 = vmatprep.subr.bf16.mxu1 %v2104_v0 }
  0x2a   :  { %771 = vmatpush2.bf16.msra.mxu0 %v1972_v23  ;;  %v2066_v23 = vld [vmem:[%s2689_s0 + $0x1a0] ss:$16 sps:$4 sm:$0xff]  }
  0x2b   :  { %964 = vmatpush2.bf16.msra.mxu1 %v1973_v24  ;;  %772 = vmatprep.subr.bf16.mxu0 %v2104_v0  ;;  %v2067_v24 = vld [vmem:[%s2689_s0 + $0x1a8] ss:$16 sps:$4 sm:$0xff]  }
  0x2c   :  { %965 = vmatprep.subr.bf16.mxu1 %v2104_v0 }
  0x2e   :  { %773 = vmatpush2.bf16.msra.mxu0 %v1974_v25  ;;  %v2068_v25 = vld [vmem:[%s2689_s0 + $0x1c4] ss:$16 sps:$4 sm:$0xff]  }
  0x2f   :  { %966 = vmatpush2.bf16.msra.mxu1 %v1975_v26  ;;  %774 = vmatprep.subr.bf16.mxu0 %v2104_v0  ;;  %v2070_v26 = vld [vmem:[%s2689_s0 + $0x1cc] ss:$16 sps:$4 sm:$0xff]  }
  0x30   :  { %967 = vmatprep.subr.bf16.mxu1 %v2104_v0 }
  0x32   :  { %775 = vmatpush2.bf16.msra.mxu0 %v1976_v27  ;;  %v2072_v27 = vld [vmem:[%s2689_s0 + $0x1c0] ss:$16 sps:$4 sm:$0xff]  }
  0x33   :  { %968 = vmatpush2.bf16.msra.mxu1 %v1977_v28  ;;  %776 = vmatprep.subr.bf16.mxu0 %v2104_v0  ;;  %v2073_v28 = vld [vmem:[%s2689_s0 + $0x1c8] ss:$16 sps:$4 sm:$0xff]  }
  0x34   :  { %969 = vmatprep.subr.bf16.mxu1 %v2104_v0 }
  0x36   :  { %777 = vmatpush2.bf16.msra.mxu0 %v1978_v29  ;;  %v2074_v29 = vld [vmem:[%s2689_s0 + $0x1e4] ss:$16 sps:$4 sm:$0xff]  }
  0x37   :  { %970 = vmatpush2.bf16.msra.mxu1 %v1979_v30  ;;  %778 = vmatprep.subr.bf16.mxu0 %v2104_v0  ;;  %v2076_v30 = vld [vmem:[%s2689_s0 + $0x1ec] ss:$16 sps:$4 sm:$0xff]  }
  0x38   :  { %971 = vmatprep.subr.bf16.mxu1 %v2104_v0 }
  0x3a   :  { %779 = vmatpush2.bf16.msra.mxu0 %v1980_v31  ;;  %v2078_v31 = vld [vmem:[%s2689_s0 + $0x1e0] ss:$16 sps:$4 sm:$0xff]  }
  0x3b   :  { %972 = vmatpush2.bf16.msra.mxu1 %v1981_v32  ;;  %780 = vmatprep.subr.bf16.mxu0 %v2104_v0  ;;  %v2079_v32 = vld [vmem:[%s2689_s0 + $0x1e8] ss:$16 sps:$4 sm:$0xff]  }
  0x3c   :  { %973 = vmatprep.subr.bf16.mxu1 %v2104_v0  ;;  %v2031_v0 = vld [vmem:[%s2689_s0 + $0xe8] ss:$16 sps:$4 sm:$0xff]  }
  0x3e   :  { %781 = vmatpush2.bf16.msra.mxu0 %v1982_v33  ;;  %v2080_v33 = vld [vmem:[%s2689_s0 + $0x204] ss:$16 sps:$4 sm:$0xff]  }
  0x3f   :  { %974 = vmatpush2.bf16.msra.mxu1 %v1983_v34  ;;  %v2082_v34 = vld [vmem:[%s2689_s0 + $0x20c] ss:$16 sps:$4 sm:$0xff]  }
  0x41   :  { %783 = vmatmul.mubr.bf16.vlgmr.msra.gmra.mxu0 %v1984_v35  ;;  %v2084_v35 = vld [vmem:[%s2689_s0 + $0x200] ss:$16 sps:$4 sm:$0xff]  }
  0x42   :  { %976 = vmatmul.mubr.bf16.vlgmr.msra.gmra.mxu1 %v1987_v36  ;;  %790 = vmatprep.mubr.bf16.mxu0 %v1990_v37  ;;  %v2085_v36 = vld [vmem:[%s2689_s0 + $0x208] ss:$16 sps:$4 sm:$0xff]   ;;  %v2086_v37 = vld [vmem:[%s2689_s0 + $0x224] ss:$16 sps:$4 sm:$0xff]  }
  0x43   :  { %983 = vmatprep.mubr.bf16.mxu1 %v1992_v38  ;;  %v2088_v38 = vld [vmem:[%s2689_s0 + $0x22c] ss:$16 sps:$4 sm:$0xff]  }
  0x49   :  { %791 = vmatmul.mubr.bf16.gmra.mxu0 %v1994_v39  ;;  %v2090_v39 = vld [vmem:[%s2689_s0 + $0x220] ss:$16 sps:$4 sm:$0xff]  }
  0x4a   :  { %984 = vmatmul.mubr.bf16.gmra.mxu1 %v1995_v40  ;;  %798 = vmatprep.mubr.bf16.mxu0 %v1996_v41  ;;  %v2091_v40 = vld [vmem:[%s2689_s0 + $0x228] ss:$16 sps:$4 sm:$0xff]   ;;  %v2092_v41 = vld [vmem:[%s2689_s0 + $0x244] ss:$16 sps:$4 sm:$0xff]  }
  0x4b   :  { %991 = vmatprep.mubr.bf16.mxu1 %v1998_v42  ;;  %v2094_v42 = vld [vmem:[%s2689_s0 + $0x24c] ss:$16 sps:$4 sm:$0xff]  }
  0x51   :  { %799 = vmatmul.mubr.bf16.gmra.mxu0 %v2000_v43  ;;  %v2096_v43 = vld [vmem:[%s2689_s0 + $0x240] ss:$16 sps:$4 sm:$0xff]  }
  0x52   :  { %992 = vmatmul.mubr.bf16.gmra.mxu1 %v2001_v44  ;;  %806 = vmatprep.mubr.bf16.mxu0 %v2002_v45  ;;  %v2097_v44 = vld [vmem:[%s2689_s0 + $0x248] ss:$16 sps:$4 sm:$0xff]   ;;  %v2098_v45 = vld [vmem:[%s2689_s0 + $0x264] ss:$16 sps:$4 sm:$0xff]  }
  0x53   :  { %999 = vmatprep.mubr.bf16.mxu1 %v2004_v46  ;;  %v2100_v46 = vld [vmem:[%s2689_s0 + $0x26c] ss:$16 sps:$4 sm:$0xff]  }
  0x59   :  { %807 = vmatmul.mubr.bf16.gmra.mxu0 %v2006_v47  ;;  %v2102_v47 = vld [vmem:[%s2689_s0 + $0x260] ss:$16 sps:$4 sm:$0xff]  }
  0x5a   :  { %1000 = vmatmul.mubr.bf16.gmra.mxu1 %v2007_v48  ;;  %814 = vmatprep.mubr.bf16.mxu0 %v2008_v49  ;;  %v2103_v48 = vld [vmem:[%s2689_s0 + $0x268] ss:$16 sps:$4 sm:$0xff]  }
  0x5b   :  { %1007 = vmatprep.mubr.bf16.mxu1 %v2010_v50 }
  0x61   :  { %815 = vmatmul.mubr.bf16.gmra.mxu0 %v2012_v51 }
  0x62   :  { %1008 = vmatmul.mubr.bf16.gmra.mxu1 %v2013_v52  ;;  %822 = vmatprep.mubr.bf16.mxu0 %v2014_v53 }
  0x63   :  { %1015 = vmatprep.mubr.bf16.mxu1 %v2016_v54 }
  0x69   :  { %823 = vmatmul.mubr.bf16.gmra.mxu0 %v2018_v55 }
  0x6a   :  { %1016 = vmatmul.mubr.bf16.gmra.mxu1 %v2019_v56  ;;  %830 = vmatprep.mubr.bf16.mxu0 %v2020_v57 }
  0x6b   :  { %1023 = vmatprep.mubr.bf16.mxu1 %v2022_v58 }
  0x71   :  { %831 = vmatmul.mubr.bf16.gmra.mxu0 %v2024_v59 }
  0x72   :  { %1024 = vmatmul.mubr.bf16.gmra.mxu1 %v2025_v60  ;;  %838 = vmatprep.mubr.bf16.mxu0 %v2026_v61 }
  0x73   :  { %1031 = vmatprep.mubr.bf16.mxu1 %v2028_v62 }
  0x79   :  { %839 = vmatmul.mubr.bf16.gmra.mxu0 %v2030_v63 }
  0x7a   :  { %1032 = vmatmul.mubr.bf16.gmra.mxu1 %v2031_v0  ;;  %846 = vmatprep.mubr.bf16.mxu0 %v2032_v1 }
  0x7b   :  { %1039 = vmatprep.mubr.bf16.mxu1 %v2034_v2 }
  0x81   :  { %847 = vmatmul.mubr.bf16.gmra.mxu0 %v2036_v3 }
  0x82   :  { %1040 = vmatmul.mubr.bf16.gmra.mxu1 %v2037_v4  ;;  %854 = vmatprep.mubr.bf16.mxu0 %v2038_v5 }
  0x83   :  { %1047 = vmatprep.mubr.bf16.mxu1 %v2040_v6 }
  0x89   :  { %855 = vmatmul.mubr.bf16.gmra.mxu0 %v2042_v7 }
  0x8a   :  { %1048 = vmatmul.mubr.bf16.gmra.mxu1 %v2043_v8  ;;  %862 = vmatprep.mubr.bf16.mxu0 %v2044_v9 }
  0x8b   :  { %1055 = vmatprep.mubr.bf16.mxu1 %v2046_v10 }
  0x91   :  { %863 = vmatmul.mubr.bf16.gmra.mxu0 %v2048_v11 }
  0x92   :  { %1056 = vmatmul.mubr.bf16.gmra.mxu1 %v2049_v12  ;;  %870 = vmatprep.mubr.bf16.mxu0 %v2050_v13 }
  0x93   :  { %1063 = vmatprep.mubr.bf16.mxu1 %v2052_v14 }
  0x99   :  { %871 = vmatmul.mubr.bf16.gmra.mxu0 %v2054_v15 }
  0x9a   :  { %1064 = vmatmul.mubr.bf16.gmra.mxu1 %v2055_v16  ;;  %878 = vmatprep.mubr.bf16.mxu0 %v2056_v17 }
  0x9b   :  { %1071 = vmatprep.mubr.bf16.mxu1 %v2058_v18 }
  0xa1   :  { %879 = vmatmul.mubr.bf16.gmra.mxu0 %v2060_v19 }
  0xa2   :  { %1072 = vmatmul.mubr.bf16.gmra.mxu1 %v2061_v20  ;;  %886 = vmatprep.mubr.bf16.mxu0 %v2062_v21 }
  0xa3   :  { %1079 = vmatprep.mubr.bf16.mxu1 %v2064_v22 }
  0xa9   :  { %887 = vmatmul.mubr.bf16.gmra.mxu0 %v2066_v23 }
  0xaa   :  { %1080 = vmatmul.mubr.bf16.gmra.mxu1 %v2067_v24  ;;  %894 = vmatprep.mubr.bf16.mxu0 %v2068_v25 }
  0xab   :  { %1087 = vmatprep.mubr.bf16.mxu1 %v2070_v26 }
  0xb1   :  { %895 = vmatmul.mubr.bf16.gmra.mxu0 %v2072_v27 }
  0xb2   :  { %1088 = vmatmul.mubr.bf16.gmra.mxu1 %v2073_v28  ;;  %902 = vmatprep.mubr.bf16.mxu0 %v2074_v29 }
  0xb3   :  { %1095 = vmatprep.mubr.bf16.mxu1 %v2076_v30 }
  0xb9   :  { %903 = vmatmul.mubr.bf16.gmra.mxu0 %v2078_v31 }
  0xba   :  { %1096 = vmatmul.mubr.bf16.gmra.mxu1 %v2079_v32  ;;  %910 = vmatprep.mubr.bf16.mxu0 %v2080_v33 }
  0xbb   :  { %1103 = vmatprep.mubr.bf16.mxu1 %v2082_v34 }
  0xc1   :  { %911 = vmatmul.mubr.bf16.gmra.mxu0 %v2084_v35 }
  0xc2   :  { %1104 = vmatmul.mubr.bf16.gmra.mxu1 %v2085_v36  ;;  %918 = vmatprep.mubr.bf16.mxu0 %v2086_v37 }
  0xc3   :  { %1111 = vmatprep.mubr.bf16.mxu1 %v2088_v38 }
  0xc9   :  { %919 = vmatmul.mubr.bf16.gmra.mxu0 %v2090_v39 }
  0xca   :  { %1112 = vmatmul.mubr.bf16.gmra.mxu1 %v2091_v40  ;;  %926 = vmatprep.mubr.bf16.mxu0 %v2092_v41 }
  0xcb   :  { %1119 = vmatprep.mubr.bf16.mxu1 %v2094_v42 }
  0xd1   :  { %927 = vmatmul.mubr.bf16.gmra.mxu0 %v2096_v43 }
  0xd2   :  { %1120 = vmatmul.mubr.bf16.gmra.mxu1 %v2097_v44  ;;  %934 = vmatprep.mubr.bf16.mxu0 %v2098_v45 }
  0xd3   :  { %1127 = vmatprep.mubr.bf16.mxu1 %v2100_v46 }
  0xd9   :  { %935 = vmatmul.mubr.bf16.gmra.mxu0 %v2102_v47 }
  0xda   :  { %1128 = vmatmul.mubr.bf16.gmra.mxu1 %v2103_v48 }
 0x101   :  { %v784_v49 = vpop.f32.mrf.mxu0 }
 0x102   :  { %v977_v50 = vpop.f32.mrf.mxu1 }
 0x103   :  { %v786_v51 = vpop.f32.mrf.mxu0  ;;  %v978_v53 = vadd.f32 %v977_v50, %v784_v49 }
 0x104   :  { %v979_v52 = vpop.f32.mrf.mxu1 }
 0x105   :  { %v787_v54 = vpop.f32.mrf.mxu0  ;;  %v1544_v59 = vmul.f32 %v978_v53, %v978_v53 }
 0x106   :  { %v980_v55 = vpop.f32.mrf.mxu1 }
 0x107   :  { %v981_v56 = vadd.f32 %v980_v55, %v787_v54  ;;  %v789_v57 = vpop.f32.mrf.mxu0 }
 0x108   :  { %v982_v58 = vpop.f32.mrf.mxu1 }
 0x109   :  { %v1835_v60 = vpack.c.bf16 %v981_v56, %v978_v53  ;;  %v1499_v61 = vadd.f32 %v981_v56, %v978_v53  ;;  %v1545_v62 = vmul.f32 %v981_v56, %v981_v56  ;;  %v792_v63 = vpop.f32.mrf.mxu0 }
 0x10a   :  { %v985_v0 = vpop.f32.mrf.mxu1 }
 0x10b   :  { %1836 = vst [vmem:[%s2690_s2] sm:$0xff] %v1835_v60   ;;  %v1584_v1 = vadd.f32 %v1545_v62, %v1544_v59  ;;  %v986_v2 = vadd.f32 %v985_v0, %v792_v63  ;;  %v794_v3 = vpop.f32.mrf.mxu0 }
 0x10c   :  { %v987_v4 = vpop.f32.mrf.mxu1 }
 0x10d   :  { %v1500_v5 = vadd.f32 %v1499_v61, %v986_v2  ;;  %v1546_v6 = vmul.f32 %v986_v2, %v986_v2  ;;  %v795_v7 = vpop.f32.mrf.mxu0 }
 0x10e   :  { %v988_v8 = vpop.f32.mrf.mxu1 }
 0x10f   :  { %v1585_v9 = vadd.f32 %v1584_v1, %v1546_v6  ;;  %v989_v10 = vadd.f32 %v988_v8, %v795_v7  ;;  %v797_v11 = vpop.f32.mrf.mxu0 }
 0x110   :  { %v990_v12 = vpop.f32.mrf.mxu1 }
 0x111   :  { %v1840_v13 = vpack.c.bf16 %v989_v10, %v986_v2  ;;  %v1501_v14 = vadd.f32 %v1500_v5, %v989_v10  ;;  %v1547_v15 = vmul.f32 %v989_v10, %v989_v10  ;;  %v800_v16 = vpop.f32.mrf.mxu0 }
 0x112   :  { %v993_v17 = vpop.f32.mrf.mxu1 }
 0x113   :  { %1932 = vst [vmem:[%s2690_s2 + $0x8] sm:$0xff] %v1840_v13   ;;  %v1586_v18 = vadd.f32 %v1585_v9, %v1547_v15  ;;  %v994_v19 = vadd.f32 %v993_v17, %v800_v16  ;;  %v802_v20 = vpop.f32.mrf.mxu0 }
 0x114   :  { %v995_v21 = vpop.f32.mrf.mxu1 }
 0x115   :  { %v1502_v22 = vadd.f32 %v1501_v14, %v994_v19  ;;  %v1548_v23 = vmul.f32 %v994_v19, %v994_v19  ;;  %v803_v24 = vpop.f32.mrf.mxu0 }
 0x116   :  { %v996_v25 = vpop.f32.mrf.mxu1 }
 0x117   :  { %v1587_v26 = vadd.f32 %v1586_v18, %v1548_v23  ;;  %v997_v27 = vadd.f32 %v996_v25, %v803_v24  ;;  %v805_v28 = vpop.f32.mrf.mxu0 }
 0x118   :  { %v998_v29 = vpop.f32.mrf.mxu1 }
 0x119   :  { %v1845_v30 = vpack.c.bf16 %v997_v27, %v994_v19  ;;  %v1503_v31 = vadd.f32 %v1502_v22, %v997_v27  ;;  %v1549_v32 = vmul.f32 %v997_v27, %v997_v27  ;;  %v808_v33 = vpop.f32.mrf.mxu0 }
 0x11a   :  { %v1001_v34 = vpop.f32.mrf.mxu1 }
 0x11b   :  { %1933 = vst [vmem:[%s2690_s2 + $0x10] sm:$0xff] %v1845_v30   ;;  %v1588_v35 = vadd.f32 %v1587_v26, %v1549_v32  ;;  %v1002_v36 = vadd.f32 %v1001_v34, %v808_v33  ;;  %v810_v37 = vpop.f32.mrf.mxu0 }
 0x11c   :  { %v1003_v38 = vpop.f32.mrf.mxu1 }
 0x11d   :  { %v1504_v39 = vadd.f32 %v1503_v31, %v1002_v36  ;;  %v1550_v40 = vmul.f32 %v1002_v36, %v1002_v36  ;;  %v811_v41 = vpop.f32.mrf.mxu0 }
 0x11e   :  { %v1004_v42 = vpop.f32.mrf.mxu1 }
 0x11f   :  { %v1005_v43 = vadd.f32 %v1004_v42, %v811_v41  ;;  %v813_v44 = vpop.f32.mrf.mxu0  ;;  %v1589_v46 = vadd.f32 %v1588_v35, %v1550_v40 }
 0x120   :  { %v1006_v45 = vpop.f32.mrf.mxu1 }
 0x121   :  { %v1850_v47 = vpack.c.bf16 %v1005_v43, %v1002_v36  ;;  %v2502_v48 = vadd.f32 %v1504_v39, %v1005_v43  ;;  %v1551_v49 = vmul.f32 %v1005_v43, %v1005_v43  ;;  %v816_v50 = vpop.f32.mrf.mxu0 }
 0x122   :  { %v1009_v51 = vpop.f32.mrf.mxu1 }
 0x123   :  { %1934 = vst [vmem:[%s2690_s2 + $0x18] sm:$0xff] %v1850_v47   ;;  %v2507_v52 = vadd.f32 %v1589_v46, %v1551_v49  ;;  %v818_v53 = vpop.f32.mrf.mxu0  ;;  %v2509_v57 = vadd.f32 %v1009_v51, %v816_v50 }
 0x124   :  { %v1011_v54 = vpop.f32.mrf.mxu1 }
 0x125   :  { %v819_v55 = vpop.f32.mrf.mxu0 }
 0x126   :  { %v1012_v56 = vpop.f32.mrf.mxu1 }
 0x127   :  { %v2511_v58 = vadd.f32 %v1012_v56, %v819_v55  ;;  %v821_v59 = vpop.f32.mrf.mxu0 }
 0x128   :  { %v1014_v60 = vpop.f32.mrf.mxu1 }
 0x129   :  { %v1855_v61 = vpack.c.bf16 %v2511_v58, %v2509_v57  ;;  %v824_v62 = vpop.f32.mrf.mxu0 }
 0x12a   :  { %v1017_v63 = vpop.f32.mrf.mxu1 }
 0x12b   :  { %1935 = vst [vmem:[%s2690_s2 + $0x20] sm:$0xff] %v1855_v61   ;;  %v826_v0 = vpop.f32.mrf.mxu0  ;;  %v2518_v4 = vadd.f32 %v1017_v63, %v824_v62 }
 0x12c   :  { %v1019_v1 = vpop.f32.mrf.mxu1 }
 0x12d   :  { %v827_v2 = vpop.f32.mrf.mxu0 }
 0x12e   :  { %v1020_v3 = vpop.f32.mrf.mxu1 }
 0x12f   :  { %v2520_v5 = vadd.f32 %v1020_v3, %v827_v2  ;;  %v829_v6 = vpop.f32.mrf.mxu0 }
 0x130   :  { %v1022_v7 = vpop.f32.mrf.mxu1 }
 0x131   :  { %v1860_v8 = vpack.c.bf16 %v2520_v5, %v2518_v4  ;;  %v832_v9 = vpop.f32.mrf.mxu0 }
 0x132   :  { %v1025_v10 = vpop.f32.mrf.mxu1 }
 0x133   :  { %1936 = vst [vmem:[%s2690_s2 + $0x28] sm:$0xff] %v1860_v8   ;;  %v834_v11 = vpop.f32.mrf.mxu0  ;;  %v2527_v15 = vadd.f32 %v1025_v10, %v832_v9 }
 0x134   :  { %v1027_v12 = vpop.f32.mrf.mxu1 }
 0x135   :  { %v835_v13 = vpop.f32.mrf.mxu0 }
 0x136   :  { %v1028_v14 = vpop.f32.mrf.mxu1 }
 0x137   :  { %v2529_v16 = vadd.f32 %v1028_v14, %v835_v13  ;;  %v837_v17 = vpop.f32.mrf.mxu0 }
 0x138   :  { %v1030_v18 = vpop.f32.mrf.mxu1  ;;  %v1552_v17 = vmul.f32 %v2509_v57, %v2509_v57 }
 0x139   :  { %v1865_v19 = vpack.c.bf16 %v2529_v16, %v2527_v15  ;;  %v840_v20 = vpop.f32.mrf.mxu0 }
 0x13a   :  { %v1033_v21 = vpop.f32.mrf.mxu1 }
 0x13b   :  { %1937 = vst [vmem:[%s2690_s2 + $0x30] sm:$0xff] %v1865_v19   ;;  %v842_v22 = vpop.f32.mrf.mxu0  ;;  %v2536_v26 = vadd.f32 %v1033_v21, %v840_v20  ;;  %v1553_v21 = vmul.f32 %v2511_v58, %v2511_v58 }
 0x13c   :  { %v1035_v23 = vpop.f32.mrf.mxu1 }
 0x13d   :  { %v843_v24 = vpop.f32.mrf.mxu0  ;;  %v1506_v23 = vadd.f32 %v2502_v48, %v2509_v57 }
 0x13e   :  { %v1036_v25 = vpop.f32.mrf.mxu1 }
 0x13f   :  { %v2538_v27 = vadd.f32 %v1036_v25, %v843_v24  ;;  %v845_v28 = vpop.f32.mrf.mxu0  ;;  %v1591_v25 = vadd.f32 %v2507_v52, %v1552_v17 }
 0x140   :  { %v1038_v29 = vpop.f32.mrf.mxu1  ;;  %v1554_v28 = vmul.f32 %v2518_v4, %v2518_v4 }
 0x141   :  { %v1870_v30 = vpack.c.bf16 %v2538_v27, %v2536_v26  ;;  %v848_v31 = vpop.f32.mrf.mxu0 }
 0x142   :  { %v1041_v32 = vpop.f32.mrf.mxu1 }
 0x143   :  { %1938 = vst [vmem:[%s2690_s2 + $0x38] sm:$0xff] %v1870_v30   ;;  %v850_v33 = vpop.f32.mrf.mxu0  ;;  %v2545_v37 = vadd.f32 %v1041_v32, %v848_v31  ;;  %v1507_v30 = vadd.f32 %v1506_v23, %v2511_v58  ;;  %v1592_v32 = vadd.f32 %v1591_v25, %v1553_v21 }
 0x144   :  { %v1043_v34 = vpop.f32.mrf.mxu1  ;;  %v1555_v33 = vmul.f32 %v2520_v5, %v2520_v5 }
 0x145   :  { %v851_v35 = vpop.f32.mrf.mxu0  ;;  %v1508_v48 = vadd.f32 %v1507_v30, %v2518_v4  ;;  %v1593_v52 = vadd.f32 %v1592_v32, %v1554_v28  ;;  %v1557_v4 = vmul.f32 %v2529_v16, %v2529_v16 }
 0x146   :  { %v1044_v36 = vpop.f32.mrf.mxu1 }
 0x147   :  { %v2547_v38 = vadd.f32 %v1044_v36, %v851_v35  ;;  %v853_v39 = vpop.f32.mrf.mxu0  ;;  %v1509_v58 = vadd.f32 %v1508_v48, %v2520_v5  ;;  %v1558_v5 = vmul.f32 %v2536_v26, %v2536_v26 }
 0x148   :  { %v1046_v40 = vpop.f32.mrf.mxu1  ;;  %v1556_v39 = vmul.f32 %v2527_v15, %v2527_v15 }
 0x149   :  { %v1875_v41 = vpack.c.bf16 %v2547_v38, %v2545_v37  ;;  %v856_v42 = vpop.f32.mrf.mxu0 }
 0x14a   :  { %v1049_v43 = vpop.f32.mrf.mxu1 }
 0x14b   :  { %1939 = vst [vmem:[%s2690_s2 + $0x40] sm:$0xff] %v1875_v41   ;;  %v858_v44 = vpop.f32.mrf.mxu0  ;;  %v2554_v49 = vadd.f32 %v1049_v43, %v856_v42  ;;  %v1594_v43 = vadd.f32 %v1593_v52, %v1555_v33 }
 0x14c   :  { %v1051_v45 = vpop.f32.mrf.mxu1 }
 0x14d   :  { %v859_v46 = vpop.f32.mrf.mxu0  ;;  %v1510_v45 = vadd.f32 %v1509_v58, %v2527_v15 }
 0x14e   :  { %v1052_v47 = vpop.f32.mrf.mxu1 }
 0x14f   :  { %v2556_v50 = vadd.f32 %v1052_v47, %v859_v46  ;;  %v861_v51 = vpop.f32.mrf.mxu0  ;;  %v1595_v47 = vadd.f32 %v1594_v43, %v1556_v39 }
 0x150   :  { %v1054_v53 = vpop.f32.mrf.mxu1 }
 0x151   :  { %v1880_v54 = vpack.c.bf16 %v2556_v50, %v2554_v49  ;;  %v864_v55 = vpop.f32.mrf.mxu0  ;;  %v1511_v53 = vadd.f32 %v1510_v45, %v2529_v16  ;;  %v1563_v21 = vmul.f32 %v2556_v50, %v2556_v50 }
 0x152   :  { %v1057_v56 = vpop.f32.mrf.mxu1 }
 0x153   :  { %1940 = vst [vmem:[%s2690_s2 + $0x48] sm:$0xff] %v1880_v54   ;;  %v866_v59 = vpop.f32.mrf.mxu0  ;;  %v2563_v63 = vadd.f32 %v1057_v56, %v864_v55  ;;  %v1596_v55 = vadd.f32 %v1595_v47, %v1557_v4  ;;  %v1559_v56 = vmul.f32 %v2538_v27, %v2538_v27  ;;  %v1512_v15 = vadd.f32 %v1511_v53, %v2536_v26 }
 0x154   :  { %v1059_v60 = vpop.f32.mrf.mxu1  ;;  %v1561_v26 = vmul.f32 %v2547_v38, %v2547_v38 }
 0x155   :  { %v867_v61 = vpop.f32.mrf.mxu0  ;;  %v1513_v16 = vadd.f32 %v1512_v15, %v2538_v27  ;;  %v1562_v27 = vmul.f32 %v2554_v49, %v2554_v49 }
 0x156   :  { %v1060_v62 = vpop.f32.mrf.mxu1 }
 0x157   :  { %v2565_v0 = vadd.f32 %v1060_v62, %v867_v61  ;;  %v869_v1 = vpop.f32.mrf.mxu0 }
 0x158   :  { %v1062_v2 = vpop.f32.mrf.mxu1  ;;  %v1597_v1 = vadd.f32 %v1596_v55, %v1558_v5 }
 0x159   :  { %v1885_v3 = vpack.c.bf16 %v2565_v0, %v2563_v63  ;;  %v872_v6 = vpop.f32.mrf.mxu0  ;;  %v1560_v2 = vmul.f32 %v2545_v37, %v2545_v37 }
 0x15a   :  { %v1065_v7 = vpop.f32.mrf.mxu1 }
 0x15b   :  { %1941 = vst [vmem:[%s2690_s2 + $0x50] sm:$0xff] %v1885_v3   ;;  %v874_v8 = vpop.f32.mrf.mxu0  ;;  %v2572_v12 = vadd.f32 %v1065_v7, %v872_v6 }
 0x15c   :  { %v1067_v9 = vpop.f32.mrf.mxu1  ;;  %v1598_v8 = vadd.f32 %v1597_v1, %v1559_v56 }
 0x15d   :  { %v875_v10 = vpop.f32.mrf.mxu0  ;;  %v1566_v39 = vmul.f32 %v2572_v12, %v2572_v12 }
 0x15e   :  { %v1068_v11 = vpop.f32.mrf.mxu1 }
 0x15f   :  { %v2574_v13 = vadd.f32 %v1068_v11, %v875_v10  ;;  %v877_v14 = vpop.f32.mrf.mxu0  ;;  %v1514_v10 = vadd.f32 %v1513_v16, %v2545_v37 }
 0x160   :  { %v1070_v18 = vpop.f32.mrf.mxu1  ;;  %v1599_v14 = vadd.f32 %v1598_v8, %v1560_v2 }
 0x161   :  { %v1890_v19 = vpack.c.bf16 %v2574_v13, %v2572_v12  ;;  %v880_v20 = vpop.f32.mrf.mxu0  ;;  %v1515_v18 = vadd.f32 %v1514_v10, %v2547_v38 }
 0x162   :  { %v1073_v22 = vpop.f32.mrf.mxu1 }
 0x163   :  { %1942 = vst [vmem:[%s2690_s2 + $0x58] sm:$0xff] %v1890_v19   ;;  %v882_v24 = vpop.f32.mrf.mxu0  ;;  %v2594_v57 = vadd.f32 %v1073_v22, %v880_v20  ;;  %v1600_v20 = vadd.f32 %v1599_v14, %v1561_v26  ;;  %v1516_v37 = vadd.f32 %v1515_v18, %v2554_v49 }
 0x164   :  { %v1075_v29 = vpop.f32.mrf.mxu1 }
 0x165   :  { %v883_v31 = vpop.f32.mrf.mxu0  ;;  %v1601_v28 = vadd.f32 %v1600_v20, %v1562_v27  ;;  %v1564_v29 = vmul.f32 %v2563_v63, %v2563_v63  ;;  %v1568_v47 = vmul.f32 %v2594_v57, %v2594_v57 }
 0x166   :  { %v1076_v34 = vpop.f32.mrf.mxu1 }
 0x167   :  { %v2596_v35 = vadd.f32 %v1076_v34, %v883_v31  ;;  %v885_v36 = vpop.f32.mrf.mxu0  ;;  %v1517_v31 = vadd.f32 %v1516_v37, %v2556_v50  ;;  %v1602_v33 = vadd.f32 %v1601_v28, %v1563_v21  ;;  %v1565_v34 = vmul.f32 %v2565_v0, %v2565_v0 }
 0x168   :  { %v1078_v40 = vpop.f32.mrf.mxu1 }
 0x169   :  { %v1895_v41 = vpack.c.bf16 %v2596_v35, %v2594_v57  ;;  %v888_v42 = vpop.f32.mrf.mxu0  ;;  %v1518_v49 = vadd.f32 %v1517_v31, %v2563_v63  ;;  %v1603_v52 = vadd.f32 %v1602_v33, %v1564_v29  ;;  %v1569_v55 = vmul.f32 %v2596_v35, %v2596_v35 }
 0x16a   :  { %v1081_v44 = vpop.f32.mrf.mxu1 }
 0x16b   :  { %1943 = vst [vmem:[%s2690_s2 + $0x60] sm:$0xff] %v1895_v41   ;;  %v890_v46 = vpop.f32.mrf.mxu0  ;;  %v2615_v60 = vadd.f32 %v1081_v44, %v888_v42  ;;  %v1519_v40 = vadd.f32 %v1518_v49, %v2565_v0  ;;  %v1604_v41 = vadd.f32 %v1603_v52, %v1565_v34  ;;  %v1567_v42 = vmul.f32 %v2574_v13, %v2574_v13 }
 0x16c   :  { %v1083_v51 = vpop.f32.mrf.mxu1 }
 0x16d   :  { %v891_v54 = vpop.f32.mrf.mxu0  ;;  %v1520_v63 = vadd.f32 %v1519_v40, %v2572_v12  ;;  %v1605_v46 = vadd.f32 %v1604_v41, %v1566_v39 }
 0x16e   :  { %v1084_v59 = vpop.f32.mrf.mxu1 }
 0x16f   :  { %v2617_v61 = vadd.f32 %v1084_v59, %v891_v54  ;;  %v893_v62 = vpop.f32.mrf.mxu0  ;;  %v1521_v51 = vadd.f32 %v1520_v63, %v2574_v13  ;;  %v1606_v54 = vadd.f32 %v1605_v46, %v1567_v42 }
 0x170   :  { %v1086_v3 = vpop.f32.mrf.mxu1  ;;  %v1570_v62 = vmul.f32 %v2615_v60, %v2615_v60 }
 0x171   :  { %v1900_v6 = vpack.c.bf16 %v2617_v61, %v2615_v60  ;;  %v896_v7 = vpop.f32.mrf.mxu0  ;;  %v1522_v59 = vadd.f32 %v1521_v51, %v2594_v57  ;;  %v1607_v15 = vadd.f32 %v1606_v54, %v1568_v47  ;;  %v1571_v16 = vmul.f32 %v2617_v61, %v2617_v61 }
 0x172   :  { %v1089_v9 = vpop.f32.mrf.mxu1 }
 0x173   :  { %1944 = vst [vmem:[%s2690_s2 + $0x68] sm:$0xff] %v1900_v6   ;;  %v898_v11 = vpop.f32.mrf.mxu0  ;;  %v1090_v23 = vadd.f32 %v1089_v9, %v896_v7  ;;  %v1523_v13 = vadd.f32 %v1522_v59, %v2596_v35  ;;  %v1608_v3 = vadd.f32 %v1607_v15, %v1569_v55 }
 0x174   :  { %v1091_v17 = vpop.f32.mrf.mxu1 }
 0x175   :  { %v899_v19 = vpop.f32.mrf.mxu0  ;;  %v1524_v57 = vadd.f32 %v1523_v13, %v2615_v60  ;;  %v1609_v9 = vadd.f32 %v1608_v3, %v1570_v62  ;;  %v1572_v10 = vmul.f32 %v1090_v23, %v1090_v23 }
 0x176   :  { %v1092_v22 = vpop.f32.mrf.mxu1 }
 0x177   :  { %v2636_v24 = vadd.f32 %v1092_v22, %v899_v19  ;;  %v901_v25 = vpop.f32.mrf.mxu0  ;;  %v1525_v14 = vadd.f32 %v1524_v57, %v2617_v61  ;;  %v1610_v18 = vadd.f32 %v1609_v9, %v1571_v16 }
 0x178   :  { %v1094_v30 = vpop.f32.mrf.mxu1 }
 0x179   :  { %v1905_v38 = vpack.c.bf16 %v2636_v24, %v1090_v23  ;;  %v904_v32 = vpop.f32.mrf.mxu0  ;;  %v1573_v35 = vmul.f32 %v2636_v24, %v2636_v24  ;;  %v1526_v20 = vadd.f32 %v1525_v14, %v1090_v23  ;;  %v1611_v21 = vadd.f32 %v1610_v18, %v1572_v10 }
 0x17a   :  { %v1097_v48 = vpop.f32.mrf.mxu1 }
 0x17b   :  { %1945 = vst [vmem:[%s2690_s2 + $0x70] sm:$0xff] %v1905_v38   ;;  %v906_v36 = vpop.f32.mrf.mxu0  ;;  %v1098_v4 = vadd.f32 %v1097_v48, %v904_v32  ;;  %v1527_v37 = vadd.f32 %v1526_v20, %v2636_v24  ;;  %v1612_v61 = vadd.f32 %v1611_v21, %v1573_v35 }
 0x17c   :  { %v1099_v50 = vpop.f32.mrf.mxu1 }
 0x17d   :  { %v907_v58 = vpop.f32.mrf.mxu0  ;;  %v1574_v25 = vmul.f32 %v1098_v4, %v1098_v4  ;;  %v1528_v30 = vadd.f32 %v1527_v37, %v1098_v4 }
 0x17e   :  { %v1100_v43 = vpop.f32.mrf.mxu1 }
 0x17f   :  { %v1101_v44 = vadd.f32 %v1100_v43, %v907_v58  ;;  %v909_v45 = vpop.f32.mrf.mxu0  ;;  %v1613_v23 = vadd.f32 %v1612_v61, %v1574_v25 }
 0x180   :  { %v1102_v5 = vpop.f32.mrf.mxu1 }
 0x181   :  { %v1910_v53 = vpack.c.bf16 %v1101_v44, %v1098_v4  ;;  %v912_v0 = vpop.f32.mrf.mxu0  ;;  %v1575_v31 = vmul.f32 %v1101_v44, %v1101_v44  ;;  %v1529_v48 = vadd.f32 %v1528_v30, %v1101_v44 }
 0x182   :  { %v1105_v56 = vpop.f32.mrf.mxu1 }
 0x183   :  { %1946 = vst [vmem:[%s2690_s2 + $0x78] sm:$0xff] %v1910_v53   ;;  %v914_v12 = vpop.f32.mrf.mxu0  ;;  %v1106_v7 = vadd.f32 %v1105_v56, %v912_v0  ;;  %v1614_v50 = vadd.f32 %v1613_v23, %v1575_v31 }
 0x184   :  { %v1107_v1 = vpop.f32.mrf.mxu1 }
 0x185   :  { %v915_v2 = vpop.f32.mrf.mxu0  ;;  %v1576_v49 = vmul.f32 %v1106_v7, %v1106_v7  ;;  %v1530_v40 = vadd.f32 %v1529_v48, %v1106_v7 }
 0x186   :  { %v1108_v6 = vpop.f32.mrf.mxu1 }
 0x187   :  { %v1109_v8 = vadd.f32 %v1108_v6, %v915_v2  ;;  %v917_v26 = vpop.f32.mrf.mxu0  ;;  %v1615_v42 = vadd.f32 %v1614_v50, %v1576_v49 }
 0x188   :  { %v1110_v11 = vpop.f32.mrf.mxu1 }
 0x189   :  { %v1915_v27 = vpack.c.bf16 %v1109_v8, %v1106_v7  ;;  %v920_v17 = vpop.f32.mrf.mxu0  ;;  %v1577_v58 = vmul.f32 %v1109_v8, %v1109_v8  ;;  %v1531_v43 = vadd.f32 %v1530_v40, %v1109_v8 }
 0x18a   :  { %v1113_v19 = vpop.f32.mrf.mxu1 }
 0x18b   :  { %1947 = vst [vmem:[%s2690_s2 + $0x80] sm:$0xff] %v1915_v27   ;;  %v922_v60 = vpop.f32.mrf.mxu0  ;;  %v1114_v38 = vadd.f32 %v1113_v19, %v920_v17  ;;  %v1616_v44 = vadd.f32 %v1615_v42, %v1577_v58 }
 0x18c   :  { %v1115_v22 = vpop.f32.mrf.mxu1 }
 0x18d   :  { %v923_v28 = vpop.f32.mrf.mxu0  ;;  %v1578_v63 = vmul.f32 %v1114_v38, %v1114_v38  ;;  %v1532_v47 = vadd.f32 %v1531_v43, %v1114_v38 }
 0x18e   :  { %v1116_v29 = vpop.f32.mrf.mxu1 }
 0x18f   :  { %v1117_v32 = vadd.f32 %v1116_v29, %v923_v28  ;;  %v925_v33 = vpop.f32.mrf.mxu0  ;;  %v1617_v54 = vadd.f32 %v1616_v44, %v1578_v63 }
 0x190   :  { %v1118_v34 = vpop.f32.mrf.mxu1 }
 0x191   :  { %v1920_v36 = vpack.c.bf16 %v1117_v32, %v1114_v38  ;;  %v928_v52 = vpop.f32.mrf.mxu0  ;;  %v1579_v5 = vmul.f32 %v1117_v32, %v1117_v32  ;;  %v1533_v55 = vadd.f32 %v1532_v47, %v1117_v32 }
 0x192   :  { %v1121_v39 = vpop.f32.mrf.mxu1 }
 0x193   :  { %1948 = vst [vmem:[%s2690_s2 + $0x88] sm:$0xff] %v1920_v36   ;;  %v930_v24 = vpop.f32.mrf.mxu0  ;;  %v1122_v4 = vadd.f32 %v1121_v39, %v928_v52  ;;  %v1618_v62 = vadd.f32 %v1617_v54, %v1579_v5 }
 0x194   :  { %v1123_v41 = vpop.f32.mrf.mxu1 }
 0x195   :  { %v931_v45 = vpop.f32.mrf.mxu0  ;;  %v1580_v56 = vmul.f32 %v1122_v4, %v1122_v4  ;;  %v1534_v1 = vadd.f32 %v1533_v55, %v1122_v4 }
 0x196   :  { %v1124_v46 = vpop.f32.mrf.mxu1 }
 0x197   :  { %v1125_v51 = vadd.f32 %v1124_v46, %v931_v45  ;;  %v933_v53 = vpop.f32.mrf.mxu0  ;;  %v1619_v6 = vadd.f32 %v1618_v62, %v1580_v56 }
 0x198   :  { %v1126_v0 = vpop.f32.mrf.mxu1 }
 0x199   :  { %v1925_v59 = vpack.c.bf16 %v1125_v51, %v1122_v4  ;;  %v936_v12 = vpop.f32.mrf.mxu0  ;;  %v1581_v13 = vmul.f32 %v1125_v51, %v1125_v51  ;;  %v1535_v57 = vadd.f32 %v1534_v1, %v1125_v51 }
 0x19a   :  { %v1129_v15 = vpop.f32.mrf.mxu1 }
 0x19b   :  { %1949 = vst [vmem:[%s2690_s2 + $0x90] sm:$0xff] %v1925_v59   ;;  %v1130_v2 = vadd.f32 %v1129_v15, %v936_v12  ;;  %v938_v3 = vpop.f32.mrf.mxu0  ;;  %v1620_v9 = vadd.f32 %v1619_v6, %v1581_v13 }
 0x19c   :  { %v1131_v16 = vpop.f32.mrf.mxu1 }
 0x19d   :  { %v1582_v7 = vmul.f32 %v1130_v2, %v1130_v2  ;;  %v939_v8 = vpop.f32.mrf.mxu0  ;;  %v1536_v10 = vadd.f32 %v1535_v57, %v1130_v2 }
 0x19e   :  { %v1132_v26 = vpop.f32.mrf.mxu1 }
 0x19f   :  { %v1133_v11 = vadd.f32 %v1132_v26, %v939_v8  ;;  %v941_v14 = vpop.f32.mrf.mxu0  ;;  %v1621_v17 = vadd.f32 %v1620_v9, %v1582_v7 }
 0x1a0   :  { %v1134_v27 = vpop.f32.mrf.mxu1 }
 0x1a1   :  { %v1930_v18 = vpack.c.bf16 %v1133_v11, %v1130_v2  ;;  %v1537_v35 = vadd.f32 %v1536_v10, %v1133_v11  ;;  %v1583_v19 = vmul.f32 %v1133_v11, %v1133_v11 }
 0x1a3   :  { %1950 = vst [vmem:[%s2690_s2 + $0x98] sm:$0xff] %v1930_v18   ;;  %v1538_v20 = vrot.slane %v1537_v35, 4  ;;  %v1622_v60 = vadd.f32 %v1621_v17, %v1583_v19 }
 0x1a5   :  { %v1539_v21 = vadd.f32 %v1538_v20, %v1537_v35  ;;  %v1623_v22 = vrot.slane %v1622_v60, 4 }
 0x1a7   :  { %v1540_v37 = vrot.slane %v1539_v21, 2  ;;  %v1624_v25 = vadd.f32 %v1623_v22, %v1622_v60 }
 0x1a9   :  { %v1541_v28 = vadd.f32 %v1540_v37, %v1539_v21  ;;  %v1625_v61 = vrot.slane %v1624_v25, 2 }
 0x1ab   :  { %v1542_v29 = vrot.slane %v1541_v28, 1  ;;  %v1626_v30 = vadd.f32 %v1625_v61, %v1624_v25 }
 0x1ad   :  { %v1627_v31 = vrot.slane %v1626_v30, 1  ;;  %v1543_v38 = vadd.f32 %v1542_v29, %v1541_v28 }
 0x1af   :  { %v1628_v32 = vadd.f32 %v1627_v31, %v1626_v30 }
 0x1b1   :  { %v1630_v33 = vsel %vm1629_vm0, %v1543_v38, %v1628_v32 }
 0x1b2   :  { %1631 = vst [vmem:[%s2691_s3] sm:$0x3] %v1630_v33 }

// kernel: tile.23
= control target key start
LH: loop header
LB: loop body
LE: loop exit
PB: predicated region body
PF: predicated region fallthrough
CT: control target
= control target key end

     0   :  { %s64_s0 = inlined_call_operand.vmem [shape: f32[16], index: 0, kind: input, shape index: {}]   ;;  %s65_s1 = inlined_call_operand.vmem [shape: f32[64,16], index: 1, kind: output, shape index: {}]  }
   0x1   :  { %v4_v0 = vld [vmem:[%s64_s0] ss:$0 sm:$0xff] }
   0x2   :  { %5 = vst [vmem:[%s65_s1] sm:$0xff] %v4_v0  ;;  %20 = vst [vmem:[%s65_s1 + $0x8] sm:$0xff] %v4_v0 }
   0x3   :  { %21 = vst [vmem:[%s65_s1 + $0x10] sm:$0xff] %v4_v0  ;;  %22 = vst [vmem:[%s65_s1 + $0x18] sm:$0xff] %v4_v0 }
   0x4   :  { %23 = vst [vmem:[%s65_s1 + $0x20] sm:$0xff] %v4_v0  ;;  %24 = vst [vmem:[%s65_s1 + $0x28] sm:$0xff] %v4_v0 }
   0x5   :  { %25 = vst [vmem:[%s65_s1 + $0x30] sm:$0xff] %v4_v0  ;;  %26 = vst [vmem:[%s65_s1 + $0x38] sm:$0xff] %v4_v0 }

// kernel: tile.24
= control target key start
LH: loop header
LB: loop body
LE: loop exit
PB: predicated region body
PF: predicated region fallthrough
CT: control target
= control target key end

     0   :  { %vm4_vm0 = vcmask 1047556   ;;  %s176_s16 = smov 112   ;;  %s177_s19 = smov 80   ;;  %vm6_vm1 = vcmask 130048   ;;  %vm17_vm2 = vcmask 1048448   ;;  %vm28_vm3 = vcmask 917248   ;;  %s273_s0 = inlined_call_operand.vmem [shape: f32[64,16], index: 0, kind: input, shape index: {}]   ;;  %s274_s1 = inlined_call_operand.vmem [shape: f32[1,1024], index: 1, kind: output, shape index: {}]  }
   0x1   :  { %v148_v0 = vld [vmem:[%s273_s0 + $0x7] ss:$8 sm:$0xf]   ;;  %v152_v2 = vld [vmem:[%s273_s0 + $0x5] ss:$8 sm:$0xf]  }
   0x2   :  { %v149_v1 = vld [vmem:[%s273_s0 + $0x7] ss:$8 sm:$0xf0]   ;;  %v153_v4 = vld [vmem:[%s273_s0 + $0x5] ss:$8 sm:$0xf0]  }
   0x3   :  { %v14_v3 = vsel %vm4_vm0, %v149_v1, %v148_v0  ;;  %v150_v5 = vld [vmem:[%s273_s0 + $0x6] ss:$8 sm:$0xf]   ;;  %v36_v6 = vsel %vm4_vm0, %v153_v4, %v152_v2  ;;  %v154_v9 = vld [vmem:[%s273_s0 + $0x4] ss:$8 sm:$0xf]  }
   0x4   :  { %15 = vrot.lane.b32.xlu0 %v14_v3, %s176_s16  ;;  %v151_v7 = vld [vmem:[%s273_s0 + $0x6] ss:$8 sm:$0xf0]   ;;  %37 = vrot.lane.b32.xlu1 %v36_v6, %s177_s19  ;;  %v155_v10 = vld [vmem:[%s273_s0 + $0x4] ss:$8 sm:$0xf0]  }
   0x5   :  { %v25_v8 = vsel %vm4_vm0, %v151_v7, %v150_v5  ;;  %v47_v11 = vsel %vm4_vm0, %v155_v10, %v154_v9  ;;  %v156_v12 = vld [vmem:[%s273_s0 + $0x3] ss:$8 sm:$0xf]   ;;  %v158_v14 = vld [vmem:[%s273_s0 + $0x2] ss:$8 sm:$0xf]  }
   0x6   :  { %v157_v13 = vld [vmem:[%s273_s0 + $0x3] ss:$8 sm:$0xf0]   ;;  %s178_s30 = smov 96   ;;  %s179_s4 = smov 64   ;;  %vm39_vm4 = vcmask 786048  }
   0x7   :  { %v159_v15 = vld [vmem:[%s273_s0 + $0x2] ss:$8 sm:$0xf0]   ;;  %v58_v16 = vsel %vm4_vm0, %v157_v13, %v156_v12  ;;  %v160_v17 = vld [vmem:[%s273_s0 + $0x1] ss:$8 sm:$0xf]  }
   0x8   :  { %26 = vrot.lane.b32.xlu0 %v25_v8, %s178_s30  ;;  %48 = vrot.lane.b32.xlu1 %v47_v11, %s179_s4  ;;  %v161_v18 = vld [vmem:[%s273_s0 + $0x1] ss:$8 sm:$0xf0]   ;;  %v69_v19 = vsel %vm4_vm0, %v159_v15, %v158_v14  ;;  %v2_v20 = vld [vmem:[%s273_s0] ss:$8 sm:$0xf]  }
   0x9   :  { %v3_v21 = vld [vmem:[%s273_s0] ss:$8 sm:$0xf0]   ;;  %s180_s0 = smov 48   ;;  %s181_s13 = smov 32   ;;  %v80_v23 = vsel %vm4_vm0, %v161_v18, %v160_v17  ;;  %vm50_vm5 = vcmask 654848  }
   0xa   :  { %v5_v22 = vsel %vm4_vm0, %v3_v21, %v2_v20  ;;  %s182_s14 = smov 16   ;;  %vm61_vm6 = vcmask 523648   ;;  %vm72_vm7 = vcmask 392448   ;;  %vm83_vm8 = vcmask 261248  }
   0xb   :  { %7 = vst.msk [vmem:[#allocation0] ss:$8 sm:$0xf] %vm6_vm1, %v5_v22   ;;  %8 = vst.msk [vmem:[#allocation0] ss:$8 sm:$0xf0] %vm6_vm1, %v5_v22  }
   0xc   :  { %59 = vrot.lane.b32.xlu0 %v58_v16, %s180_s0  ;;  %70 = vrot.lane.b32.xlu1 %v69_v19, %s181_s13 }
  0x10   :  { %81 = vrot.lane.b32.xlu0 %v80_v23, %s182_s14 }
  0x76   :  { %v16_v24 = vpop.permute.xlu0 %15   ;;  %v38_v25 = vpop.permute.xlu1 %37  }
  0x77   :  { %18 = vst.msk [vmem:[#allocation0] ss:$8 sm:$0xf] %vm17_vm2, %v16_v24   ;;  %19 = vst.msk [vmem:[#allocation0] ss:$8 sm:$0xf0] %vm17_vm2, %v16_v24  }
  0x7a   :  { %v27_v26 = vpop.permute.xlu0 %26   ;;  %v49_v27 = vpop.permute.xlu1 %48  }
  0x7b   :  { %29 = vst.msk [vmem:[#allocation0] ss:$8 sm:$0xf] %vm28_vm3, %v27_v26   ;;  %30 = vst.msk [vmem:[#allocation0] ss:$8 sm:$0xf0] %vm28_vm3, %v27_v26  }
  0x7c   :  { %40 = vst.msk [vmem:[#allocation0] ss:$8 sm:$0xf] %vm39_vm4, %v38_v25   ;;  %41 = vst.msk [vmem:[#allocation0] ss:$8 sm:$0xf0] %vm39_vm4, %v38_v25  }
  0x7d   :  { %51 = vst.msk [vmem:[#allocation0] ss:$8 sm:$0xf] %vm50_vm5, %v49_v27   ;;  %52 = vst.msk [vmem:[#allocation0] ss:$8 sm:$0xf0] %vm50_vm5, %v49_v27  }
  0x7e   :  { %v60_v28 = vpop.permute.xlu0 %59   ;;  %v71_v29 = vpop.permute.xlu1 %70  }
  0x7f   :  { %62 = vst.msk [vmem:[#allocation0] ss:$8 sm:$0xf] %vm61_vm6, %v60_v28   ;;  %63 = vst.msk [vmem:[#allocation0] ss:$8 sm:$0xf0] %vm61_vm6, %v60_v28  }
  0x80   :  { %73 = vst.msk [vmem:[#allocation0] ss:$8 sm:$0xf] %vm72_vm7, %v71_v29   ;;  %74 = vst.msk [vmem:[#allocation0] ss:$8 sm:$0xf0] %vm72_vm7, %v71_v29  }
  0x82   :  { %v82_v30 = vpop.permute.xlu0 %81  }
  0x83   :  { %84 = vst.msk [vmem:[#allocation0] ss:$8 sm:$0xf] %vm83_vm8, %v82_v30   ;;  %85 = vst.msk [vmem:[#allocation0] ss:$8 sm:$0xf0] %vm83_vm8, %v82_v30  }
  0x8a   :  { %v90_v31 = vld [vmem:[#allocation0] sm:$0x1]  ;;  %v95_v32 = vld [vmem:[#allocation0 + $0x8] sm:$0x1]  ;;  %v101_v33 = vld [vmem:[#allocation0 + $0x10] sm:$0x1] }
  0x8b   :  { %93 = vst [vmem:[%s274_s1] sm:$0x1] %v90_v31  ;;  %162 = vst [vmem:[%s274_s1 + $0x1] sm:$0x1] %v95_v32  ;;  %v108_v34 = vld [vmem:[#allocation0 + $0x18] sm:$0x1] }
  0x8c   :  { %163 = vst [vmem:[%s274_s1 + $0x2] sm:$0x1] %v101_v33  ;;  %v115_v35 = vld [vmem:[#allocation0 + $0x20] sm:$0x1]  ;;  %v122_v36 = vld [vmem:[#allocation0 + $0x28] sm:$0x1] }
  0x8d   :  { %164 = vst [vmem:[%s274_s1 + $0x3] sm:$0x1] %v108_v34  ;;  %165 = vst [vmem:[%s274_s1 + $0x4] sm:$0x1] %v115_v35  ;;  %v129_v37 = vld [vmem:[#allocation0 + $0x30] sm:$0x1] }
  0x8e   :  { %166 = vst [vmem:[%s274_s1 + $0x5] sm:$0x1] %v122_v36  ;;  %v136_v38 = vld [vmem:[#allocation0 + $0x38] sm:$0x1]  ;;  %167 = vst [vmem:[%s274_s1 + $0x6] sm:$0x1] %v129_v37 }
  0x8f   :  { %168 = vst [vmem:[%s274_s1 + $0x7] sm:$0x1] %v136_v38 }

// kernel: patch_video_discriminator_forward.6
= control target key start
LH: loop header
LB: loop body
LE: loop exit
PB: predicated region body
PF: predicated region fallthrough
CT: control target
= control target key end

     0   :  { %v106_v22 = vlaneseq  ;;  %s2265_s1 = inlined_call_operand.vmem [shape: bf16[1024,128], index: 1, kind: input, shape index: {}]   ;;  %s2266_s0 = inlined_call_operand.vmem [shape: bf16[56,1024], index: 0, kind: input, shape index: {}]   ;;  %s2267_s2 = inlined_call_operand.vmem [shape: f32[1,1024], index: 2, kind: input, shape index: {}]   ;;  %s2268_s3 = inlined_call_operand.vmem [shape: f32[1,1024], index: 3, kind: input, shape index: {}]   ;;  %s2269_s4 = inlined_call_operand.vmem [shape: bf16[56,128], index: 4, kind: output, shape index: {0}]   ;;  %s2270_s5 = inlined_call_operand.vmem [shape: f32[1,2,128], index: 5, kind: output, shape index: {1}]  }
   0x1   :  { %v1632_v0 = vld [vmem:[%s2265_s1 + $0x78] sm:$0xff]   ;;  %v1636_v4 = vld [vmem:[%s2265_s1 + $0x70] sm:$0xff]   ;;  %v1640_v8 = vld [vmem:[%s2265_s1 + $0x68] sm:$0xff]  }
   0x2   :  { %v1633_v1 = vld [vmem:[%s2265_s1 + $0xf8] sm:$0xff]   ;;  %1472 = vmatprep.subr.bf16.mxu0 %v1632_v0  ;;  %v1637_v5 = vld [vmem:[%s2265_s1 + $0xf0] sm:$0xff]   ;;  %v1641_v9 = vld [vmem:[%s2265_s1 + $0xe8] sm:$0xff]   ;;  %v1804_v27 = vshrl.u32 %v106_v22, 7 }
   0x3   :  { %v1634_v2 = vld [vmem:[%s2265_s1 + $0x38] sm:$0xff]   ;;  %1512 = vmatprep.subr.bf16.mxu1 %v1633_v1  ;;  %v1638_v6 = vld [vmem:[%s2265_s1 + $0x30] sm:$0xff]   ;;  %v1642_v10 = vld [vmem:[%s2265_s1 + $0x28] sm:$0xff]  }
   0x4   :  { %v1635_v3 = vld [vmem:[%s2265_s1 + $0xb8] sm:$0xff]   ;;  %1473 = vmatpush3.bf16.msra.mxu0 %v1634_v2  ;;  %v1639_v7 = vld [vmem:[%s2265_s1 + $0xb0] sm:$0xff]   ;;  %v1643_v11 = vld [vmem:[%s2265_s1 + $0xa8] sm:$0xff]   ;;  %v112_v32 = vsub.s32 1, %v1804_v27  ;;  %v120_v34 = vsub.s32 3, %v1804_v27  ;;  %v108_v36 = vsub.s32 0, %v1804_v27 }
   0x5   :  { %1513 = vmatpush3.bf16.msra.mxu1 %v1635_v3  ;;  %1474 = vmatprep.subr.bf16.mxu0 %v1636_v4  ;;  %v1644_v12 = vld [vmem:[%s2265_s1 + $0x60] sm:$0xff]   ;;  %v1648_v16 = vld [vmem:[%s2265_s1 + $0x58] sm:$0xff]   ;;  %v1652_v20 = vld [vmem:[%s2265_s1 + $0x50] sm:$0xff]   ;;  %v116_v40 = vsub.s32 2, %v1804_v27  ;;  %v124_v41 = vsub.s32 4, %v1804_v27  ;;  %v128_v42 = vsub.s32 5, %v1804_v27 }
   0x6   :  { %1514 = vmatprep.subr.bf16.mxu1 %v1637_v5  ;;  %v1645_v13 = vld [vmem:[%s2265_s1 + $0xe0] sm:$0xff]   ;;  %v1649_v17 = vld [vmem:[%s2265_s1 + $0xd8] sm:$0xff]   ;;  %v1653_v21 = vld [vmem:[%s2265_s1 + $0xd0] sm:$0xff]  }
   0x7   :  { %v1646_v14 = vld [vmem:[%s2265_s1 + $0x20] sm:$0xff]   ;;  %v1650_v18 = vld [vmem:[%s2265_s1 + $0x18] sm:$0xff]   ;;  %v1654_v23 = vld [vmem:[%s2265_s1 + $0x10] sm:$0xff]  }
   0x8   :  { %1475 = vmatpush3.bf16.msra.mxu0 %v1638_v6  ;;  %v1647_v15 = vld [vmem:[%s2265_s1 + $0xa0] sm:$0xff]   ;;  %v1651_v19 = vld [vmem:[%s2265_s1 + $0x98] sm:$0xff]   ;;  %v1655_v24 = vld [vmem:[%s2265_s1 + $0x90] sm:$0xff]  }
   0x9   :  { %1515 = vmatpush3.bf16.msra.mxu1 %v1639_v7  ;;  %1476 = vmatprep.subr.bf16.mxu0 %v1640_v8  ;;  %v1656_v25 = vld [vmem:[%s2265_s1 + $0x48] sm:$0xff]   ;;  %v1660_v30 = vld [vmem:[%s2265_s1 + $0x40] sm:$0xff]   ;;  %v1664_v54 = vld [vmem:[%s2265_s1 + $0x178] sm:$0xff]  }
   0xa   :  { %1516 = vmatprep.subr.bf16.mxu1 %v1641_v9  ;;  %v1657_v26 = vld [vmem:[%s2265_s1 + $0xc8] sm:$0xff]   ;;  %v1661_v31 = vld [vmem:[%s2265_s1 + $0xc0] sm:$0xff]   ;;  %v1665_v59 = vld [vmem:[%s2265_s1 + $0x1f8] sm:$0xff]  }
   0xb   :  { %v1658_v28 = vld [vmem:[%s2265_s1 + $0x8] sm:$0xff]   ;;  %v1662_v33 = vld [vmem:[%s2265_s1] sm:$0xff]  }
   0xc   :  { %1477 = vmatpush3.bf16.msra.mxu0 %v1642_v10  ;;  %v1659_v29 = vld [vmem:[%s2265_s1 + $0x88] sm:$0xff]   ;;  %v1663_v35 = vld [vmem:[%s2265_s1 + $0x80] sm:$0xff]  }
   0xd   :  { %1517 = vmatpush3.bf16.msra.mxu1 %v1643_v11  ;;  %1478 = vmatprep.subr.bf16.mxu0 %v1644_v12  ;;  %v20_v37 = vld [vmem:[%s2266_s0] sm:$0xff]  ;;  %v21_v48 = vld [vmem:[%s2266_s0 + $0x8] sm:$0xff] }
   0xe   :  { %1518 = vmatprep.subr.bf16.mxu1 %v1645_v13  ;;  %v24_v38 = vld [vmem:[%s2266_s0 + $0x20] sm:$0xff]  ;;  %v48_v43 = vunpack.c.l.bf16 %v20_v37  ;;  %v49_v44 = vunpack.c.h.bf16 %v20_v37  ;;  %v25_v49 = vld [vmem:[%s2266_s0 + $0x28] sm:$0xff]  ;;  %v50_v52 = vunpack.c.l.bf16 %v21_v48  ;;  %v51_v53 = vunpack.c.h.bf16 %v21_v48  ;;  %v1668_v48 = vld [vmem:[%s2265_s1 + $0x170] sm:$0xff]  }
   0xf   :  { %v1836_v39 = vld [vmem:[%s2267_s2] sm:$0xff]  ;;  %v56_v45 = vunpack.c.l.bf16 %v24_v38  ;;  %v57_v46 = vunpack.c.h.bf16 %v24_v38  ;;  %v58_v55 = vunpack.c.l.bf16 %v25_v49  ;;  %v59_v56 = vunpack.c.h.bf16 %v25_v49  ;;  %v1915_v37 = vld [vmem:[%s2266_s0 + $0x68] sm:$0xff] }
  0x10   :  { %1479 = vmatpush3.bf16.msra.mxu0 %v1646_v14  ;;  %v1844_v47 = vld [vmem:[%s2268_s3] sm:$0xff]  ;;  %v1853_v50 = vrot.slane %v1836_v39, %v112_v32  ;;  %v1862_v57 = vrot.slane %v1836_v39, %v120_v34  ;;  %v1873_v62 = vrot.slane %v1836_v39, %v108_v36  ;;  %v1881_v2 = vrot.slane %v1836_v39, %v116_v40 }
  0x11   :  { %1519 = vmatpush3.bf16.msra.mxu1 %v1647_v15  ;;  %1480 = vmatprep.subr.bf16.mxu0 %v1648_v16  ;;  %v1856_v51 = vrot.slane %v1844_v47, %v112_v32  ;;  %v1865_v58 = vrot.slane %v1844_v47, %v120_v34  ;;  %v1876_v63 = vrot.slane %v1844_v47, %v108_v36  ;;  %v1666_v32 = vld [vmem:[%s2265_s1 + $0x138] sm:$0xff]  }
  0x12   :  { %1520 = vmatprep.subr.bf16.mxu1 %v1649_v17  ;;  %v147_v60 = vmul.f32 %v1853_v50, %v49_v44  ;;  %v155_v61 = vmul.f32 %v1853_v50, %v57_v46  ;;  %v149_v0 = vmul.f32 %v1862_v57, %v51_v53  ;;  %v157_v1 = vmul.f32 %v1862_v57, %v59_v56 }
  0x13   :  { %v1884_v3 = vrot.slane %v1844_v47, %v116_v40  ;;  %v146_v6 = vmul.f32 %v1873_v62, %v48_v43  ;;  %v154_v7 = vmul.f32 %v1873_v62, %v56_v45  ;;  %v148_v10 = vmul.f32 %v1881_v2, %v50_v52  ;;  %v1667_v45 = vld [vmem:[%s2265_s1 + $0x1b8] sm:$0xff]  }
  0x14   :  { %1481 = vmatpush3.bf16.msra.mxu0 %v1650_v18  ;;  %v245_v4 = vadd.f32 %v1856_v51, %v147_v60  ;;  %v253_v5 = vadd.f32 %v1856_v51, %v155_v61  ;;  %v247_v8 = vadd.f32 %v1865_v58, %v149_v0  ;;  %v255_v9 = vadd.f32 %v1865_v58, %v157_v1  ;;  %v1670_v0 = vld [vmem:[%s2265_s1 + $0x130] sm:$0xff]  }
  0x15   :  { %1521 = vmatpush3.bf16.msra.mxu1 %v1651_v19  ;;  %1482 = vmatprep.subr.bf16.mxu0 %v1652_v20  ;;  %v156_v11 = vmul.f32 %v1881_v2, %v58_v55  ;;  %v244_v18 = vadd.f32 %v1876_v63, %v146_v6  ;;  %v252_v19 = vadd.f32 %v1876_v63, %v154_v7  ;;  %v75_v53 = vunpack.c.h.bf16 %v1915_v37  ;;  %v1669_v55 = vld [vmem:[%s2265_s1 + $0x1f0] sm:$0xff]  }
  0x16   :  { %1522 = vmatprep.subr.bf16.mxu1 %v1653_v21  ;;  %vm301_vm0 = vcmp.ge.f32.partialorder %v245_v4, 0.0  ;;  %vm309_vm1 = vcmp.ge.f32.partialorder %v253_v5, 0.0  ;;  %v357_v12 = vmul.f32 0.2, %v245_v4  ;;  %v365_v13 = vmul.f32 0.2, %v253_v5 }
  0x17   :  { %vm303_vm2 = vcmp.ge.f32.partialorder %v247_v8, 0.0  ;;  %vm311_vm3 = vcmp.ge.f32.partialorder %v255_v9, 0.0  ;;  %v359_v14 = vmul.f32 0.2, %v247_v8  ;;  %v367_v15 = vmul.f32 0.2, %v255_v9 }
  0x18   :  { %1483 = vmatpush3.bf16.msra.mxu0 %v1654_v23  ;;  %v413_v16 = vsel %vm301_vm0, %v245_v4, %v357_v12  ;;  %v421_v17 = vsel %vm309_vm1, %v253_v5, %v365_v13  ;;  %v246_v23 = vadd.f32 %v1884_v3, %v148_v10  ;;  %vm300_vm4 = vcmp.ge.f32.partialorder %v244_v18, 0.0  ;;  %v1671_v6 = vld [vmem:[%s2265_s1 + $0x1b0] sm:$0xff]  }
  0x19   :  { %1523 = vmatpush3.bf16.msra.mxu1 %v1655_v24  ;;  %1484 = vmatprep.subr.bf16.mxu0 %v1656_v25  ;;  %v469_v20 = vpack.c.bf16 %v421_v17, %v413_v16  ;;  %v415_v21 = vsel %vm303_vm2, %v247_v8, %v359_v14  ;;  %v423_v22 = vsel %vm311_vm3, %v255_v9, %v367_v15  ;;  %vm308_vm5 = vcmp.ge.f32.partialorder %v252_v19, 0.0  ;;  %v1673_v17 = vld [vmem:[%s2265_s1 + $0x1e8] sm:$0xff]  }
  0x1a   :  { %1524 = vmatprep.subr.bf16.mxu1 %v1657_v26  ;;  %v471_v24 = vpack.c.bf16 %v423_v22, %v415_v21  ;;  %v356_v25 = vmul.f32 0.2, %v244_v18  ;;  %v28_v26 = vld [vmem:[%s2266_s0 + $0x40] sm:$0xff]  ;;  %vm302_vm6 = vcmp.ge.f32.partialorder %v246_v23, 0.0  ;;  %v173_v5 = vmul.f32 %v1862_v57, %v75_v53  ;;  %v1674_v22 = vld [vmem:[%s2265_s1 + $0x128] sm:$0xff]  }
  0x1b   :  { %1044 = vmatprep.mubr.bf16.mxu0 %v469_v20  ;;  %v74_v21 = vunpack.c.l.bf16 %v1915_v37  ;;  %v40_v37 = vld [vmem:[%s2266_s0 + $0xa0] sm:$0xff] }
  0x1c   :  { %1485 = vmatpush3.bf16.msra.mxu0 %v1658_v28  ;;  %v32_v28 = vld [vmem:[%s2266_s0 + $0x60] sm:$0xff]  ;;  %1108 = vmatprep.mubr.bf16.mxu1 %v471_v24  ;;  %v412_v34 = vsel %vm300_vm4, %v244_v18, %v356_v25  ;;  %v271_v14 = vadd.f32 %v1865_v58, %v173_v5 }
  0x1d   :  { %1525 = vmatpush3.bf16.msra.mxu1 %v1659_v29  ;;  %1486 = vmatprep.subr.bf16.mxu0 %v1660_v30  ;;  %v364_v29 = vmul.f32 0.2, %v252_v19  ;;  %v254_v30 = vadd.f32 %v1884_v3, %v156_v11  ;;  %v73_v36 = vunpack.c.h.bf16 %v32_v28  ;;  %v72_v60 = vunpack.c.l.bf16 %v32_v28  ;;  %v1672_v11 = vld [vmem:[%s2265_s1 + $0x168] sm:$0xff]   ;;  %v1676_v28 = vld [vmem:[%s2265_s1 + $0x160] sm:$0xff]  }
  0x1e   :  { %1526 = vmatprep.subr.bf16.mxu1 %v1661_v31  ;;  %v358_v31 = vmul.f32 0.2, %v246_v23  ;;  %vm327_vm11 = vcmp.ge.f32.partialorder %v271_v14, 0.0  ;;  %v383_v24 = vmul.f32 0.2, %v271_v14 }
  0x1f   :  { %v420_v40 = vsel %vm308_vm5, %v252_v19, %v364_v29  ;;  %vm310_vm7 = vcmp.ge.f32.partialorder %v254_v30, 0.0  ;;  %v366_v43 = vmul.f32 0.2, %v254_v30  ;;  %v171_v52 = vmul.f32 %v1853_v50, %v73_v36  ;;  %v36_v36 = vld [vmem:[%s2266_s0 + $0x80] sm:$0xff] }
  0x20   :  { %1487 = vmatpush3.bf16.msra.mxu0 %v1662_v33  ;;  %v1910_v33 = vld [vmem:[%s2266_s0 + $0x48] sm:$0xff]  ;;  %v414_v44 = vsel %vm302_vm6, %v246_v23, %v358_v31  ;;  %v468_v46 = vpack.c.bf16 %v420_v40, %v412_v34  ;;  %v170_v9 = vmul.f32 %v1873_v62, %v72_v60  ;;  %v1677_v31 = vld [vmem:[%s2265_s1 + $0x1e0] sm:$0xff]   ;;  %v172_v34 = vmul.f32 %v1881_v2, %v74_v21 }
  0x21   :  { %1527 = vmatpush3.bf16.msra.mxu1 %v1663_v35  ;;  %1552 = vmatprep.subr.bf16.mxu0 %v1664_v54  ;;  %v65_v35 = vunpack.c.h.bf16 %v28_v26  ;;  %v67_v38 = vunpack.c.h.bf16 %v1910_v33  ;;  %v422_v54 = vsel %vm310_vm7, %v254_v30, %v366_v43  ;;  %v269_v4 = vadd.f32 %v1856_v51, %v171_v52 }
  0x22   :  { %1592 = vmatprep.subr.bf16.mxu1 %v1665_v59  ;;  %v64_v59 = vunpack.c.l.bf16 %v28_v26  ;;  %v470_v61 = vpack.c.bf16 %v422_v54, %v414_v44  ;;  %v66_v10 = vunpack.c.l.bf16 %v1910_v33  ;;  %v268_v20 = vadd.f32 %v1876_v63, %v170_v9  ;;  %v1675_v26 = vld [vmem:[%s2265_s1 + $0x1a8] sm:$0xff]   ;;  %v1679_v54 = vld [vmem:[%s2265_s1 + $0x1a0] sm:$0xff]  }
  0x23   :  { %v163_v49 = vmul.f32 %v1853_v50, %v65_v35  ;;  %v165_v56 = vmul.f32 %v1862_v57, %v67_v38  ;;  %1045 = vmatmul.mubr.bf16.vlgmr.msra.gmra.mxu0 %v468_v46  ;;  %vm325_vm9 = vcmp.ge.f32.partialorder %v269_v4, 0.0  ;;  %v381_v13 = vmul.f32 0.2, %v269_v4  ;;  %v1678_v35 = vld [vmem:[%s2265_s1 + $0x120] sm:$0xff]   ;;  %v1984_v46 = vld [vmem:[%s2266_s0 + $0x88] sm:$0xff] }
  0x24   :  { %1553 = vmatpush3.bf16.msra.mxu0 %v1666_v32  ;;  %v162_v8 = vmul.f32 %v1873_v62, %v64_v59  ;;  %1109 = vmatmul.mubr.bf16.vlgmr.msra.gmra.mxu1 %v470_v61  ;;  %vm324_vm13 = vcmp.ge.f32.partialorder %v268_v20, 0.0  ;;  %v380_v30 = vmul.f32 0.2, %v268_v20  ;;  %v439_v32 = vsel %vm327_vm11, %v271_v14, %v383_v24  ;;  %v1685_v24 = vld [vmem:[%s2265_s1 + $0x1d0] sm:$0xff]  }
  0x25   :  { %v261_v1 = vadd.f32 %v1856_v51, %v163_v49  ;;  %v263_v7 = vadd.f32 %v1865_v58, %v165_v56  ;;  %1554 = vmatprep.subr.bf16.mxu0 %v1668_v48  ;;  %1593 = vmatpush3.bf16.msra.mxu1 %v1667_v45  ;;  %v437_v19 = vsel %vm325_vm9, %v269_v4, %v381_v13  ;;  %v132_v38 = vsub.s32 6, %v1804_v27  ;;  %v1989_v48 = vld [vmem:[%s2266_s0 + $0xa8] sm:$0xff]  ;;  %v1680_v56 = vld [vmem:[%s2265_s1 + $0x158] sm:$0xff]  }
  0x26   :  { %v260_v16 = vadd.f32 %v1876_v63, %v162_v8  ;;  %1594 = vmatprep.subr.bf16.mxu1 %v1669_v55  ;;  %v164_v33 = vmul.f32 %v1881_v2, %v66_v10  ;;  %v436_v44 = vsel %vm324_vm13, %v268_v20, %v380_v30  ;;  %v81_v45 = vunpack.c.h.bf16 %v36_v36  ;;  %v1682_v10 = vld [vmem:[%s2265_s1 + $0x118] sm:$0xff]  }
  0x27   :  { %vm317_vm8 = vcmp.ge.f32.partialorder %v261_v1, 0.0  ;;  %v373_v12 = vmul.f32 0.2, %v261_v1  ;;  %vm319_vm10 = vcmp.ge.f32.partialorder %v263_v7, 0.0  ;;  %v375_v15 = vmul.f32 0.2, %v263_v7 }
  0x28   :  { %1555 = vmatpush3.bf16.msra.mxu0 %v1670_v0  ;;  %vm316_vm12 = vcmp.ge.f32.partialorder %v260_v16, 0.0  ;;  %v372_v29 = vmul.f32 0.2, %v260_v16  ;;  %v262_v52 = vadd.f32 %v1884_v3, %v164_v33  ;;  %v270_v53 = vadd.f32 %v1884_v3, %v172_v34 }
  0x29   :  { %v429_v18 = vsel %vm317_vm8, %v261_v1, %v373_v12  ;;  %v431_v25 = vsel %vm319_vm10, %v263_v7, %v375_v15  ;;  %1556 = vmatprep.subr.bf16.mxu0 %v1672_v11  ;;  %1595 = vmatpush3.bf16.msra.mxu1 %v1671_v6  ;;  %v89_v55 = vunpack.c.h.bf16 %v40_v37  ;;  %v179_v59 = vmul.f32 %v1853_v50, %v81_v45  ;;  %v1681_v1 = vld [vmem:[%s2265_s1 + $0x1d8] sm:$0xff]  }
  0x2a   :  { %v477_v23 = vpack.c.bf16 %v437_v19, %v429_v18  ;;  %v479_v40 = vpack.c.bf16 %v439_v32, %v431_v25  ;;  %v428_v43 = vsel %vm316_vm12, %v260_v16, %v372_v29  ;;  %1596 = vmatprep.subr.bf16.mxu1 %v1673_v17  ;;  %v83_v60 = vunpack.c.h.bf16 %v1984_v46  ;;  %v1683_v15 = vld [vmem:[%s2265_s1 + $0x198] sm:$0xff]   ;;  %v1684_v19 = vld [vmem:[%s2265_s1 + $0x150] sm:$0xff]  }
  0x2b   :  { %v476_v49 = vpack.c.bf16 %v436_v44, %v428_v43  ;;  %v91_v61 = vunpack.c.h.bf16 %v1989_v48  ;;  %v80_v0 = vunpack.c.l.bf16 %v36_v36  ;;  %vm318_vm14 = vcmp.ge.f32.partialorder %v262_v52, 0.0  ;;  %v1686_v29 = vld [vmem:[%s2265_s1 + $0x110] sm:$0xff]   ;;  %v44_v44 = vld [vmem:[%s2266_s0 + $0xc0] sm:$0xff] }
  0x2c   :  { %1052 = vmatprep.mubr.bf16.mxu0 %v477_v23  ;;  %1557 = vmatpush3.bf16.msra.mxu0 %v1674_v22  ;;  %vm326_vm15 = vcmp.ge.f32.partialorder %v270_v53, 0.0  ;;  %v374_v4 = vmul.f32 0.2, %v262_v52  ;;  %v382_v5 = vmul.f32 0.2, %v270_v53  ;;  %v187_v6 = vmul.f32 %v1853_v50, %v89_v55 }
  0x2d   :  { %1116 = vmatprep.mubr.bf16.mxu1 %v479_v40  ;;  %1558 = vmatprep.subr.bf16.mxu0 %v1676_v28  ;;  %v277_v7 = vadd.f32 %v1856_v51, %v179_v59  ;;  %v181_v8 = vmul.f32 %v1862_v57, %v83_v60  ;;  %v189_v9 = vmul.f32 %v1862_v57, %v91_v61  ;;  %v88_v13 = vunpack.c.l.bf16 %v40_v37 }
  0x2e   :  { %1053 = vmatmul.mubr.bf16.gmra.mxu0 %v476_v49  ;;  %1597 = vmatpush3.bf16.msra.mxu1 %v1675_v26  ;;  %v430_v11 = vsel %vm318_vm14, %v262_v52, %v374_v4  ;;  %v438_v12 = vsel %vm326_vm15, %v270_v53, %v382_v5  ;;  %v178_v14 = vmul.f32 %v1873_v62, %v80_v0  ;;  %v82_v28 = vunpack.c.l.bf16 %v1984_v46  ;;  %v45_v52 = vld [vmem:[%s2266_s0 + $0xc8] sm:$0xff] }
  0x2f   :  { %1598 = vmatprep.subr.bf16.mxu1 %v1677_v31  ;;  %v478_v16 = vpack.c.bf16 %v438_v12, %v430_v11  ;;  %v285_v17 = vadd.f32 %v1856_v51, %v187_v6  ;;  %vm333_vm0 = vcmp.ge.f32.partialorder %v277_v7, 0.0  ;;  %v389_v18 = vmul.f32 0.2, %v277_v7  ;;  %v1689_v0 = vld [vmem:[%s2265_s1 + $0x1c8] sm:$0xff]  }
  0x30   :  { %1559 = vmatpush3.bf16.msra.mxu0 %v1678_v35  ;;  %v279_v20 = vadd.f32 %v1865_v58, %v181_v8  ;;  %v287_v21 = vadd.f32 %v1865_v58, %v189_v9  ;;  %v186_v22 = vmul.f32 %v1873_v62, %v88_v13  ;;  %v276_v23 = vadd.f32 %v1876_v63, %v178_v14  ;;  %v1687_v35 = vld [vmem:[%s2265_s1 + $0x190] sm:$0xff]   ;;  %v1690_v8 = vld [vmem:[%s2265_s1 + $0x108] sm:$0xff]  }
  0x31   :  { %1560 = vmatprep.subr.bf16.mxu0 %v1680_v56  ;;  %1117 = vmatmul.mubr.bf16.gmra.mxu1 %v478_v16  ;;  %vm341_vm1 = vcmp.ge.f32.partialorder %v285_v17, 0.0  ;;  %v397_v25 = vmul.f32 0.2, %v285_v17  ;;  %v445_v26 = vsel %vm333_vm0, %v277_v7, %v389_v18  ;;  %v90_v43 = vunpack.c.l.bf16 %v1989_v48  ;;  %v1688_v56 = vld [vmem:[%s2265_s1 + $0x148] sm:$0xff]   ;;  %v1692_v16 = vld [vmem:[%s2265_s1 + $0x140] sm:$0xff]  }
  0x32   :  { %1599 = vmatpush3.bf16.msra.mxu1 %v1679_v54  ;;  %vm335_vm2 = vcmp.ge.f32.partialorder %v279_v20, 0.0  ;;  %vm343_vm3 = vcmp.ge.f32.partialorder %v287_v21, 0.0  ;;  %v391_v30 = vmul.f32 0.2, %v279_v20  ;;  %v399_v31 = vmul.f32 0.2, %v287_v21 }
  0x33   :  { %1600 = vmatprep.subr.bf16.mxu1 %v1681_v1  ;;  %v453_v32 = vsel %vm341_vm1, %v285_v17, %v397_v25  ;;  %v284_v33 = vadd.f32 %v1876_v63, %v186_v22  ;;  %vm332_vm4 = vcmp.ge.f32.partialorder %v276_v23, 0.0  ;;  %v388_v34 = vmul.f32 0.2, %v276_v23  ;;  %v1691_v12 = vld [vmem:[%s2265_s1 + $0x188] sm:$0xff]  }
  0x34   :  { %1561 = vmatpush3.bf16.msra.mxu0 %v1682_v10  ;;  %v485_v36 = vpack.c.bf16 %v453_v32, %v445_v26  ;;  %v447_v37 = vsel %vm335_vm2, %v279_v20, %v391_v30  ;;  %v455_v40 = vsel %vm343_vm3, %v287_v21, %v399_v31  ;;  %v180_v53 = vmul.f32 %v1881_v2, %v82_v28  ;;  %v22_v31 = vld [vmem:[%s2266_s0 + $0x10] sm:$0xff] }
  0x35   :  { %1562 = vmatprep.subr.bf16.mxu0 %v1684_v19  ;;  %v487_v45 = vpack.c.bf16 %v455_v40, %v447_v37  ;;  %vm340_vm5 = vcmp.ge.f32.partialorder %v284_v33, 0.0  ;;  %v396_v46 = vmul.f32 0.2, %v284_v33  ;;  %v444_v49 = vsel %vm332_vm4, %v276_v23, %v388_v34  ;;  %v1693_v19 = vld [vmem:[%s2265_s1 + $0x1c0] sm:$0xff]   ;;  %v26_v32 = vld [vmem:[%s2266_s0 + $0x30] sm:$0xff]  ;;  %v23_v37 = vld [vmem:[%s2266_s0 + $0x18] sm:$0xff] }
  0x36   :  { %1601 = vmatpush3.bf16.msra.mxu1 %v1683_v15  ;;  %1060 = vmatprep.mubr.bf16.mxu0 %v485_v36  ;;  %v188_v54 = vmul.f32 %v1881_v2, %v90_v43  ;;  %v97_v48 = vunpack.c.h.bf16 %v44_v44  ;;  %v99_v55 = vunpack.c.h.bf16 %v45_v52  ;;  %v96_v60 = vunpack.c.l.bf16 %v44_v44  ;;  %v27_v40 = vld [vmem:[%s2266_s0 + $0x38] sm:$0xff] }
  0x37   :  { %1602 = vmatprep.subr.bf16.mxu1 %v1685_v24  ;;  %1124 = vmatprep.mubr.bf16.mxu1 %v487_v45  ;;  %v452_v59 = vsel %vm340_vm5, %v284_v33, %v396_v46  ;;  %v98_v61 = vunpack.c.l.bf16 %v45_v52  ;;  %v2053_v1 = vrot.slane %v1836_v39, %v124_v41  ;;  %v278_v5 = vadd.f32 %v1884_v3, %v180_v53  ;;  %v1694_v24 = vld [vmem:[%s2265_s1 + $0x100] sm:$0xff]  }
  0x38   :  { %1563 = vmatpush3.bf16.msra.mxu0 %v1686_v29  ;;  %v484_v4 = vpack.c.bf16 %v452_v59, %v444_v49  ;;  %v286_v6 = vadd.f32 %v1884_v3, %v188_v54  ;;  %v195_v7 = vmul.f32 %v1853_v50, %v97_v48  ;;  %v197_v9 = vmul.f32 %v1862_v57, %v99_v55 }
  0x39   :  { %v194_v10 = vmul.f32 %v1873_v62, %v96_v60  ;;  %v196_v11 = vmul.f32 %v1881_v2, %v98_v61  ;;  %1564 = vmatprep.subr.bf16.mxu0 %v1688_v56  ;;  %v136_v13 = vsub.s32 7, %v1804_v27  ;;  %vm334_vm6 = vcmp.ge.f32.partialorder %v278_v5, 0.0  ;;  %v2125_v60 = vld [vmem:[%s2266_s0 + $0x50] sm:$0xff] }
  0x3a   :  { %1603 = vmatpush3.bf16.msra.mxu1 %v1687_v35  ;;  %1061 = vmatmul.mubr.bf16.gmra.mxu0 %v484_v4  ;;  %vm342_vm7 = vcmp.ge.f32.partialorder %v286_v6, 0.0  ;;  %v390_v50 = vmul.f32 0.2, %v278_v5  ;;  %v398_v14 = vmul.f32 0.2, %v286_v6  ;;  %v293_v15 = vadd.f32 %v1856_v51, %v195_v7 }
  0x3b   :  { %1604 = vmatprep.subr.bf16.mxu1 %v1689_v0  ;;  %v295_v57 = vadd.f32 %v1865_v58, %v197_v9  ;;  %v292_v62 = vadd.f32 %v1876_v63, %v194_v10  ;;  %v294_v2 = vadd.f32 %v1884_v3, %v196_v11  ;;  %v2081_v51 = vrot.slane %v1836_v39, %v128_v42 }
  0x3c   :  { %1565 = vmatpush3.bf16.msra.mxu0 %v1690_v8  ;;  %v446_v17 = vsel %vm334_vm6, %v278_v5, %v390_v50  ;;  %v454_v18 = vsel %vm342_vm7, %v286_v6, %v398_v14  ;;  %v2086_v58 = vrot.slane %v1844_v47, %v128_v42  ;;  %vm349_vm8 = vcmp.ge.f32.partialorder %v293_v15, 0.0  ;;  %v1695_v42 = vld [vmem:[%s2265_s1 + $0x180] sm:$0xff]  }
  0x3d   :  { %v486_v63 = vpack.c.bf16 %v454_v18, %v446_v17  ;;  %v405_v3 = vmul.f32 0.2, %v293_v15  ;;  %vm351_vm9 = vcmp.ge.f32.partialorder %v295_v57, 0.0  ;;  %1566 = vmatprep.subr.bf16.mxu0 %v1692_v16  ;;  %v407_v20 = vmul.f32 0.2, %v295_v57 }
  0x3e   :  { %1605 = vmatpush3.bf16.msra.mxu1 %v1691_v12  ;;  %vm348_vm10 = vcmp.ge.f32.partialorder %v292_v62, 0.0  ;;  %v404_v21 = vmul.f32 0.2, %v292_v62  ;;  %vm350_vm11 = vcmp.ge.f32.partialorder %v294_v2, 0.0  ;;  %v406_v23 = vmul.f32 0.2, %v294_v2 }
  0x3f   :  { %1606 = vmatprep.subr.bf16.mxu1 %v1693_v19  ;;  %1125 = vmatmul.mubr.bf16.gmra.mxu1 %v486_v63  ;;  %v461_v22 = vsel %vm349_vm8, %v293_v15, %v405_v3  ;;  %v2097_v25 = vrot.slane %v1836_v39, %v132_v38  ;;  %v2100_v26 = vrot.slane %v1836_v39, %v136_v13  ;;  %v52_v39 = vunpack.c.l.bf16 %v22_v31 }
  0x40   :  { %v493_v28 = vpack.c.bf16 %v461_v22, %v461_v22  ;;  %v463_v29 = vsel %vm351_vm9, %v295_v57, %v407_v20  ;;  %v460_v30 = vsel %vm348_vm10, %v292_v62, %v404_v21  ;;  %v2109_v33 = vrot.slane %v1844_v47, %v136_v13  ;;  %1567 = vmatpush3.bf16.msra.mxu0 %v1694_v24  ;;  %v34_v57 = vld [vmem:[%s2266_s0 + $0x70] sm:$0xff]  ;;  %v2154_v62 = vld [vmem:[%s2266_s0 + $0x58] sm:$0xff] }
  0x41   :  { %v495_v34 = vpack.c.bf16 %v463_v29, %v463_v29  ;;  %v492_v35 = vpack.c.bf16 %v460_v30, %v460_v30  ;;  %v462_v36 = vsel %vm350_vm11, %v294_v2, %v406_v23  ;;  %v53_v44 = vunpack.c.h.bf16 %v22_v31  ;;  %v35_v23 = vld [vmem:[%s2266_s0 + $0x78] sm:$0xff] }
  0x42   :  { %1607 = vmatpush3.bf16.msra.mxu1 %v1695_v42  ;;  %1068 = vmatprep.mubr.bf16.mxu0 %v493_v28  ;;  %v494_v43 = vpack.c.bf16 %v462_v36, %v462_v36  ;;  %v60_v45 = vunpack.c.l.bf16 %v26_v32  ;;  %v61_v46 = vunpack.c.h.bf16 %v26_v32  ;;  %v150_v49 = vmul.f32 %v2053_v1, %v52_v39 }
  0x43   :  { %1132 = vmatprep.mubr.bf16.mxu1 %v495_v34  ;;  %1069 = vmatmul.mubr.bf16.gmra.mxu0 %v492_v35  ;;  %v54_v52 = vunpack.c.l.bf16 %v23_v37  ;;  %v55_v53 = vunpack.c.h.bf16 %v23_v37  ;;  %v62_v54 = vunpack.c.l.bf16 %v27_v40  ;;  %v151_v48 = vmul.f32 %v2081_v51, %v53_v44 }
  0x44   :  { %v158_v55 = vmul.f32 %v2053_v1, %v60_v45  ;;  %v159_v56 = vmul.f32 %v2081_v51, %v61_v46  ;;  %v63_v59 = vunpack.c.h.bf16 %v27_v40  ;;  %v2133_v5 = vrot.slane %v1844_v47, %v124_v41 }
  0x45   :  { %v152_v61 = vmul.f32 %v2097_v25, %v54_v52  ;;  %v153_v0 = vmul.f32 %v2100_v26, %v55_v53  ;;  %v160_v4 = vmul.f32 %v2097_v25, %v62_v54  ;;  %v249_v6 = vadd.f32 %v2086_v58, %v151_v48 }
  0x46   :  { %v257_v7 = vadd.f32 %v2086_v58, %v159_v56  ;;  %v161_v8 = vmul.f32 %v2100_v26, %v63_v59  ;;  %v2141_v9 = vrot.slane %v1844_v47, %v132_v38  ;;  %v248_v11 = vadd.f32 %v2133_v5, %v150_v49 }
  0x47   :  { %1133 = vmatmul.mubr.bf16.gmra.mxu1 %v494_v43  ;;  %v251_v10 = vadd.f32 %v2109_v33, %v153_v0  ;;  %v256_v12 = vadd.f32 %v2133_v5, %v158_v55  ;;  %v69_v41 = vunpack.c.h.bf16 %v2125_v60  ;;  %vm305_vm12 = vcmp.ge.f32.partialorder %v249_v6, 0.0 }
  0x48   :  { %vm313_vm13 = vcmp.ge.f32.partialorder %v257_v7, 0.0  ;;  %v361_v13 = vmul.f32 0.2, %v249_v6  ;;  %v369_v50 = vmul.f32 0.2, %v257_v7  ;;  %v259_v14 = vadd.f32 %v2109_v33, %v161_v8  ;;  %v38_v8 = vld [vmem:[%s2266_s0 + $0x90] sm:$0xff] }
  0x49   :  { %vm307_vm14 = vcmp.ge.f32.partialorder %v251_v10, 0.0  ;;  %v363_v27 = vmul.f32 0.2, %v251_v10  ;;  %vm304_vm15 = vcmp.ge.f32.partialorder %v248_v11, 0.0  ;;  %vm312_vm0 = vcmp.ge.f32.partialorder %v256_v12, 0.0 }
  0x4a   :  { %v417_v47 = vsel %vm305_vm12, %v249_v6, %v361_v13  ;;  %v425_v38 = vsel %vm313_vm13, %v257_v7, %v369_v50  ;;  %v360_v15 = vmul.f32 0.2, %v248_v11  ;;  %vm315_vm1 = vcmp.ge.f32.partialorder %v259_v14, 0.0  ;;  %v39_v13 = vld [vmem:[%s2266_s0 + $0x98] sm:$0xff] }
  0x4b   :  { %v473_v2 = vpack.c.bf16 %v425_v38, %v417_v47  ;;  %v371_v16 = vmul.f32 0.2, %v259_v14  ;;  %v419_v17 = vsel %vm307_vm14, %v251_v10, %v363_v27  ;;  %v368_v18 = vmul.f32 0.2, %v256_v12  ;;  %v43_v47 = vld [vmem:[%s2266_s0 + $0xb8] sm:$0xff] }
  0x4c   :  { %v416_v19 = vsel %vm304_vm15, %v248_v11, %v360_v15  ;;  %v250_v63 = vadd.f32 %v2141_v9, %v152_v61  ;;  %v258_v3 = vadd.f32 %v2141_v9, %v160_v4  ;;  %v77_v21 = vunpack.c.h.bf16 %v34_v57 }
  0x4d   :  { %1172 = vmatprep.mubr.bf16.mxu0 %v473_v2  ;;  %v427_v20 = vsel %vm315_vm1, %v259_v14, %v371_v16  ;;  %v167_v22 = vmul.f32 %v2081_v51, %v69_v41  ;;  %v71_v24 = vunpack.c.h.bf16 %v2154_v62  ;;  %v424_v28 = vsel %vm312_vm0, %v256_v12, %v368_v18  ;;  %v42_v41 = vld [vmem:[%s2266_s0 + $0xb0] sm:$0xff] }
  0x4e   :  { %v475_v42 = vpack.c.bf16 %v427_v20, %v419_v17  ;;  %vm306_vm2 = vcmp.ge.f32.partialorder %v250_v63, 0.0  ;;  %vm314_vm3 = vcmp.ge.f32.partialorder %v258_v3, 0.0  ;;  %v472_v29 = vpack.c.bf16 %v424_v28, %v416_v19 }
  0x4f   :  { %v362_v30 = vmul.f32 0.2, %v250_v63  ;;  %v370_v31 = vmul.f32 0.2, %v258_v3  ;;  %v175_v32 = vmul.f32 %v2081_v51, %v77_v21  ;;  %v265_v34 = vadd.f32 %v2086_v58, %v167_v22 }
  0x50   :  { %1236 = vmatprep.mubr.bf16.mxu1 %v475_v42  ;;  %v79_v35 = vunpack.c.h.bf16 %v35_v23  ;;  %v169_v36 = vmul.f32 %v2100_v26, %v71_v24  ;;  %v68_v39 = vunpack.c.l.bf16 %v2125_v60  ;;  %1173 = vmatmul.mubr.bf16.vlgmr.msra.gmra.mxu0 %v472_v29  ;;  %v76_v44 = vunpack.c.l.bf16 %v34_v57 }
  0x51   :  { %v418_v37 = vsel %vm306_vm2, %v250_v63, %v362_v30  ;;  %v426_v40 = vsel %vm314_vm3, %v258_v3, %v370_v31  ;;  %v273_v43 = vadd.f32 %v2086_v58, %v175_v32  ;;  %vm321_vm4 = vcmp.ge.f32.partialorder %v265_v34, 0.0 }
  0x52   :  { %v474_v45 = vpack.c.bf16 %v426_v40, %v418_v37  ;;  %v377_v46 = vmul.f32 0.2, %v265_v34  ;;  %v177_v49 = vmul.f32 %v2100_v26, %v79_v35  ;;  %v267_v53 = vadd.f32 %v2109_v33, %v169_v36 }
  0x53   :  { %vm329_vm5 = vcmp.ge.f32.partialorder %v273_v43, 0.0  ;;  %v385_v52 = vmul.f32 0.2, %v273_v43  ;;  %v166_v54 = vmul.f32 %v2053_v1, %v68_v39  ;;  %v174_v56 = vmul.f32 %v2053_v1, %v76_v44 }
  0x54   :  { %1237 = vmatmul.mubr.bf16.vlgmr.msra.gmra.mxu1 %v474_v45  ;;  %v433_v48 = vsel %vm321_vm4, %v265_v34, %v377_v46  ;;  %v275_v55 = vadd.f32 %v2109_v33, %v177_v49  ;;  %v70_v59 = vunpack.c.l.bf16 %v2154_v62  ;;  %vm323_vm6 = vcmp.ge.f32.partialorder %v267_v53, 0.0 }
  0x55   :  { %v441_v60 = vsel %vm329_vm5, %v273_v43, %v385_v52  ;;  %v379_v61 = vmul.f32 0.2, %v267_v53  ;;  %v264_v0 = vadd.f32 %v2133_v5, %v166_v54  ;;  %v272_v7 = vadd.f32 %v2133_v5, %v174_v56  ;;  %v47_v54 = vld [vmem:[%s2266_s0 + $0xd8] sm:$0xff] }
  0x56   :  { %v481_v4 = vpack.c.bf16 %v441_v60, %v433_v48  ;;  %vm331_vm7 = vcmp.ge.f32.partialorder %v275_v55, 0.0  ;;  %v387_v6 = vmul.f32 0.2, %v275_v55  ;;  %v78_v12 = vunpack.c.l.bf16 %v35_v23 }
  0x57   :  { %v435_v10 = vsel %vm323_vm6, %v267_v53, %v379_v61  ;;  %vm320_vm8 = vcmp.ge.f32.partialorder %v264_v0, 0.0  ;;  %v376_v11 = vmul.f32 0.2, %v264_v0  ;;  %vm328_vm9 = vcmp.ge.f32.partialorder %v272_v7, 0.0  ;;  %v46_v53 = vld [vmem:[%s2266_s0 + $0xd0] sm:$0xff] }
  0x58   :  { %1180 = vmatprep.mubr.bf16.mxu0 %v481_v4  ;;  %v443_v50 = vsel %vm331_vm7, %v275_v55, %v387_v6  ;;  %v384_v14 = vmul.f32 0.2, %v272_v7  ;;  %v168_v27 = vmul.f32 %v2097_v25, %v70_v59  ;;  %v176_v57 = vmul.f32 %v2097_v25, %v78_v12 }
  0x59   :  { %v483_v38 = vpack.c.bf16 %v443_v50, %v435_v10  ;;  %v432_v15 = vsel %vm320_vm8, %v264_v0, %v376_v11  ;;  %v85_v62 = vunpack.c.h.bf16 %v38_v8  ;;  %v93_v17 = vunpack.c.h.bf16 %v42_v41 }
  0x5a   :  { %v440_v2 = vsel %vm328_vm9, %v272_v7, %v384_v14  ;;  %v266_v16 = vadd.f32 %v2141_v9, %v168_v27  ;;  %v87_v18 = vunpack.c.h.bf16 %v39_v13  ;;  %v274_v63 = vadd.f32 %v2141_v9, %v176_v57 }
  0x5b   :  { %1244 = vmatprep.mubr.bf16.mxu1 %v483_v38  ;;  %v480_v19 = vpack.c.bf16 %v440_v2, %v432_v15  ;;  %v183_v3 = vmul.f32 %v2081_v51, %v85_v62  ;;  %v95_v20 = vunpack.c.h.bf16 %v43_v47  ;;  %v191_v22 = vmul.f32 %v2081_v51, %v93_v17 }
  0x5c   :  { %vm322_vm10 = vcmp.ge.f32.partialorder %v266_v16, 0.0  ;;  %v378_v21 = vmul.f32 0.2, %v266_v16  ;;  %v185_v23 = vmul.f32 %v2100_v26, %v87_v18  ;;  %vm330_vm11 = vcmp.ge.f32.partialorder %v274_v63, 0.0 }
  0x5d   :  { %1181 = vmatmul.mubr.bf16.gmra.mxu0 %v480_v19  ;;  %v386_v24 = vmul.f32 0.2, %v274_v63  ;;  %v281_v42 = vadd.f32 %v2086_v58, %v183_v3  ;;  %v193_v28 = vmul.f32 %v2100_v26, %v95_v20  ;;  %v289_v30 = vadd.f32 %v2086_v58, %v191_v22 }
  0x5e   :  { %v434_v29 = vsel %vm322_vm10, %v266_v16, %v378_v21  ;;  %v283_v31 = vadd.f32 %v2109_v33, %v185_v23  ;;  %v84_v32 = vunpack.c.l.bf16 %v38_v8  ;;  %v92_v46 = vunpack.c.l.bf16 %v42_v41 }
  0x5f   :  { %v442_v34 = vsel %vm330_vm11, %v274_v63, %v386_v24  ;;  %vm337_vm12 = vcmp.ge.f32.partialorder %v281_v42, 0.0  ;;  %v393_v35 = vmul.f32 0.2, %v281_v42  ;;  %v291_v36 = vadd.f32 %v2109_v33, %v193_v28 }
  0x60   :  { %v482_v39 = vpack.c.bf16 %v442_v34, %v434_v29  ;;  %vm345_vm13 = vcmp.ge.f32.partialorder %v289_v30, 0.0  ;;  %v401_v37 = vmul.f32 0.2, %v289_v30  ;;  %vm339_vm14 = vcmp.ge.f32.partialorder %v283_v31, 0.0 }
  0x61   :  { %v449_v40 = vsel %vm337_vm12, %v281_v42, %v393_v35  ;;  %vm347_vm15 = vcmp.ge.f32.partialorder %v291_v36, 0.0  ;;  %v395_v43 = vmul.f32 0.2, %v283_v31  ;;  %v403_v44 = vmul.f32 0.2, %v291_v36 }
  0x62   :  { %1245 = vmatmul.mubr.bf16.gmra.mxu1 %v482_v39  ;;  %v457_v45 = vsel %vm345_vm13, %v289_v30, %v401_v37  ;;  %v182_v49 = vmul.f32 %v2053_v1, %v84_v32  ;;  %v86_v52 = vunpack.c.l.bf16 %v39_v13  ;;  %v94_v59 = vunpack.c.l.bf16 %v43_v47 }
  0x63   :  { %v489_v48 = vpack.c.bf16 %v457_v45, %v449_v40  ;;  %v451_v55 = vsel %vm339_vm14, %v283_v31, %v395_v43  ;;  %v459_v56 = vsel %vm347_vm15, %v291_v36, %v403_v44  ;;  %v190_v61 = vmul.f32 %v2053_v1, %v92_v46 }
  0x64   :  { %v491_v60 = vpack.c.bf16 %v459_v56, %v451_v55  ;;  %v280_v0 = vadd.f32 %v2133_v5, %v182_v49  ;;  %v184_v4 = vmul.f32 %v2097_v25, %v86_v52  ;;  %v192_v6 = vmul.f32 %v2097_v25, %v94_v59 }
  0x65   :  { %1188 = vmatprep.mubr.bf16.mxu0 %v489_v48  ;;  %v101_v7 = vunpack.c.h.bf16 %v46_v53  ;;  %v103_v8 = vunpack.c.h.bf16 %v47_v54  ;;  %v100_v10 = vunpack.c.l.bf16 %v46_v53  ;;  %v288_v11 = vadd.f32 %v2133_v5, %v190_v61 }
  0x66   :  { %1252 = vmatprep.mubr.bf16.mxu1 %v491_v60  ;;  %vm336_vm0 = vcmp.ge.f32.partialorder %v280_v0, 0.0  ;;  %v392_v12 = vmul.f32 0.2, %v280_v0  ;;  %v282_v41 = vadd.f32 %v2141_v9, %v184_v4  ;;  %v290_v13 = vadd.f32 %v2141_v9, %v192_v6 }
  0x67   :  { %v199_v50 = vmul.f32 %v2081_v51, %v101_v7  ;;  %v201_v14 = vmul.f32 %v2100_v26, %v103_v8  ;;  %v198_v27 = vmul.f32 %v2053_v1, %v100_v10  ;;  %vm344_vm1 = vcmp.ge.f32.partialorder %v288_v11, 0.0 }
  0x68   :  { %v400_v47 = vmul.f32 0.2, %v288_v11  ;;  %v448_v38 = vsel %vm336_vm0, %v280_v0, %v392_v12  ;;  %vm338_vm2 = vcmp.ge.f32.partialorder %v282_v41, 0.0  ;;  %vm346_vm3 = vcmp.ge.f32.partialorder %v290_v13, 0.0 }
  0x69   :  { %v394_v15 = vmul.f32 0.2, %v282_v41  ;;  %v402_v57 = vmul.f32 0.2, %v290_v13  ;;  %v297_v62 = vadd.f32 %v2086_v58, %v199_v50  ;;  %v299_v16 = vadd.f32 %v2109_v33, %v201_v14 }
  0x6a   :  { %v456_v2 = vsel %vm344_vm1, %v288_v11, %v400_v47  ;;  %v296_v17 = vadd.f32 %v2133_v5, %v198_v27  ;;  %v102_v18 = vunpack.c.l.bf16 %v47_v54  ;;  %vm1366_vm8 = vcmask 1040384  }
  0x6b   :  { %v488_v51 = vpack.c.bf16 %v456_v2, %v448_v38  ;;  %v450_v19 = vsel %vm338_vm2, %v282_v41, %v394_v15  ;;  %v458_v26 = vsel %vm346_vm3, %v290_v13, %v402_v57  ;;  %vm353_vm4 = vcmp.ge.f32.partialorder %v297_v62, 0.0 }
  0x6c   :  { %v490_v1 = vpack.c.bf16 %v458_v26, %v450_v19  ;;  %v409_v63 = vmul.f32 0.2, %v297_v62  ;;  %vm355_vm5 = vcmp.ge.f32.partialorder %v299_v16, 0.0  ;;  %v411_v3 = vmul.f32 0.2, %v299_v16 }
  0x6d   :  { %1189 = vmatmul.mubr.bf16.gmra.mxu0 %v488_v51  ;;  %vm352_vm6 = vcmp.ge.f32.partialorder %v296_v17, 0.0  ;;  %v408_v20 = vmul.f32 0.2, %v296_v17  ;;  %v200_v21 = vmul.f32 %v2097_v25, %v102_v18 }
  0x6e   :  { %1253 = vmatmul.mubr.bf16.gmra.mxu1 %v490_v1  ;;  %v465_v58 = vsel %vm353_vm4, %v297_v62, %v409_v63  ;;  %v467_v22 = vsel %vm355_vm5, %v299_v16, %v411_v3 }
  0x6f   :  { %v497_v33 = vpack.c.bf16 %v465_v58, %v465_v58  ;;  %v499_v23 = vpack.c.bf16 %v467_v22, %v467_v22  ;;  %v464_v5 = vsel %vm352_vm6, %v296_v17, %v408_v20  ;;  %v298_v24 = vadd.f32 %v2141_v9, %v200_v21 }
  0x70   :  { %v496_v42 = vpack.c.bf16 %v464_v5, %v464_v5 }
  0x71   :  { %1196 = vmatprep.mubr.bf16.mxu0 %v497_v33  ;;  %1260 = vmatprep.mubr.bf16.mxu1 %v499_v23  ;;  %vm354_vm7 = vcmp.ge.f32.partialorder %v298_v24, 0.0  ;;  %v410_v28 = vmul.f32 0.2, %v298_v24 }
  0x73   :  { %v466_v29 = vsel %vm354_vm7, %v298_v24, %v410_v28 }
  0x74   :  { %v498_v30 = vpack.c.bf16 %v466_v29, %v466_v29 }
  0x75   :  { %1197 = vmatmul.mubr.bf16.gmra.mxu0 %v496_v42 }
  0x76   :  { %1261 = vmatmul.mubr.bf16.gmra.mxu1 %v498_v30 }
  0xe3   :  { %v1488_v31 = vpop.f32.mrf.mxu0 }
  0xe4   :  { %v1528_v32 = vpop.f32.mrf.mxu1 }
  0xe5   :  { %v1489_v25 = vpop.f32.mrf.mxu0 }
  0xe6   :  { %v1529_v34 = vpop.f32.mrf.mxu1  ;;  %v1490_v13 = vadd.f32 %v1489_v25, %v1488_v31 }
  0xe7   :  { %v1491_v35 = vpop.f32.mrf.mxu0  ;;  %v1530_v50 = vadd.f32 %v1529_v34, %v1528_v32 }
  0xe8   :  { %v1531_v39 = vpop.f32.mrf.mxu1 }
  0xe9   :  { %v1492_v36 = vpop.f32.mrf.mxu0  ;;  %v1111_v2 = vadd.f32 %v1530_v50, %v1490_v13 }
  0xea   :  { %v1532_v40 = vpop.f32.mrf.mxu1  ;;  %v1493_v27 = vadd.f32 %v1492_v36, %v1491_v35 }
  0xeb   :  { %v1533_v47 = vadd.f32 %v1532_v40, %v1531_v39 }
  0xed   :  { %v1114_v17 = vadd.f32 %v1533_v47, %v1493_v27 }
  0xee   :  { %v1494_v37 = vpop.f32.mrf.mxu0 }
  0xf0   :  { %v1495_v43 = vpop.f32.mrf.mxu0 }
  0xf1   :  { %v1534_v9 = vpop.f32.mrf.mxu1  ;;  %v1496_v23 = vadd.f32 %v1495_v43, %v1494_v37 }
  0xf2   :  { %v1497_v44 = vpop.f32.mrf.mxu0 }
  0xf3   :  { %v1535_v45 = vpop.f32.mrf.mxu1 }
  0xf4   :  { %v1498_v46 = vpop.f32.mrf.mxu0  ;;  %v1536_v5 = vadd.f32 %v1535_v45, %v1534_v9 }
  0xf5   :  { %v1537_v49 = vpop.f32.mrf.mxu1  ;;  %v1499_v24 = vadd.f32 %v1498_v46, %v1497_v44 }
  0xf6   :  { %v1119_v34 = vadd.f32 %v1536_v5, %v1496_v23 }
  0xf7   :  { %v1538_v53 = vpop.f32.mrf.mxu1 }
  0xf8   :  { %v1539_v42 = vadd.f32 %v1538_v53, %v1537_v49 }
  0xfa   :  { %v2223_v52 = vpop.f32.mrf.mxu0  ;;  %v1122_v35 = vadd.f32 %v1539_v42, %v1499_v24 }
  0xfc   :  { %v1501_v54 = vpop.f32.mrf.mxu0 }
  0xfd   :  { %v1502_v45 = vadd.f32 %v1501_v54, %v2223_v52 }
  0xfe   :  { %v2225_v48 = vpop.f32.mrf.mxu0 }
  0xff   :  { %v1540_v55 = vpop.f32.mrf.mxu1 }
 0x100   :  { %v2227_v56 = vpop.f32.mrf.mxu0 }
 0x101   :  { %v1541_v59 = vpop.f32.mrf.mxu1 }
 0x102   :  { %v1542_v46 = vadd.f32 %v1541_v59, %v1540_v55 }
 0x103   :  { %v2229_v60 = vpop.f32.mrf.mxu1  ;;  %v2231_v61 = vpop.f32.mrf.mxu0 }
 0x105   :  { %v2233_v0 = vpop.f32.mrf.mxu1  ;;  %v2235_v4 = vpop.f32.mrf.mxu0 }
 0x106   :  { %v1545_v13 = vadd.f32 %v2233_v0, %v2229_v60  ;;  %v1508_v47 = vadd.f32 %v2235_v4, %v2231_v61 }
 0x107   :  { %v2237_v6 = vpop.f32.mrf.mxu1  ;;  %v1509_v7 = vpop.f32.mrf.mxu0 }
 0x109   :  { %v2239_v8 = vpop.f32.mrf.mxu1  ;;  %v1510_v10 = vpop.f32.mrf.mxu0 }
 0x10b   :  { %v1549_v11 = vpop.f32.mrf.mxu1 }
 0x10d   :  { %v1550_v12 = vpop.f32.mrf.mxu1 }
 0x10e   :  { %v1127_v12 = vadd.f32 %v1542_v46, %v1502_v45 }
 0x110   :  { %v1568_v41 = vpop.f32.mrf.mxu0 }
 0x112   :  { %v1569_v14 = vpop.f32.mrf.mxu0 }
 0x113   :  { %v1570_v15 = vadd.f32 %v1569_v14, %v1568_v41  ;;  %v1505_v41 = vadd.f32 %v2227_v56, %v2225_v48  ;;  %v1548_v48 = vadd.f32 %v2239_v8, %v2237_v6 }
 0x114   :  { %v1608_v38 = vpop.f32.mrf.mxu1  ;;  %v1571_v57 = vpop.f32.mrf.mxu0 }
 0x115   :  { %v1175_v19 = vadd.f32 %v1570_v15, %v1111_v2  ;;  %v1130_v2 = vadd.f32 %v1545_v13, %v1505_v41 }
 0x116   :  { %v1609_v62 = vpop.f32.mrf.mxu1  ;;  %v1572_v16 = vpop.f32.mrf.mxu0 }
 0x117   :  { %v1573_v51 = vadd.f32 %v1572_v16, %v1571_v57  ;;  %v1610_v63 = vadd.f32 %v1609_v62, %v1608_v38 }
 0x118   :  { %v1611_v18 = vpop.f32.mrf.mxu1 }
 0x119   :  { %v1178_v26 = vadd.f32 %v1573_v51, %v1114_v17  ;;  %v1239_v20 = vadd.f32 %v1610_v63, %v1175_v19 }
 0x11a   :  { %v1612_v1 = vpop.f32.mrf.mxu1 }
 0x11b   :  { %v1613_v3 = vadd.f32 %v1612_v1, %v1611_v18  ;;  %v1347_v38 = vmul.f32 %v1239_v20, %v1239_v20 }
 0x11d   :  { %v1242_v21 = vadd.f32 %v1613_v3, %v1178_v26  ;;  %v1574_v58 = vpop.f32.mrf.mxu0  ;;  %v1135_v3 = vadd.f32 %v1548_v48, %v1508_v47 }
 0x11f   :  { %v1458_v22 = vpack.c.bf16 %v1242_v21, %v1239_v20  ;;  %v1575_v33 = vpop.f32.mrf.mxu0  ;;  %v1348_v27 = vmul.f32 %v1242_v21, %v1242_v21  ;;  %v1335_v15 = vadd.f32 %v1242_v21, %v1239_v20 }
 0x120   :  { %v1576_v30 = vadd.f32 %v1575_v33, %v1574_v58 }
 0x121   :  { %1459 = vst [vmem:[%s2269_s4] sm:$0xff] %v1458_v22   ;;  %v1577_v28 = vpop.f32.mrf.mxu0  ;;  %v1354_v16 = vadd.f32 %v1348_v27, %v1347_v38 }
 0x122   :  { %v1614_v29 = vpop.f32.mrf.mxu1  ;;  %v1183_v39 = vadd.f32 %v1576_v30, %v1119_v34 }
 0x123   :  { %v1578_v31 = vpop.f32.mrf.mxu0 }
 0x124   :  { %v1615_v32 = vpop.f32.mrf.mxu1  ;;  %v1579_v25 = vadd.f32 %v1578_v31, %v1577_v28 }
 0x125   :  { %v1616_v37 = vadd.f32 %v1615_v32, %v1614_v29 }
 0x126   :  { %v1617_v36 = vpop.f32.mrf.mxu1  ;;  %v1186_v40 = vadd.f32 %v1579_v25, %v1122_v35 }
 0x127   :  { %v1247_v9 = vadd.f32 %v1616_v37, %v1183_v39 }
 0x128   :  { %v1618_v7 = vpop.f32.mrf.mxu1 }
 0x129   :  { %v1619_v43 = vadd.f32 %v1618_v7, %v1617_v36  ;;  %v1349_v57 = vmul.f32 %v1247_v9, %v1247_v9  ;;  %v1336_v17 = vadd.f32 %v1335_v15, %v1247_v9 }
 0x12b   :  { %v1250_v44 = vadd.f32 %v1619_v43, %v1186_v40  ;;  %v1355_v63 = vadd.f32 %v1354_v16, %v1349_v57 }
 0x12d   :  { %v1463_v49 = vpack.c.bf16 %v1250_v44, %v1247_v9  ;;  %v1580_v53 = vpop.f32.mrf.mxu0  ;;  %v1350_v18 = vmul.f32 %v1250_v44, %v1250_v44  ;;  %v1337_v61 = vadd.f32 %v1336_v17, %v1250_v44 }
 0x12e   :  { %v1620_v10 = vpop.f32.mrf.mxu1 }
 0x12f   :  { %1470 = vst [vmem:[%s2269_s4 + $0x8] sm:$0xff] %v1463_v49   ;;  %v1581_v11 = vpop.f32.mrf.mxu0  ;;  %v1356_v33 = vadd.f32 %v1355_v63, %v1350_v18 }
 0x130   :  { %v1582_v50 = vadd.f32 %v1581_v11, %v1580_v53  ;;  %v1621_v14 = vpop.f32.mrf.mxu1 }
 0x131   :  { %v1583_v52 = vpop.f32.mrf.mxu0  ;;  %v1622_v55 = vadd.f32 %v1621_v14, %v1620_v10 }
 0x132   :  { %v1191_v54 = vadd.f32 %v1582_v50, %v1127_v12  ;;  %v1623_v59 = vpop.f32.mrf.mxu1 }
 0x133   :  { %v1584_v62 = vpop.f32.mrf.mxu0 }
 0x134   :  { %v1255_v56 = vadd.f32 %v1622_v55, %v1191_v54  ;;  %v1585_v60 = vadd.f32 %v1584_v62, %v1583_v52  ;;  %v1624_v0 = vpop.f32.mrf.mxu1 }
 0x135   :  { %v1586_v51 = vpop.f32.mrf.mxu0  ;;  %v1625_v26 = vadd.f32 %v1624_v0, %v1623_v59 }
 0x136   :  { %v1194_v19 = vadd.f32 %v1585_v60, %v1130_v2  ;;  %v1626_v1 = vpop.f32.mrf.mxu1  ;;  %v1351_v20 = vmul.f32 %v1255_v56, %v1255_v56  ;;  %v1338_v6 = vadd.f32 %v1337_v61, %v1255_v56 }
 0x137   :  { %v1587_v4 = vpop.f32.mrf.mxu0 }
 0x138   :  { %v1258_v21 = vadd.f32 %v1625_v26, %v1194_v19  ;;  %v1588_v58 = vadd.f32 %v1587_v4, %v1586_v51  ;;  %v1627_v22 = vpop.f32.mrf.mxu1  ;;  %v1357_v30 = vadd.f32 %v1356_v33, %v1351_v20 }
 0x139   :  { %v1589_v8 = vpop.f32.mrf.mxu0  ;;  %v1628_v42 = vadd.f32 %v1627_v22, %v1626_v1 }
 0x13a   :  { %v1468_v23 = vpack.c.bf16 %v1258_v21, %v1255_v56  ;;  %v1352_v5 = vmul.f32 %v1258_v21, %v1258_v21  ;;  %v1199_v24 = vadd.f32 %v1588_v58, %v1135_v3  ;;  %v1629_v28 = vpop.f32.mrf.mxu1  ;;  %v1339_v31 = vadd.f32 %v1338_v6, %v1258_v21 }
 0x13b   :  { %v1590_v29 = vpop.f32.mrf.mxu0 }
 0x13c   :  { %1471 = vst [vmem:[%s2269_s4 + $0x10] sm:$0xff] %v1468_v23   ;;  %v1263_v32 = vadd.f32 %v1628_v42, %v1199_v24  ;;  %v1630_v25 = vpop.f32.mrf.mxu1  ;;  %v1358_v34 = vadd.f32 %v1357_v30, %v1352_v5 }
 0x13e   :  { %v1454_v35 = vpack.c.bf16 %v1263_v32, %v1263_v32  ;;  %v1340_v36 = vadd.f32 %v1339_v31, %v1263_v32  ;;  %v1353_v39 = vmul.f32 %v1263_v32, %v1263_v32 }
 0x140   :  { %1303 = vst [vmem:[%s2269_s4 + $0x18] sm:$0xf] %v1454_v35  ;;  %v1341_v40 = vrot.slane %v1340_v36, 4  ;;  %v1359_v7 = vadd.f32 %v1358_v34, %v1353_v39 }
 0x142   :  { %v1342_v37 = vadd.f32 %v1341_v40, %v1340_v36  ;;  %v1360_v43 = vrot.slane %v1359_v7, 4 }
 0x144   :  { %v1343_v9 = vrot.slane %v1342_v37, 2  ;;  %v1361_v44 = vadd.f32 %v1360_v43, %v1359_v7 }
 0x146   :  { %v1344_v45 = vadd.f32 %v1343_v9, %v1342_v37  ;;  %v1362_v46 = vrot.slane %v1361_v44, 2 }
 0x148   :  { %v1345_v49 = vrot.slane %v1344_v45, 1  ;;  %v1363_v53 = vadd.f32 %v1362_v46, %v1361_v44 }
 0x14a   :  { %v1364_v10 = vrot.slane %v1363_v53, 1  ;;  %v1346_v11 = vadd.f32 %v1345_v49, %v1344_v45 }
 0x14c   :  { %v1365_v12 = vadd.f32 %v1364_v10, %v1363_v53 }
 0x14e   :  { %v1367_v41 = vsel %vm1366_vm8, %v1346_v11, %v1365_v12 }
 0x14f   :  { %1368 = vst [vmem:[%s2270_s5] sm:$0x3] %v1367_v41 }

// kernel: tile.33
= control target key start
LH: loop header
LB: loop body
LE: loop exit
PB: predicated region body
PF: predicated region fallthrough
CT: control target
= control target key end

     0   :  { %s64_s0 = inlined_call_operand.vmem [shape: f32[32], index: 0, kind: input, shape index: {}]   ;;  %s65_s1 = inlined_call_operand.vmem [shape: f32[64,32], index: 1, kind: output, shape index: {}]  }
   0x1   :  { %v4_v0 = vld [vmem:[%s64_s0] ss:$0 sm:$0xff] }
   0x2   :  { %5 = vst [vmem:[%s65_s1] sm:$0xff] %v4_v0  ;;  %20 = vst [vmem:[%s65_s1 + $0x8] sm:$0xff] %v4_v0 }
   0x3   :  { %21 = vst [vmem:[%s65_s1 + $0x10] sm:$0xff] %v4_v0  ;;  %22 = vst [vmem:[%s65_s1 + $0x18] sm:$0xff] %v4_v0 }
   0x4   :  { %23 = vst [vmem:[%s65_s1 + $0x20] sm:$0xff] %v4_v0  ;;  %24 = vst [vmem:[%s65_s1 + $0x28] sm:$0xff] %v4_v0 }
   0x5   :  { %25 = vst [vmem:[%s65_s1 + $0x30] sm:$0xff] %v4_v0  ;;  %26 = vst [vmem:[%s65_s1 + $0x38] sm:$0xff] %v4_v0 }

// kernel: tile.34
= control target key start
LH: loop header
LB: loop body
LE: loop exit
PB: predicated region body
PF: predicated region fallthrough
CT: control target
= control target key end

     0   :  { %s212_s10 = smov 64   ;;  %s213_s11 = smov 96   ;;  %vm3_vm0 = vcmask 261120   ;;  %vm17_vm1 = vcmask 1048320   ;;  %vm33_vm2 = vcmask 785920   ;;  %vm49_vm3 = vcmask 523520   ;;  %s297_s0 = inlined_call_operand.vmem [shape: f32[64,32], index: 0, kind: input, shape index: {}]   ;;  %s298_s1 = inlined_call_operand.vmem [shape: f32[1,2048], index: 1, kind: output, shape index: {}]  }
   0x1   :  { %v190_v0 = vld [vmem:[%s297_s0 + $0x2] ss:$4 sm:$0xff]   ;;  %v188_v1 = vld [vmem:[%s297_s0 + $0x3] ss:$4 sm:$0xff]   ;;  %v2_v4 = vld [vmem:[%s297_s0] ss:$4 sm:$0xff]  }
   0x2   :  { %31 = vrot.lane.b32.xlu1 %v190_v0, %s212_s10  ;;  %15 = vrot.lane.b32.xlu0 %v188_v1, %s213_s11  ;;  %v191_v2 = vld [vmem:[%s297_s0 + $0x22] ss:$4 sm:$0xff]   ;;  %v189_v3 = vld [vmem:[%s297_s0 + $0x23] ss:$4 sm:$0xff]  }
   0x3   :  { %v187_v5 = vld [vmem:[%s297_s0 + $0x20] ss:$4 sm:$0xff]   ;;  %4 = vst.msk [vmem:[#allocation0] ss:$8 sm:$0xf] %vm3_vm0, %v2_v4  }
   0x4   :  { %5 = vst.msk [vmem:[#allocation0] ss:$8 sm:$0xf0] %vm3_vm0, %v2_v4   ;;  %10 = vst.msk [vmem:[#allocation0 + $0x40] ss:$8 sm:$0xf] %vm3_vm0, %v187_v5  }
   0x5   :  { %12 = vst.msk [vmem:[#allocation0 + $0x40] ss:$8 sm:$0xf0] %vm3_vm0, %v187_v5   ;;  %v193_v6 = vld [vmem:[%s297_s0 + $0x21] ss:$4 sm:$0xff]  }
   0x6   :  { %38 = vrot.lane.b32.xlu1 %v191_v2, %s212_s10  ;;  %22 = vrot.lane.b32.xlu0 %v189_v3, %s213_s11  ;;  %v192_v7 = vld [vmem:[%s297_s0 + $0x1] ss:$4 sm:$0xff]   ;;  %s214_s0 = smov 32  }
   0xa   :  { %54 = vrot.lane.b32.xlu1 %v193_v6, %s214_s0  ;;  %47 = vrot.lane.b32.xlu0 %v192_v7, %s214_s0 }
  0x74   :  { %v32_v8 = vpop.permute.xlu1 %31   ;;  %v16_v9 = vpop.permute.xlu0 %15  }
  0x75   :  { %18 = vst.msk [vmem:[#allocation0] ss:$8 sm:$0xf] %vm17_vm1, %v16_v9   ;;  %19 = vst.msk [vmem:[#allocation0] ss:$8 sm:$0xf0] %vm17_vm1, %v16_v9  }
  0x76   :  { %34 = vst.msk [vmem:[#allocation0] ss:$8 sm:$0xf] %vm33_vm2, %v32_v8   ;;  %35 = vst.msk [vmem:[#allocation0] ss:$8 sm:$0xf0] %vm33_vm2, %v32_v8  }
  0x78   :  { %v39_v10 = vpop.permute.xlu1 %38   ;;  %v23_v11 = vpop.permute.xlu0 %22  }
  0x79   :  { %26 = vst.msk [vmem:[#allocation0 + $0x40] ss:$8 sm:$0xf] %vm17_vm1, %v23_v11   ;;  %28 = vst.msk [vmem:[#allocation0 + $0x40] ss:$8 sm:$0xf0] %vm17_vm1, %v23_v11  }
  0x7a   :  { %42 = vst.msk [vmem:[#allocation0 + $0x40] ss:$8 sm:$0xf] %vm33_vm2, %v39_v10   ;;  %44 = vst.msk [vmem:[#allocation0 + $0x40] ss:$8 sm:$0xf0] %vm33_vm2, %v39_v10  }
  0x7c   :  { %v55_v12 = vpop.permute.xlu1 %54   ;;  %v48_v13 = vpop.permute.xlu0 %47  }
  0x7d   :  { %58 = vst.msk [vmem:[#allocation0 + $0x40] ss:$8 sm:$0xf] %vm49_vm3, %v55_v12   ;;  %60 = vst.msk [vmem:[#allocation0 + $0x40] ss:$8 sm:$0xf0] %vm49_vm3, %v55_v12  }
  0x7e   :  { %50 = vst.msk [vmem:[#allocation0] ss:$8 sm:$0xf] %vm49_vm3, %v48_v13   ;;  %51 = vst.msk [vmem:[#allocation0] ss:$8 sm:$0xf0] %vm49_vm3, %v48_v13  }
  0x84   :  { %v118_v14 = vld [vmem:[#allocation0 + $0x40] sm:$0x1]  ;;  %v125_v15 = vld [vmem:[#allocation0 + $0x48] sm:$0x1]  ;;  %v132_v16 = vld [vmem:[#allocation0 + $0x50] sm:$0x1] }
  0x85   :  { %201 = vst [vmem:[%s298_s1 + $0x8] sm:$0x1] %v118_v14  ;;  %202 = vst [vmem:[%s298_s1 + $0x9] sm:$0x1] %v125_v15  ;;  %v139_v17 = vld [vmem:[#allocation0 + $0x58] sm:$0x1] }
  0x86   :  { %203 = vst [vmem:[%s298_s1 + $0xa] sm:$0x1] %v132_v16  ;;  %v146_v18 = vld [vmem:[#allocation0 + $0x60] sm:$0x1]  ;;  %v153_v19 = vld [vmem:[#allocation0 + $0x68] sm:$0x1] }
  0x87   :  { %204 = vst [vmem:[%s298_s1 + $0xb] sm:$0x1] %v139_v17  ;;  %205 = vst [vmem:[%s298_s1 + $0xc] sm:$0x1] %v146_v18  ;;  %v160_v20 = vld [vmem:[#allocation0 + $0x70] sm:$0x1] }
  0x88   :  { %206 = vst [vmem:[%s298_s1 + $0xd] sm:$0x1] %v153_v19  ;;  %v167_v21 = vld [vmem:[#allocation0 + $0x78] sm:$0x1]  ;;  %v65_v22 = vld [vmem:[#allocation0] sm:$0x1] }
  0x89   :  { %207 = vst [vmem:[%s298_s1 + $0xe] sm:$0x1] %v160_v20  ;;  %208 = vst [vmem:[%s298_s1 + $0xf] sm:$0x1] %v167_v21  ;;  %v70_v23 = vld [vmem:[#allocation0 + $0x8] sm:$0x1] }
  0x8a   :  { %68 = vst [vmem:[%s298_s1] sm:$0x1] %v65_v22  ;;  %v76_v24 = vld [vmem:[#allocation0 + $0x10] sm:$0x1]  ;;  %v83_v25 = vld [vmem:[#allocation0 + $0x18] sm:$0x1] }
  0x8b   :  { %194 = vst [vmem:[%s298_s1 + $0x1] sm:$0x1] %v70_v23  ;;  %195 = vst [vmem:[%s298_s1 + $0x2] sm:$0x1] %v76_v24  ;;  %v90_v26 = vld [vmem:[#allocation0 + $0x20] sm:$0x1] }
  0x8c   :  { %196 = vst [vmem:[%s298_s1 + $0x3] sm:$0x1] %v83_v25  ;;  %v97_v27 = vld [vmem:[#allocation0 + $0x28] sm:$0x1]  ;;  %v104_v28 = vld [vmem:[#allocation0 + $0x30] sm:$0x1] }
  0x8d   :  { %197 = vst [vmem:[%s298_s1 + $0x4] sm:$0x1] %v90_v26  ;;  %198 = vst [vmem:[%s298_s1 + $0x5] sm:$0x1] %v97_v27  ;;  %v111_v29 = vld [vmem:[#allocation0 + $0x38] sm:$0x1] }
  0x8e   :  { %199 = vst [vmem:[%s298_s1 + $0x6] sm:$0x1] %v104_v28  ;;  %200 = vst [vmem:[%s298_s1 + $0x7] sm:$0x1] %v111_v29 }

// kernel: squeeze.9
= control target key start
LH: loop header
LB: loop body
LE: loop exit
PB: predicated region body
PF: predicated region fallthrough
CT: control target
= control target key end

     0   :  { %s77_s0 = inlined_call_operand.vmem [shape: f32[8], index: 0, kind: input, shape index: {}]   ;;  %s78_s1 = inlined_call_operand.hbm [shape: f32[2,4], index: 1, kind: output, shape index: {}]  }
   0x1   :  { %v6_v0 = vld [vmem:[%s77_s0] sm:$0x1] }
   0x2   :  { %2 = vsyncpa [#allocation1], 0  ;;  %7 = vst [vmem:[#allocation3] sm:$0x1] %v6_v0  ;;  %vm9_vm0 = vcmask 31744   ;;  %s59_s0 = smov 124  }
   0x3   :  { %s60_s8 = smov [#allocation0]  }
   0x4   :  { %s29_s9 = sshll.u32 %s60_s8, 4  ;;  %s30_s9 = int_to_ptr.vmem [resolvable:$true] %s29_s9 }
   0x5   :  { %s37_s10 = scalar_lea.vmem %s30_s9, 32  ;;  %p42_p1 = scmp.lt.s32.totalorder %s30_s9, %s30_s9 }
   0x6   :  { %p38_p0 = scmp.ne.s32.totalorder %s30_s9, %s37_s10  ;;  %p43_p2 = scmp.lt.s32.totalorder %s37_s10, %s37_s10 }
   0x8   :  { %p44_p3 = por %p43_p2, %p42_p1 }
   0x9   :  { %v11_v1 = vld [vmem:[#allocation3] sm:$0x1]  }
   0xa   :  { %v8_v2 = vld [vmem:[#allocation3] sm:$0x1]   ;;  %12 = vrot.lane.b32.xlu0 %v11_v1, %s59_s0  ;;  %p45_p4 = pnand %p44_p3, %p38_p0 }
   0xb   :  { %10 = vst.msk [vmem:[#allocation2] sm:$0x1] %vm9_vm0, %v8_v2  }
  0x7c   :  { %v13_v3 = vpop.permute.xlu0 %12  }
  0x7d   :  { %16 = vst.msk [vmem:[#allocation2 + $0x1] sm:$0x1] %vm9_vm0, %v13_v3  }
  0x84   :  { %v21_v4 = vld [vmem:[#allocation2] sm:$0x3] }
  0x85   :  { %24 = vst [vmem:[#allocation0] sm:$0x3] %v21_v4 }
  0x86   :  { %48 = shalt.err (!%p45_p4)
}
  0x87   :  { %32 = dma.vmem_to_hbm [thread:$0]  %s30_s9, 32, %s78_s1, [#allocation1]  }
  0x88   :  { %57 = dma.done.wait [#allocation1], 32  }
  0x89   :  { %58 = vsyncadd [#allocation1], 4294967264 }
  0x8a   :  { %34 = vsyncpa [#allocation1], 1 }

// kernel: patch_video_discriminator_forward.7
= control target key start
LH: loop header
LB: loop body
LE: loop exit
PB: predicated region body
PF: predicated region fallthrough
CT: control target
= control target key end

     0   :  { %v46_v21 = vlaneseq  ;;  %s2671_s1 = inlined_call_operand.vmem [shape: bf16[2048,128], index: 1, kind: input, shape index: {}]   ;;  %s2672_s0 = inlined_call_operand.vmem [shape: bf16[8,2048], index: 0, kind: input, shape index: {}]   ;;  %s2673_s2 = inlined_call_operand.vmem [shape: f32[1,2048], index: 2, kind: input, shape index: {}]   ;;  %s2674_s3 = inlined_call_operand.vmem [shape: f32[1,2048], index: 3, kind: input, shape index: {}]   ;;  %s2675_s4 = inlined_call_operand.vmem [shape: f32[8,128], index: 4, kind: output, shape index: {}]  }
   0x1   :  { %v1959_v0 = vld [vmem:[%s2671_s1 + $0x78] sm:$0xff]   ;;  %v1963_v4 = vld [vmem:[%s2671_s1 + $0x70] sm:$0xff]   ;;  %v1967_v8 = vld [vmem:[%s2671_s1 + $0x68] sm:$0xff]  }
   0x2   :  { %v1960_v1 = vld [vmem:[%s2671_s1 + $0xf8] sm:$0xff]   ;;  %1783 = vmatprep.subr.bf16.mxu0 %v1959_v0  ;;  %v1964_v5 = vld [vmem:[%s2671_s1 + $0xf0] sm:$0xff]   ;;  %v1968_v9 = vld [vmem:[%s2671_s1 + $0xe8] sm:$0xff]   ;;  %v47_v26 = vshrl.u32 %v46_v21, 7 }
   0x3   :  { %v1961_v2 = vld [vmem:[%s2671_s1 + $0x38] sm:$0xff]   ;;  %1805 = vmatprep.subr.bf16.mxu1 %v1960_v1  ;;  %v1965_v6 = vld [vmem:[%s2671_s1 + $0x30] sm:$0xff]   ;;  %v1969_v10 = vld [vmem:[%s2671_s1 + $0x28] sm:$0xff]  }
   0x4   :  { %v1962_v3 = vld [vmem:[%s2671_s1 + $0xb8] sm:$0xff]   ;;  %1784 = vmatpush3.bf16.msra.mxu0 %v1961_v2  ;;  %v1966_v7 = vld [vmem:[%s2671_s1 + $0xb0] sm:$0xff]   ;;  %v1970_v11 = vld [vmem:[%s2671_s1 + $0xa8] sm:$0xff]   ;;  %v2199_v31 = vsub.s32 1, %v47_v26  ;;  %v2204_v33 = vsub.s32 3, %v47_v26  ;;  %v2209_v35 = vsub.s32 0, %v47_v26 }
   0x5   :  { %1806 = vmatpush3.bf16.msra.mxu1 %v1962_v3  ;;  %1785 = vmatprep.subr.bf16.mxu0 %v1963_v4  ;;  %v1971_v12 = vld [vmem:[%s2671_s1 + $0x60] sm:$0xff]   ;;  %v1975_v16 = vld [vmem:[%s2671_s1 + $0x58] sm:$0xff]   ;;  %v1979_v20 = vld [vmem:[%s2671_s1 + $0x50] sm:$0xff]   ;;  %v2214_v37 = vsub.s32 2, %v47_v26  ;;  %v2254_v58 = vsub.s32 5, %v47_v26  ;;  %v2256_v62 = vsub.s32 7, %v47_v26 }
   0x6   :  { %1807 = vmatprep.subr.bf16.mxu1 %v1964_v5  ;;  %v1972_v13 = vld [vmem:[%s2671_s1 + $0xe0] sm:$0xff]   ;;  %v1976_v17 = vld [vmem:[%s2671_s1 + $0xd8] sm:$0xff]   ;;  %v1980_v22 = vld [vmem:[%s2671_s1 + $0xd0] sm:$0xff]   ;;  %v2258_v0 = vsub.s32 4, %v47_v26  ;;  %v2260_v1 = vsub.s32 6, %v47_v26 }
   0x7   :  { %v1973_v14 = vld [vmem:[%s2671_s1 + $0x20] sm:$0xff]   ;;  %v1977_v18 = vld [vmem:[%s2671_s1 + $0x18] sm:$0xff]   ;;  %v1981_v23 = vld [vmem:[%s2671_s1 + $0x10] sm:$0xff]  }
   0x8   :  { %1786 = vmatpush3.bf16.msra.mxu0 %v1965_v6  ;;  %v1974_v15 = vld [vmem:[%s2671_s1 + $0xa0] sm:$0xff]   ;;  %v1978_v19 = vld [vmem:[%s2671_s1 + $0x98] sm:$0xff]   ;;  %v1982_v24 = vld [vmem:[%s2671_s1 + $0x90] sm:$0xff]  }
   0x9   :  { %1808 = vmatpush3.bf16.msra.mxu1 %v1966_v7  ;;  %1787 = vmatprep.subr.bf16.mxu0 %v1967_v8  ;;  %v1983_v25 = vld [vmem:[%s2671_s1 + $0x48] sm:$0xff]   ;;  %v1987_v30 = vld [vmem:[%s2671_s1 + $0x40] sm:$0xff]   ;;  %v1991_v50 = vld [vmem:[%s2671_s1 + $0x178] sm:$0xff]  }
   0xa   :  { %1809 = vmatprep.subr.bf16.mxu1 %v1968_v9  ;;  %v1984_v27 = vld [vmem:[%s2671_s1 + $0xc8] sm:$0xff]   ;;  %v1988_v32 = vld [vmem:[%s2671_s1 + $0xc0] sm:$0xff]   ;;  %v1992_v55 = vld [vmem:[%s2671_s1 + $0x1f8] sm:$0xff]  }
   0xb   :  { %v1985_v28 = vld [vmem:[%s2671_s1 + $0x8] sm:$0xff]   ;;  %v1989_v34 = vld [vmem:[%s2671_s1] sm:$0xff]  }
   0xc   :  { %1788 = vmatpush3.bf16.msra.mxu0 %v1969_v10  ;;  %v1986_v29 = vld [vmem:[%s2671_s1 + $0x88] sm:$0xff]   ;;  %v1990_v36 = vld [vmem:[%s2671_s1 + $0x80] sm:$0xff]   ;;  %v1993_v10 = vld [vmem:[%s2671_s1 + $0x138] sm:$0xff]  }
   0xd   :  { %1810 = vmatpush3.bf16.msra.mxu1 %v1970_v11  ;;  %1789 = vmatprep.subr.bf16.mxu0 %v1971_v12  ;;  %v18_v38 = vld [vmem:[%s2672_s0] sm:$0xff]  ;;  %v19_v44 = vld [vmem:[%s2672_s0 + $0x8] sm:$0xff] }
   0xe   :  { %1811 = vmatprep.subr.bf16.mxu1 %v1972_v13  ;;  %v2222_v39 = vld [vmem:[%s2673_s2] sm:$0xff]  ;;  %v26_v40 = vunpack.c.l.bf16 %v18_v38  ;;  %v27_v41 = vunpack.c.h.bf16 %v18_v38  ;;  %v28_v47 = vunpack.c.l.bf16 %v19_v44  ;;  %v29_v48 = vunpack.c.h.bf16 %v19_v44  ;;  %v2265_v2 = vld [vmem:[%s2673_s2 + $0x8] sm:$0xff] }
   0xf   :  { %v53_v42 = vrot.slane %v2222_v39, %v2199_v31  ;;  %v2229_v43 = vld [vmem:[%s2674_s3] sm:$0xff]  ;;  %v61_v45 = vrot.slane %v2222_v39, %v2204_v33  ;;  %v49_v52 = vrot.slane %v2222_v39, %v2209_v35  ;;  %v57_v54 = vrot.slane %v2222_v39, %v2214_v37  ;;  %v2270_v6 = vld [vmem:[%s2674_s3 + $0x8] sm:$0xff] }
  0x10   :  { %1790 = vmatpush3.bf16.msra.mxu0 %v1973_v14  ;;  %v153_v46 = vrot.slane %v2229_v43, %v2199_v31  ;;  %v161_v49 = vrot.slane %v2229_v43, %v2204_v33  ;;  %v149_v53 = vrot.slane %v2229_v43, %v2209_v35  ;;  %v157_v57 = vrot.slane %v2229_v43, %v2214_v37  ;;  %v1994_v14 = vld [vmem:[%s2671_s1 + $0x1b8] sm:$0xff]  }
  0x11   :  { %1812 = vmatpush3.bf16.msra.mxu1 %v1974_v15  ;;  %1791 = vmatprep.subr.bf16.mxu0 %v1975_v16  ;;  %v127_v51 = vmul.f32 %v53_v42, %v27_v41  ;;  %v129_v56 = vmul.f32 %v61_v45, %v29_v48  ;;  %v126_v60 = vmul.f32 %v49_v52, %v26_v40  ;;  %v1999_v41 = vld [vmem:[%s2671_s1 + $0x168] sm:$0xff]   ;;  %v2005_v52 = vld [vmem:[%s2671_s1 + $0x120] sm:$0xff]  }
  0x12   :  { %1813 = vmatprep.subr.bf16.mxu1 %v1976_v17  ;;  %v128_v61 = vmul.f32 %v57_v54, %v28_v47  ;;  %v85_v15 = vrot.slane %v2265_v2, %v2199_v31  ;;  %v109_v38 = vrot.slane %v2265_v2, %v2256_v62  ;;  %v209_v40 = vrot.slane %v2270_v6, %v2256_v62  ;;  %v2001_v48 = vld [vmem:[%s2671_s1 + $0x128] sm:$0xff]   ;;  %v2007_v54 = vld [vmem:[%s2671_s1 + $0x158] sm:$0xff]  }
  0x13   :  { %v227_v59 = vadd.f32 %v153_v46, %v127_v51  ;;  %v229_v63 = vadd.f32 %v161_v49, %v129_v56  ;;  %v226_v4 = vadd.f32 %v149_v53, %v126_v60  ;;  %v97_v42 = vrot.slane %v2265_v2, %v2258_v0  ;;  %v2000_v46 = vld [vmem:[%s2671_s1 + $0x1e8] sm:$0xff]   ;;  %v2004_v51 = vld [vmem:[%s2671_s1 + $0x1e0] sm:$0xff]   ;;  %v2009_v56 = vld [vmem:[%s2671_s1 + $0x118] sm:$0xff]  }
  0x14   :  { %1792 = vmatpush3.bf16.msra.mxu0 %v1977_v18  ;;  %v228_v5 = vadd.f32 %v157_v57, %v128_v61  ;;  %v1995_v18 = vld [vmem:[%s2671_s1 + $0x170] sm:$0xff]   ;;  %v197_v44 = vrot.slane %v2270_v6, %v2258_v0  ;;  %v105_v45 = vrot.slane %v2265_v2, %v2260_v1  ;;  %v205_v47 = vrot.slane %v2270_v6, %v2260_v1  ;;  %v2002_v49 = vld [vmem:[%s2671_s1 + $0x1a8] sm:$0xff]   ;;  %v2006_v53 = vld [vmem:[%s2671_s1 + $0x1a0] sm:$0xff]  }
  0x15   :  { %1814 = vmatpush3.bf16.msra.mxu1 %v1978_v19  ;;  %1793 = vmatprep.subr.bf16.mxu0 %v1979_v20  ;;  %vm243_vm0 = vcmp.ge.f32.partialorder %v227_v59, 0.0  ;;  %v259_v3 = vmul.f32 0.2, %v227_v59  ;;  %vm245_vm1 = vcmp.ge.f32.partialorder %v229_v63, 0.0  ;;  %v261_v7 = vmul.f32 0.2, %v229_v63 }
  0x16   :  { %1815 = vmatprep.subr.bf16.mxu1 %v1980_v22  ;;  %vm242_vm2 = vcmp.ge.f32.partialorder %v226_v4, 0.0  ;;  %v258_v9 = vmul.f32 0.2, %v226_v4  ;;  %vm244_vm3 = vcmp.ge.f32.partialorder %v228_v5, 0.0  ;;  %v260_v13 = vmul.f32 0.2, %v228_v5 }
  0x17   :  { %v275_v8 = vsel %vm243_vm0, %v227_v59, %v259_v3  ;;  %v277_v12 = vsel %vm245_vm1, %v229_v63, %v261_v7  ;;  %v185_v19 = vrot.slane %v2270_v6, %v2199_v31  ;;  %v93_v20 = vrot.slane %v2265_v2, %v2204_v33  ;;  %v2010_v57 = vld [vmem:[%s2671_s1 + $0x198] sm:$0xff]   ;;  %v2011_v59 = vld [vmem:[%s2671_s1 + $0x150] sm:$0xff]   ;;  %v2015_v3 = vld [vmem:[%s2671_s1 + $0x148] sm:$0xff]  }
  0x18   :  { %1794 = vmatpush3.bf16.msra.mxu0 %v1981_v23  ;;  %v291_v11 = vpack.c.bf16 %v275_v8, %v275_v8  ;;  %v293_v16 = vpack.c.bf16 %v277_v12, %v277_v12  ;;  %v274_v17 = vsel %vm242_vm2, %v226_v4, %v258_v9  ;;  %v276_v22 = vsel %vm244_vm3, %v228_v5, %v260_v13  ;;  %v1996_v23 = vld [vmem:[%s2671_s1 + $0x1f0] sm:$0xff]   ;;  %v2016_v4 = vld [vmem:[%s2671_s1 + $0x1c8] sm:$0xff]  }
  0x19   :  { %1816 = vmatpush3.bf16.msra.mxu1 %v1982_v24  ;;  %1795 = vmatprep.subr.bf16.mxu0 %v1983_v25  ;;  %v290_v21 = vpack.c.bf16 %v274_v17, %v274_v17  ;;  %v193_v24 = vrot.slane %v2270_v6, %v2204_v33  ;;  %v81_v25 = vrot.slane %v2265_v2, %v2209_v35  ;;  %v2012_v60 = vld [vmem:[%s2671_s1 + $0x1d0] sm:$0xff]   ;;  %v2017_v5 = vld [vmem:[%s2671_s1 + $0x108] sm:$0xff]  }
  0x1a   :  { %1817 = vmatprep.subr.bf16.mxu1 %v1984_v27  ;;  %1362 = vmatprep.mubr.bf16.mxu0 %v291_v11  ;;  %v292_v26 = vpack.c.bf16 %v276_v22, %v276_v22  ;;  %v1997_v27 = vld [vmem:[%s2671_s1 + $0x130] sm:$0xff]   ;;  %v2018_v7 = vld [vmem:[%s2671_s1 + $0x188] sm:$0xff]   ;;  %v69_v8 = vrot.slane %v2222_v39, %v2254_v58  ;;  %v65_v9 = vrot.slane %v2222_v39, %v2258_v0  ;;  %v2020_v22 = vld [vmem:[%s2671_s1 + $0x1c0] sm:$0xff]  }
  0x1b   :  { %1402 = vmatprep.mubr.bf16.mxu1 %v293_v16  ;;  %v2013_v61 = vld [vmem:[%s2671_s1 + $0x110] sm:$0xff]   ;;  %v77_v12 = vrot.slane %v2222_v39, %v2256_v62  ;;  %v73_v13 = vrot.slane %v2222_v39, %v2260_v1  ;;  %v169_v17 = vrot.slane %v2229_v43, %v2254_v58 }
  0x1c   :  { %1796 = vmatpush3.bf16.msra.mxu0 %v1985_v28  ;;  %v181_v28 = vrot.slane %v2270_v6, %v2209_v35  ;;  %v2014_v63 = vld [vmem:[%s2671_s1 + $0x190] sm:$0xff]   ;;  %v2057_v35 = vld [vmem:[%s2671_s1 + $0x338] sm:$0xff]  }
  0x1d   :  { %1818 = vmatpush3.bf16.msra.mxu1 %v1986_v29  ;;  %1797 = vmatprep.subr.bf16.mxu0 %v1987_v30  ;;  %v89_v29 = vrot.slane %v2265_v2, %v2214_v37  ;;  %v189_v30 = vrot.slane %v2270_v6, %v2214_v37  ;;  %v20_v11 = vld [vmem:[%s2672_s0 + $0x10] sm:$0xff] }
  0x1e   :  { %1819 = vmatprep.subr.bf16.mxu1 %v1988_v32  ;;  %v1998_v32 = vld [vmem:[%s2671_s1 + $0x1b0] sm:$0xff]   ;;  %v31_v16 = vunpack.c.h.bf16 %v20_v11 }
  0x20   :  { %1798 = vmatpush3.bf16.msra.mxu0 %v1989_v34  ;;  %v101_v34 = vrot.slane %v2265_v2, %v2254_v58 }
  0x21   :  { %1820 = vmatpush3.bf16.msra.mxu1 %v1990_v36  ;;  %1827 = vmatprep.subr.bf16.mxu0 %v1991_v50  ;;  %v201_v36 = vrot.slane %v2270_v6, %v2254_v58  ;;  %v2003_v50 = vld [vmem:[%s2671_s1 + $0x160] sm:$0xff]  }
  0x22   :  { %1849 = vmatprep.subr.bf16.mxu1 %v1992_v55  ;;  %v2008_v55 = vld [vmem:[%s2671_s1 + $0x1d8] sm:$0xff]  }
  0x23   :  { %1363 = vmatmul.mubr.bf16.vlgmr.msra.gmra.mxu0 %v290_v21  ;;  %v165_v21 = vrot.slane %v2229_v43, %v2258_v0 }
  0x24   :  { %1403 = vmatmul.mubr.bf16.vlgmr.msra.gmra.mxu1 %v292_v26  ;;  %1828 = vmatpush3.bf16.msra.mxu0 %v1993_v10  ;;  %v2019_v10 = vld [vmem:[%s2671_s1 + $0x140] sm:$0xff]   ;;  %v177_v26 = vrot.slane %v2229_v43, %v2256_v62 }
  0x25   :  { %1850 = vmatpush3.bf16.msra.mxu1 %v1994_v14  ;;  %1829 = vmatprep.subr.bf16.mxu0 %v1995_v18  ;;  %v30_v14 = vunpack.c.l.bf16 %v20_v11  ;;  %v21_v18 = vld [vmem:[%s2672_s0 + $0x18] sm:$0xff] }
  0x26   :  { %1851 = vmatprep.subr.bf16.mxu1 %v1996_v23  ;;  %v32_v39 = vunpack.c.l.bf16 %v21_v18  ;;  %v33_v23 = vunpack.c.h.bf16 %v21_v18  ;;  %v2032_v18 = vld [vmem:[%s2671_s1 + $0x2e8] sm:$0xff]  }
  0x28   :  { %1830 = vmatpush3.bf16.msra.mxu0 %v1997_v27  ;;  %v173_v27 = vrot.slane %v2229_v43, %v2260_v1  ;;  %v2023_v43 = vld [vmem:[%s2671_s1 + $0x278] sm:$0xff]  }
  0x29   :  { %1852 = vmatpush3.bf16.msra.mxu1 %v1998_v32  ;;  %1831 = vmatprep.subr.bf16.mxu0 %v1999_v41  ;;  %v2021_v32 = vld [vmem:[%s2671_s1 + $0x100] sm:$0xff]   ;;  %v131_v41 = vmul.f32 %v69_v8, %v31_v16  ;;  %v2030_v16 = vld [vmem:[%s2671_s1 + $0x2b0] sm:$0xff]  }
  0x2a   :  { %1853 = vmatprep.subr.bf16.mxu1 %v2000_v46  ;;  %v130_v46 = vmul.f32 %v65_v9, %v30_v14  ;;  %v2026_v9 = vld [vmem:[%s2671_s1 + $0x2b8] sm:$0xff]   ;;  %v2029_v14 = vld [vmem:[%s2671_s1 + $0x230] sm:$0xff]  }
  0x2c   :  { %1832 = vmatpush3.bf16.msra.mxu0 %v2001_v48  ;;  %v2022_v48 = vld [vmem:[%s2671_s1 + $0x180] sm:$0xff]  }
  0x2d   :  { %1854 = vmatpush3.bf16.msra.mxu1 %v2002_v49  ;;  %1833 = vmatprep.subr.bf16.mxu0 %v2003_v50  ;;  %v133_v49 = vmul.f32 %v77_v12, %v33_v23  ;;  %v132_v50 = vmul.f32 %v73_v13, %v32_v39  ;;  %v2027_v12 = vld [vmem:[%s2671_s1 + $0x270] sm:$0xff]   ;;  %v2035_v39 = vld [vmem:[%s2671_s1 + $0x260] sm:$0xff]  }
  0x2e   :  { %1855 = vmatprep.subr.bf16.mxu1 %v2004_v51  ;;  %v231_v51 = vadd.f32 %v169_v17, %v131_v41  ;;  %v2028_v13 = vld [vmem:[%s2671_s1 + $0x2f0] sm:$0xff]   ;;  %v2031_v17 = vld [vmem:[%s2671_s1 + $0x268] sm:$0xff]   ;;  %v2036_v23 = vld [vmem:[%s2671_s1 + $0x2e0] sm:$0xff]  }
  0x2f   :  { %v2040_v41 = vld [vmem:[%s2671_s1 + $0x2d8] sm:$0xff]  }
  0x30   :  { %1834 = vmatpush3.bf16.msra.mxu0 %v2005_v52  ;;  %v230_v52 = vadd.f32 %v165_v21, %v130_v46  ;;  %vm247_vm4 = vcmp.ge.f32.partialorder %v231_v51, 0.0  ;;  %v2033_v21 = vld [vmem:[%s2671_s1 + $0x228] sm:$0xff]   ;;  %v2041_v46 = vld [vmem:[%s2671_s1 + $0x218] sm:$0xff]  }
  0x31   :  { %1856 = vmatpush3.bf16.msra.mxu1 %v2006_v53  ;;  %1835 = vmatprep.subr.bf16.mxu0 %v2007_v54  ;;  %v233_v53 = vadd.f32 %v177_v26, %v133_v49  ;;  %v232_v54 = vadd.f32 %v173_v27, %v132_v50  ;;  %v2037_v26 = vld [vmem:[%s2671_s1 + $0x220] sm:$0xff]   ;;  %v2043_v49 = vld [vmem:[%s2671_s1 + $0x250] sm:$0xff]  }
  0x32   :  { %1857 = vmatprep.subr.bf16.mxu1 %v2008_v55  ;;  %v2024_v55 = vld [vmem:[%s2671_s1 + $0x2f8] sm:$0xff]   ;;  %vm246_vm5 = vcmp.ge.f32.partialorder %v230_v52, 0.0  ;;  %v2038_v27 = vld [vmem:[%s2671_s1 + $0x2a0] sm:$0xff]   ;;  %v2044_v50 = vld [vmem:[%s2671_s1 + $0x2d0] sm:$0xff]  }
  0x33   :  { %vm249_vm6 = vcmp.ge.f32.partialorder %v233_v53, 0.0  ;;  %vm248_vm7 = vcmp.ge.f32.partialorder %v232_v54, 0.0 }
  0x34   :  { %1836 = vmatpush3.bf16.msra.mxu0 %v2009_v56  ;;  %v263_v56 = vmul.f32 0.2, %v231_v51 }
  0x35   :  { %1858 = vmatpush3.bf16.msra.mxu1 %v2010_v57  ;;  %1837 = vmatprep.subr.bf16.mxu0 %v2011_v59  ;;  %v262_v57 = vmul.f32 0.2, %v230_v52  ;;  %v265_v59 = vmul.f32 0.2, %v233_v53 }
  0x36   :  { %1859 = vmatprep.subr.bf16.mxu1 %v2012_v60  ;;  %v264_v60 = vmul.f32 0.2, %v232_v54 }
  0x38   :  { %1838 = vmatpush3.bf16.msra.mxu0 %v2013_v61  ;;  %v279_v61 = vsel %vm247_vm4, %v231_v51, %v263_v56  ;;  %v280_v8 = vsel %vm248_vm7, %v232_v54, %v264_v60  ;;  %v2045_v51 = vld [vmem:[%s2671_s1 + $0x210] sm:$0xff]   ;;  %v2049_v54 = vld [vmem:[%s2671_s1 + $0x208] sm:$0xff]   ;;  %v2051_v56 = vld [vmem:[%s2671_s1 + $0x240] sm:$0xff]  }
  0x39   :  { %1860 = vmatpush3.bf16.msra.mxu1 %v2014_v63  ;;  %1839 = vmatprep.subr.bf16.mxu0 %v2015_v3  ;;  %v278_v63 = vsel %vm246_vm5, %v230_v52, %v262_v57  ;;  %v2025_v3 = vld [vmem:[%s2671_s1 + $0x238] sm:$0xff]   ;;  %v296_v11 = vpack.c.bf16 %v280_v8, %v280_v8  ;;  %v2046_v52 = vld [vmem:[%s2671_s1 + $0x290] sm:$0xff]   ;;  %v22_v57 = vld [vmem:[%s2672_s0 + $0x20] sm:$0xff] }
  0x3a   :  { %1861 = vmatprep.subr.bf16.mxu1 %v2016_v4  ;;  %v295_v4 = vpack.c.bf16 %v279_v61, %v279_v61  ;;  %v2052_v60 = vld [vmem:[%s2671_s1 + $0x2c0] sm:$0xff]   ;;  %v34_v61 = vunpack.c.l.bf16 %v22_v57 }
  0x3c   :  { %1840 = vmatpush3.bf16.msra.mxu0 %v2017_v5  ;;  %v281_v5 = vsel %vm249_vm6, %v233_v53, %v265_v59  ;;  %1442 = vmatprep.mubr.bf16.mxu0 %v295_v4  ;;  %v2048_v53 = vld [vmem:[%s2671_s1 + $0x2c8] sm:$0xff]  }
  0x3d   :  { %1862 = vmatpush3.bf16.msra.mxu1 %v2018_v7  ;;  %1841 = vmatprep.subr.bf16.mxu0 %v2019_v10  ;;  %v294_v7 = vpack.c.bf16 %v278_v63, %v278_v63  ;;  %v297_v10 = vpack.c.bf16 %v281_v5, %v281_v5  ;;  %v23_v59 = vld [vmem:[%s2672_s0 + $0x28] sm:$0xff]  ;;  %v35_v63 = vunpack.c.h.bf16 %v22_v57  ;;  %v2053_v5 = vld [vmem:[%s2671_s1 + $0x200] sm:$0xff]   ;;  %v2076_v57 = vld [vmem:[%s2671_s1 + $0x3d0] sm:$0xff]  }
  0x3e   :  { %1863 = vmatprep.subr.bf16.mxu1 %v2020_v22  ;;  %v2034_v22 = vld [vmem:[%s2671_s1 + $0x2a8] sm:$0xff]   ;;  %v37_v4 = vunpack.c.h.bf16 %v23_v59 }
  0x3f   :  { %1482 = vmatprep.mubr.bf16.mxu1 %v297_v10  ;;  %v135_v8 = vmul.f32 %v85_v15, %v35_v63  ;;  %v134_v10 = vmul.f32 %v81_v25, %v34_v61  ;;  %v2079_v61 = vld [vmem:[%s2671_s1 + $0x348] sm:$0xff]  }
  0x40   :  { %1842 = vmatpush3.bf16.msra.mxu0 %v2021_v32  ;;  %v2039_v32 = vld [vmem:[%s2671_s1 + $0x258] sm:$0xff]   ;;  %v2080_v63 = vld [vmem:[%s2671_s1 + $0x3c8] sm:$0xff]  }
  0x41   :  { %1864 = vmatpush3.bf16.msra.mxu1 %v2022_v48  ;;  %1871 = vmatprep.subr.bf16.mxu0 %v2023_v43  ;;  %v2042_v48 = vld [vmem:[%s2671_s1 + $0x298] sm:$0xff]   ;;  %v2047_v43 = vld [vmem:[%s2671_s1 + $0x248] sm:$0xff]   ;;  %v235_v15 = vadd.f32 %v185_v19, %v135_v8  ;;  %v234_v25 = vadd.f32 %v181_v28, %v134_v10  ;;  %v24_v8 = vld [vmem:[%s2672_s0 + $0x30] sm:$0xff] }
  0x42   :  { %1893 = vmatprep.subr.bf16.mxu1 %v2024_v55  ;;  %v2050_v55 = vld [vmem:[%s2671_s1 + $0x288] sm:$0xff]   ;;  %v38_v10 = vunpack.c.l.bf16 %v24_v8 }
  0x43   :  { %1443 = vmatmul.mubr.bf16.vlgmr.msra.gmra.mxu0 %v294_v7  ;;  %v2054_v7 = vld [vmem:[%s2671_s1 + $0x280] sm:$0xff]   ;;  %vm251_vm8 = vcmp.ge.f32.partialorder %v235_v15, 0.0  ;;  %v267_v31 = vmul.f32 0.2, %v235_v15  ;;  %vm250_vm10 = vcmp.ge.f32.partialorder %v234_v25, 0.0 }
  0x44   :  { %1483 = vmatmul.mubr.bf16.vlgmr.msra.gmra.mxu1 %v296_v11  ;;  %1872 = vmatpush3.bf16.msra.mxu0 %v2025_v3  ;;  %v36_v3 = vunpack.c.l.bf16 %v23_v59  ;;  %v266_v33 = vmul.f32 0.2, %v234_v25  ;;  %v2077_v59 = vld [vmem:[%s2671_s1 + $0x310] sm:$0xff]  }
  0x45   :  { %1894 = vmatpush3.bf16.msra.mxu1 %v2026_v9  ;;  %1873 = vmatprep.subr.bf16.mxu0 %v2027_v12  ;;  %v137_v9 = vmul.f32 %v93_v20, %v37_v4  ;;  %v2055_v12 = vld [vmem:[%s2671_s1 + $0x378] sm:$0xff]   ;;  %v283_v37 = vsel %vm251_vm8, %v235_v15, %v267_v31  ;;  %v2082_v4 = vld [vmem:[%s2671_s1 + $0x388] sm:$0xff]   ;;  %v138_v31 = vmul.f32 %v97_v42, %v38_v10 }
  0x46   :  { %1895 = vmatprep.subr.bf16.mxu1 %v2028_v13  ;;  %v136_v11 = vmul.f32 %v89_v29, %v36_v3  ;;  %v2056_v13 = vld [vmem:[%s2671_s1 + $0x3f8] sm:$0xff]   ;;  %v2081_v3 = vld [vmem:[%s2671_s1 + $0x308] sm:$0xff]  }
  0x47   :  { %v237_v20 = vadd.f32 %v193_v24, %v137_v9  ;;  %v25_v9 = vld [vmem:[%s2672_s0 + $0x38] sm:$0xff] }
  0x48   :  { %1874 = vmatpush3.bf16.msra.mxu0 %v2029_v14  ;;  %v236_v29 = vadd.f32 %v189_v30, %v136_v11  ;;  %v2058_v30 = vld [vmem:[%s2671_s1 + $0x3b8] sm:$0xff]   ;;  %v299_v14 = vpack.c.bf16 %v283_v37, %v283_v37  ;;  %v39_v11 = vunpack.c.h.bf16 %v24_v8  ;;  %v41_v15 = vunpack.c.h.bf16 %v25_v9 }
  0x49   :  { %1896 = vmatpush3.bf16.msra.mxu1 %v2030_v16  ;;  %1875 = vmatprep.subr.bf16.mxu0 %v2031_v17  ;;  %vm253_vm9 = vcmp.ge.f32.partialorder %v237_v20, 0.0  ;;  %v269_v19 = vmul.f32 0.2, %v237_v20  ;;  %v282_v17 = vsel %vm250_vm10, %v234_v25, %v266_v33  ;;  %v2086_v25 = vld [vmem:[%s2671_s1 + $0x380] sm:$0xff]  }
  0x4a   :  { %1897 = vmatprep.subr.bf16.mxu1 %v2032_v18  ;;  %vm252_vm11 = vcmp.ge.f32.partialorder %v236_v29, 0.0  ;;  %v268_v24 = vmul.f32 0.2, %v236_v29  ;;  %1522 = vmatprep.mubr.bf16.mxu0 %v299_v14 }
  0x4b   :  { %v285_v28 = vsel %vm253_vm9, %v237_v20, %v269_v19  ;;  %v2085_v20 = vld [vmem:[%s2671_s1 + $0x300] sm:$0xff]  }
  0x4c   :  { %1876 = vmatpush3.bf16.msra.mxu0 %v2033_v21  ;;  %v301_v16 = vpack.c.bf16 %v285_v28, %v285_v28  ;;  %v284_v18 = vsel %vm252_vm11, %v236_v29, %v268_v24  ;;  %v2059_v21 = vld [vmem:[%s2671_s1 + $0x370] sm:$0xff]   ;;  %v139_v29 = vmul.f32 %v101_v34, %v39_v11 }
  0x4d   :  { %1898 = vmatpush3.bf16.msra.mxu1 %v2034_v22  ;;  %1877 = vmatprep.subr.bf16.mxu0 %v2035_v39  ;;  %v298_v22 = vpack.c.bf16 %v282_v17, %v282_v17  ;;  %v300_v39 = vpack.c.bf16 %v284_v18, %v284_v18 }
  0x4e   :  { %1899 = vmatprep.subr.bf16.mxu1 %v2036_v23  ;;  %v2060_v23 = vld [vmem:[%s2671_s1 + $0x3f0] sm:$0xff]   ;;  %1562 = vmatprep.mubr.bf16.mxu1 %v301_v16  ;;  %v239_v33 = vadd.f32 %v201_v36, %v139_v29 }
  0x50   :  { %1878 = vmatpush3.bf16.msra.mxu0 %v2037_v26  ;;  %v2061_v26 = vld [vmem:[%s2671_s1 + $0x330] sm:$0xff]   ;;  %vm255_vm12 = vcmp.ge.f32.partialorder %v239_v33, 0.0  ;;  %v271_v2 = vmul.f32 0.2, %v239_v33 }
  0x51   :  { %1900 = vmatpush3.bf16.msra.mxu1 %v2038_v27  ;;  %1879 = vmatprep.subr.bf16.mxu0 %v2039_v32  ;;  %v2062_v27 = vld [vmem:[%s2671_s1 + $0x3b0] sm:$0xff]   ;;  %v2063_v32 = vld [vmem:[%s2671_s1 + $0x368] sm:$0xff]  }
  0x52   :  { %1901 = vmatprep.subr.bf16.mxu1 %v2040_v41  ;;  %v2064_v41 = vld [vmem:[%s2671_s1 + $0x3e8] sm:$0xff]   ;;  %v287_v62 = vsel %vm255_vm12, %v239_v33, %v271_v2 }
  0x53   :  { %v303_v24 = vpack.c.bf16 %v287_v62, %v287_v62 }
  0x54   :  { %1880 = vmatpush3.bf16.msra.mxu0 %v2041_v46  ;;  %v2065_v46 = vld [vmem:[%s2671_s1 + $0x328] sm:$0xff]  }
  0x55   :  { %1902 = vmatpush3.bf16.msra.mxu1 %v2042_v48  ;;  %1881 = vmatprep.subr.bf16.mxu0 %v2043_v49  ;;  %v2066_v48 = vld [vmem:[%s2671_s1 + $0x3a8] sm:$0xff]   ;;  %v2067_v49 = vld [vmem:[%s2671_s1 + $0x360] sm:$0xff]  }
  0x56   :  { %1903 = vmatprep.subr.bf16.mxu1 %v2044_v50  ;;  %v2068_v50 = vld [vmem:[%s2671_s1 + $0x3e0] sm:$0xff]  }
  0x58   :  { %1882 = vmatpush3.bf16.msra.mxu0 %v2045_v51  ;;  %v2069_v51 = vld [vmem:[%s2671_s1 + $0x320] sm:$0xff]  }
  0x59   :  { %1904 = vmatpush3.bf16.msra.mxu1 %v2046_v52  ;;  %1883 = vmatprep.subr.bf16.mxu0 %v2047_v43  ;;  %v2070_v52 = vld [vmem:[%s2671_s1 + $0x3a0] sm:$0xff]   ;;  %v2071_v43 = vld [vmem:[%s2671_s1 + $0x358] sm:$0xff]  }
  0x5a   :  { %1905 = vmatprep.subr.bf16.mxu1 %v2048_v53  ;;  %v2072_v53 = vld [vmem:[%s2671_s1 + $0x3d8] sm:$0xff]  }
  0x5c   :  { %1884 = vmatpush3.bf16.msra.mxu0 %v2049_v54  ;;  %v2073_v54 = vld [vmem:[%s2671_s1 + $0x318] sm:$0xff]  }
  0x5d   :  { %1906 = vmatpush3.bf16.msra.mxu1 %v2050_v55  ;;  %1885 = vmatprep.subr.bf16.mxu0 %v2051_v56  ;;  %v2074_v55 = vld [vmem:[%s2671_s1 + $0x398] sm:$0xff]   ;;  %v2075_v56 = vld [vmem:[%s2671_s1 + $0x350] sm:$0xff]  }
  0x5e   :  { %1907 = vmatprep.subr.bf16.mxu1 %v2052_v60  ;;  %v2078_v60 = vld [vmem:[%s2671_s1 + $0x390] sm:$0xff]  }
  0x60   :  { %1886 = vmatpush3.bf16.msra.mxu0 %v2053_v5  ;;  %v2083_v5 = vld [vmem:[%s2671_s1 + $0x340] sm:$0xff]  }
  0x61   :  { %1908 = vmatpush3.bf16.msra.mxu1 %v2054_v7  ;;  %1915 = vmatprep.subr.bf16.mxu0 %v2055_v12  ;;  %v2084_v7 = vld [vmem:[%s2671_s1 + $0x3c0] sm:$0xff]   ;;  %v40_v12 = vunpack.c.l.bf16 %v25_v9 }
  0x62   :  { %1937 = vmatprep.subr.bf16.mxu1 %v2056_v13  ;;  %v141_v13 = vmul.f32 %v109_v38, %v41_v15  ;;  %v238_v38 = vadd.f32 %v197_v44, %v138_v31 }
  0x63   :  { %1523 = vmatmul.mubr.bf16.vlgmr.msra.gmra.mxu0 %v298_v22  ;;  %v140_v19 = vmul.f32 %v105_v45, %v40_v12 }
  0x64   :  { %1563 = vmatmul.mubr.bf16.vlgmr.msra.gmra.mxu1 %v300_v39  ;;  %1916 = vmatpush3.bf16.msra.mxu0 %v2057_v35  ;;  %v241_v34 = vadd.f32 %v209_v40, %v141_v13  ;;  %vm254_vm14 = vcmp.ge.f32.partialorder %v238_v38, 0.0  ;;  %v270_v58 = vmul.f32 0.2, %v238_v38 }
  0x65   :  { %1938 = vmatpush3.bf16.msra.mxu1 %v2058_v30  ;;  %1917 = vmatprep.subr.bf16.mxu0 %v2059_v21  ;;  %v240_v42 = vadd.f32 %v205_v47, %v140_v19 }
  0x66   :  { %1939 = vmatprep.subr.bf16.mxu1 %v2060_v23  ;;  %vm257_vm13 = vcmp.ge.f32.partialorder %v241_v34, 0.0  ;;  %v273_v45 = vmul.f32 0.2, %v241_v34  ;;  %v286_v0 = vsel %vm254_vm14, %v238_v38, %v270_v58  ;;  %1602 = vmatprep.mubr.bf16.mxu0 %v303_v24 }
  0x67   :  { %vm256_vm15 = vcmp.ge.f32.partialorder %v240_v42, 0.0  ;;  %v272_v36 = vmul.f32 0.2, %v240_v42  ;;  %v302_v37 = vpack.c.bf16 %v286_v0, %v286_v0 }
  0x68   :  { %1918 = vmatpush3.bf16.msra.mxu0 %v2061_v26  ;;  %v289_v40 = vsel %vm257_vm13, %v241_v34, %v273_v45 }
  0x69   :  { %1940 = vmatpush3.bf16.msra.mxu1 %v2062_v27  ;;  %1919 = vmatprep.subr.bf16.mxu0 %v2063_v32  ;;  %v305_v35 = vpack.c.bf16 %v289_v40, %v289_v40  ;;  %v288_v44 = vsel %vm256_vm15, %v240_v42, %v272_v36 }
  0x6a   :  { %1941 = vmatprep.subr.bf16.mxu1 %v2064_v41  ;;  %v304_v28 = vpack.c.bf16 %v288_v44, %v288_v44 }
  0x6b   :  { %1642 = vmatprep.mubr.bf16.mxu1 %v305_v35 }
  0x6c   :  { %1920 = vmatpush3.bf16.msra.mxu0 %v2065_v46 }
  0x6d   :  { %1942 = vmatpush3.bf16.msra.mxu1 %v2066_v48  ;;  %1921 = vmatprep.subr.bf16.mxu0 %v2067_v49 }
  0x6e   :  { %1943 = vmatprep.subr.bf16.mxu1 %v2068_v50 }
  0x70   :  { %1922 = vmatpush3.bf16.msra.mxu0 %v2069_v51 }
  0x71   :  { %1944 = vmatpush3.bf16.msra.mxu1 %v2070_v52  ;;  %1923 = vmatprep.subr.bf16.mxu0 %v2071_v43 }
  0x72   :  { %1945 = vmatprep.subr.bf16.mxu1 %v2072_v53 }
  0x74   :  { %1924 = vmatpush3.bf16.msra.mxu0 %v2073_v54 }
  0x75   :  { %1946 = vmatpush3.bf16.msra.mxu1 %v2074_v55  ;;  %1925 = vmatprep.subr.bf16.mxu0 %v2075_v56 }
  0x76   :  { %1947 = vmatprep.subr.bf16.mxu1 %v2076_v57 }
  0x78   :  { %1926 = vmatpush3.bf16.msra.mxu0 %v2077_v59 }
  0x79   :  { %1948 = vmatpush3.bf16.msra.mxu1 %v2078_v60  ;;  %1927 = vmatprep.subr.bf16.mxu0 %v2079_v61 }
  0x7a   :  { %1949 = vmatprep.subr.bf16.mxu1 %v2080_v63 }
  0x7c   :  { %1928 = vmatpush3.bf16.msra.mxu0 %v2081_v3 }
  0x7d   :  { %1950 = vmatpush3.bf16.msra.mxu1 %v2082_v4  ;;  %1929 = vmatprep.subr.bf16.mxu0 %v2083_v5 }
  0x7e   :  { %1951 = vmatprep.subr.bf16.mxu1 %v2084_v7 }
  0x80   :  { %1930 = vmatpush3.bf16.msra.mxu0 %v2085_v20 }
  0x81   :  { %1952 = vmatpush3.bf16.msra.mxu1 %v2086_v25 }
  0x83   :  { %1603 = vmatmul.mubr.bf16.vlgmr.msra.gmra.mxu0 %v302_v37 }
  0x84   :  { %1643 = vmatmul.mubr.bf16.vlgmr.msra.gmra.mxu1 %v304_v28 }
  0xe3   :  { %v1799_v1 = vpop.f32.mrf.mxu0 }
  0xe4   :  { %v1821_v6 = vpop.f32.mrf.mxu1 }
  0xe5   :  { %v1800_v47 = vpop.f32.mrf.mxu0 }
  0xe6   :  { %v1801_v30 = vadd.f32 %v1800_v47, %v1799_v1  ;;  %v1822_v14 = vpop.f32.mrf.mxu1 }
  0xe7   :  { %v1823_v16 = vadd.f32 %v1822_v14, %v1821_v6  ;;  %v1802_v17 = vpop.f32.mrf.mxu0 }
  0xe8   :  { %v1824_v18 = vpop.f32.mrf.mxu1 }
  0xe9   :  { %v1405_v21 = vadd.f32 %v1823_v16, %v1801_v30  ;;  %v1803_v22 = vpop.f32.mrf.mxu0 }
  0xea   :  { %v1825_v39 = vpop.f32.mrf.mxu1 }
 0x103   :  { %v1843_v23 = vpop.f32.mrf.mxu0 }
 0x104   :  { %v1865_v26 = vpop.f32.mrf.mxu1 }
 0x105   :  { %v1844_v27 = vpop.f32.mrf.mxu0 }
 0x106   :  { %v1845_v32 = vadd.f32 %v1844_v27, %v1843_v23  ;;  %v1866_v41 = vpop.f32.mrf.mxu1 }
 0x107   :  { %v1867_v46 = vadd.f32 %v1866_v41, %v1865_v26  ;;  %v1846_v48 = vpop.f32.mrf.mxu0 }
 0x108   :  { %v1445_v49 = vadd.f32 %v1845_v32, %v1405_v21  ;;  %v1868_v50 = vpop.f32.mrf.mxu1 }
 0x109   :  { %v1847_v51 = vpop.f32.mrf.mxu0 }
 0x10a   :  { %v1485_v52 = vadd.f32 %v1867_v46, %v1445_v49  ;;  %v1869_v43 = vpop.f32.mrf.mxu1 }
 0x123   :  { %v1887_v53 = vpop.f32.mrf.mxu0 }
 0x124   :  { %v1909_v54 = vpop.f32.mrf.mxu1 }
 0x125   :  { %v1888_v55 = vpop.f32.mrf.mxu0 }
 0x126   :  { %v1910_v56 = vpop.f32.mrf.mxu1  ;;  %v1889_v63 = vadd.f32 %v1888_v55, %v1887_v53 }
 0x127   :  { %v1890_v57 = vpop.f32.mrf.mxu0  ;;  %v1911_v4 = vadd.f32 %v1910_v56, %v1909_v54 }
 0x128   :  { %v1912_v59 = vpop.f32.mrf.mxu1  ;;  %v1525_v3 = vadd.f32 %v1889_v63, %v1485_v52 }
 0x129   :  { %v1891_v60 = vpop.f32.mrf.mxu0 }
 0x12a   :  { %v1913_v61 = vpop.f32.mrf.mxu1  ;;  %v1565_v10 = vadd.f32 %v1911_v4, %v1525_v3 }
 0x143   :  { %v1931_v5 = vpop.f32.mrf.mxu0 }
 0x144   :  { %v1953_v7 = vpop.f32.mrf.mxu1 }
 0x145   :  { %v1932_v8 = vpop.f32.mrf.mxu0 }
 0x146   :  { %v1954_v9 = vpop.f32.mrf.mxu1  ;;  %v1933_v11 = vadd.f32 %v1932_v8, %v1931_v5 }
 0x147   :  { %v1934_v12 = vpop.f32.mrf.mxu0  ;;  %v1955_v25 = vadd.f32 %v1954_v9, %v1953_v7 }
 0x148   :  { %v1956_v15 = vpop.f32.mrf.mxu1  ;;  %v1605_v20 = vadd.f32 %v1933_v11, %v1565_v10 }
 0x149   :  { %v1935_v29 = vpop.f32.mrf.mxu0 }
 0x14a   :  { %v1957_v13 = vpop.f32.mrf.mxu1  ;;  %v1645_v31 = vadd.f32 %v1955_v25, %v1605_v20 }
 0x14c   :  { %1650 = vst [vmem:[%s2675_s4] sm:$0xff] %v1645_v31 }

</bundles_post_ra>
